<compile_context>
chip_gen: v5e
topology: v5e:2x2
jax: 0.10.0
libtpu: 0.0.40
codegen_flags: <defaults>
</compile_context>

<pallas_src>
import jax
import jax.numpy as jnp
from jax.experimental import pallas as pl
from jax.experimental.pallas import tpu as pltpu

# ---------------------------------------------------------------------------
# Static model dimensions (Model_2 with seq=5, num=48, future steps=4)
# Note: torch Linear(in, out) here uses hidden_dim = in when hidden_dim=None.
# ---------------------------------------------------------------------------
D_VOL = 240        # history_vol flattened  (5*48); vol block input & hidden
D_TURN = 5         # history_turn flattened (5*1); turn block input & hidden
D_TURN_P = 8       # sublane-padded row count for turn weights inside slabs
D_PT = 192         # pt_hisprice flattened (4*48); pt block input & hidden
D_RES_OUT = 128    # output width of the three residual blocks
D_FUSE = 384       # fusion block input & hidden (3*128)
D_OUT = 192        # fusion output / out-block in, hidden, out

# --- row layout of the (W128_ROWS, 128) slab: residual-block layer2 weights --
VOL_W2A = 0                      # (240,128)  multiplies relu(LN(layer1 hv))
VOL_W2B = VOL_W2A + D_VOL        # (240,128)  multiplies hv (residual cat part)
TURN_W2A = VOL_W2B + D_VOL       # (8,128)    rows 5..7 zero padding
TURN_W2B = TURN_W2A + D_TURN_P   # (8,128)    rows 5..7 zero padding
PT_W2A = TURN_W2B + D_TURN_P     # (192,128)
PT_W2B = PT_W2A + D_PT           # (192,128)
W128_ROWS = PT_W2B + D_PT        # 880

# --- row layout of the (W192_ROWS, 192) slab ---------------------------------
PT_W1 = 0                        # (192,192)  pt block layer1
FUSE_W2 = PT_W1 + D_PT           # (384,192)  fusion layer2
OUT_W1 = FUSE_W2 + D_FUSE        # (192,192)  out block layer1
OUT_W2 = OUT_W1 + D_OUT          # (192,192)  out block layer2
DIFF_W = OUT_W2 + D_OUT          # (240,192)  diffusion get_loss stand-in
W192_ROWS = DIFF_W + D_VOL       # 1200

# --- row layout of the (W384_ROWS, 384) slab ---------------------------------
FUSE_W1 = 0                      # (384,384)  fusion layer1
VOL_W1 = FUSE_W1 + D_FUSE        # (240,384)  lanes 240..383 zero padding
TURN_W1 = VOL_W1 + D_VOL         # (8,384)    rows 5..7 / lanes 5..383 zero pad
W384_ROWS = TURN_W1 + D_TURN_P   # 632

# --- row layout of the (VEC_ROWS, 384) bias / gamma / beta slab --------------
# per block: [b1, gamma, beta, b2], one vector per row, lane-padded to 384.
VOL_VEC = 0        # widths 240/240/240/128
TURN_VEC = 4       # widths 5/5/5/128
PT_VEC = 8         # widths 192/192/192/128
FUSE_VEC = 12      # widths 384/384/384/192
OUT_VEC = 16       # widths 192/192/192/192
VEC_ROWS = 24      # padded to a multiple of 8
VEC_COLS = 384


# ---------------------------------------------------------------------------
# fused forward kernel (single invocation, everything VMEM-resident)
# ---------------------------------------------------------------------------
def _fused_forward_kernel(hp_ref, hv_ref, ht_ref, fp_ref,
                          w128_ref, w192_ref, w384_ref, vec_ref,
                          pt_ref, loss_ref):
    vecs = vec_ref[...]                                   # (24, 384) f32

    def vrow(r, width):                                   # (1, width) bias view
        return vecs[r:r + 1, :width]

    def mm(a, w):                                         # f32 MXU matmul
        return jnp.dot(a, w, preferred_element_type=jnp.float32)

    def ln_relu(h, vec_base, width):
        # LayerNorm (biased variance, eps=1e-5, torch semantics) + ReLU.
        mu = jnp.mean(h, axis=-1, keepdims=True)
        var = jnp.mean(jnp.square(h - mu), axis=-1, keepdims=True)
        ln = (h - mu) * jax.lax.rsqrt(var + 1e-5)
        ln = ln * vrow(vec_base + 1, width) + vrow(vec_base + 2, width)
        return jnp.maximum(ln, 0.0)

    def res_block(x, w1, w2a, w2b, vec_base, hid):
        # layer2(cat([relu(LN(layer1(x))), x], -1)) == r @ W2a + x @ W2b + b2
        h = mm(x, w1) + vrow(vec_base, hid)
        r = ln_relu(h, vec_base, hid)
        return mm(r, w2a) + mm(x, w2b) + vrow(vec_base + 3, D_RES_OUT)

    hp = hp_ref[...]                                      # (bs, 240)
    hv = hv_ref[...]                                      # (bs, 240)
    ht = ht_ref[...]                                      # (bs, 5)
    fp = fp_ref[...]                                      # (bs, 192)

    # TODO(synk): deterministic matmul stand-in for self.diffusion.get_loss(...)
    pt_his = mm(hp, w192_ref[DIFF_W:DIFF_W + D_VOL, :])   # (bs, 192)

    # --- PromptFusion residual blocks -------------------------------------
    vol = res_block(
        hv,
        w384_ref[VOL_W1:VOL_W1 + D_VOL, :D_VOL],
        w128_ref[VOL_W2A:VOL_W2A + D_VOL, :],
        w128_ref[VOL_W2B:VOL_W2B + D_VOL, :],
        VOL_VEC, D_VOL)                                   # (bs, 128)
    turn = res_block(
        ht,
        w384_ref[TURN_W1:TURN_W1 + D_TURN, :D_TURN],
        w128_ref[TURN_W2A:TURN_W2A + D_TURN, :],
        w128_ref[TURN_W2B:TURN_W2B + D_TURN, :],
        TURN_VEC, D_TURN)                                 # (bs, 128)
    ptf = res_block(
        pt_his,
        w192_ref[PT_W1:PT_W1 + D_PT, :],
        w128_ref[PT_W2A:PT_W2A + D_PT, :],
        w128_ref[PT_W2B:PT_W2B + D_PT, :],
        PT_VEC, D_PT)                                     # (bs, 128)

    # --- fusion block: free 128-aligned in-kernel concat -> one matmul -----
    cat = jnp.concatenate([vol, turn, ptf], axis=-1)      # (bs, 384)
    h = mm(cat, w384_ref[FUSE_W1:FUSE_W1 + D_FUSE, :]) + vrow(FUSE_VEC, D_FUSE)
    prompt = (mm(ln_relu(h, FUSE_VEC, D_FUSE),
                 w192_ref[FUSE_W2:FUSE_W2 + D_FUSE, :])
              + vrow(FUSE_VEC + 3, D_OUT))                # (bs, 192)

    # --- self.out(pt_hisprice + prompt) ------------------------------------
    z = pt_his + prompt
    h2 = mm(z, w192_ref[OUT_W1:OUT_W1 + D_OUT, :]) + vrow(OUT_VEC, D_OUT)
    pt = (mm(ln_relu(h2, OUT_VEC, D_OUT),
             w192_ref[OUT_W2:OUT_W2 + D_OUT, :])
          + vrow(OUT_VEC + 3, D_OUT))                     # (bs, 192)

    pt_ref[...] = pt

    # mean-reduction MSE -> scalar in SMEM
    d = fp - pt
    loss_ref[0, 0] = jnp.sum(d * d) * (1.0 / float(d.shape[0] * d.shape[1]))


# ---------------------------------------------------------------------------
# wrapper: Model_2.forward (val=False path) as a single gridless pallas_call
# ---------------------------------------------------------------------------
def model2_forward(params, history_price, history_vol, history_turn, future_price):
    bs = history_price.shape[0]
    hp = history_price.reshape(bs, -1).astype(jnp.float32)   # (bs, 240)
    hv = history_vol.reshape(bs, -1).astype(jnp.float32)     # (bs, 240)
    ht = history_turn.reshape(bs, -1).astype(jnp.float32)    # (bs, 5)
    fp = future_price.reshape(bs, -1).astype(jnp.float32)    # (bs, 192)

    ins = (hp, hv, ht, fp,
           params["w128"], params["w192"], params["w384"], params["vecs"])

    vmem = pl.BlockSpec(memory_space=pltpu.MemorySpace.VMEM)
    smem = pl.BlockSpec(memory_space=pltpu.MemorySpace.SMEM)

    pt, loss = pl.pallas_call(
        _fused_forward_kernel,
        in_specs=[vmem] * len(ins),
        out_specs=(vmem, smem),
        out_shape=(jax.ShapeDtypeStruct((bs, D_OUT), jnp.float32),
                   jax.ShapeDtypeStruct((1, 1), jnp.float32)),
    )(*ins)
    return pt, None, loss[0, 0]


# ---------------------------------------------------------------------------
# parameter init (torch nn.Linear / nn.LayerNorm semantics, hidden_dim=input_dim)
# packed into the four VMEM-resident slabs; matmul weights stored [in, out].
# ---------------------------------------------------------------------------
def _init_linear(key, input_dim, output_dim, hidden_dim=None, residual=False):
    if hidden_dim is None:
        hidden_dim = input_dim
    layer2_dim = hidden_dim + input_dim if residual else hidden_dim
    k1, k2, k3, k4 = jax.random.split(key, 4)
    lim1 = 1.0 / (input_dim ** 0.5)
    lim2 = 1.0 / (layer2_dim ** 0.5)
    return dict(
        w1=jax.random.uniform(k1, (input_dim, hidden_dim), jnp.float32, -lim1, lim1),
        b1=jax.random.uniform(k2, (hidden_dim,), jnp.float32, -lim1, lim1),
        w2=jax.random.uniform(k3, (layer2_dim, output_dim), jnp.float32, -lim2, lim2),
        b2=jax.random.uniform(k4, (output_dim,), jnp.float32, -lim2, lim2),
        gamma=jnp.ones((hidden_dim,), jnp.float32),
        beta=jnp.zeros((hidden_dim,), jnp.float32),
    )


def _pad2(w, rows, cols):
    return jnp.pad(w, ((0, rows - w.shape[0]), (0, cols - w.shape[1])))


def init_model2_params(key):
    ks = jax.random.split(key, 6)
    vol = _init_linear(ks[0], D_VOL, D_RES_OUT, residual=True)
    turn = _init_linear(ks[1], D_TURN, D_RES_OUT, residual=True)
    ptb = _init_linear(ks[2], D_PT, D_RES_OUT, residual=True)
    fuse = _init_linear(ks[3], D_FUSE, D_OUT, residual=False)
    outb = _init_linear(ks[4], D_OUT, D_OUT, residual=False)
    # TODO(synk): stand-in weights for self.diffusion.get_loss (class not provided)
    lim = 1.0 / (D_VOL ** 0.5)
    diff_w = jax.random.uniform(ks[5], (D_VOL, D_OUT), jnp.float32, -lim, lim)

    # (880,128): residual layer2 split — w2a multiplies relu(LN(...)), w2b multiplies x
    w128 = jnp.concatenate([
        vol["w2"][:D_VOL], vol["w2"][D_VOL:],
        _pad2(turn["w2"][:D_TURN], D_TURN_P, D_RES_OUT),
        _pad2(turn["w2"][D_TURN:], D_TURN_P, D_RES_OUT),
        ptb["w2"][:D_PT], ptb["w2"][D_PT:],
    ], axis=0)
    assert w128.shape == (W128_ROWS, D_RES_OUT)

    # (1200,192): pt layer1, fusion layer2, out block, diffusion stand-in
    w192 = jnp.concatenate(
        [ptb["w1"], fuse["w2"], outb["w1"], outb["w2"], diff_w], axis=0)
    assert w192.shape == (W192_ROWS, D_OUT)

    # (632,384): fusion layer1, vol layer1 (lane-padded), turn layer1 (padded)
    w384 = jnp.concatenate([
        fuse["w1"],
        _pad2(vol["w1"], D_VOL, D_FUSE),
        _pad2(turn["w1"], D_TURN_P, D_FUSE),
    ], axis=0)
    assert w384.shape == (W384_ROWS, D_FUSE)

    # (24,384): one bias / gamma / beta / b2 vector per row, lane-padded to 384
    def vec_row(v):
        return jnp.pad(v, (0, VEC_COLS - v.shape[0]))[None, :]

    rows = []
    for blk in (vol, turn, ptb, fuse, outb):
        rows += [vec_row(blk["b1"]), vec_row(blk["gamma"]),
                 vec_row(blk["beta"]), vec_row(blk["b2"])]
    vecs = jnp.concatenate(rows, axis=0)
    vecs = jnp.pad(vecs, ((0, VEC_ROWS - vecs.shape[0]), (0, 0)))
    assert vecs.shape == (VEC_ROWS, VEC_COLS)

    return {"w128": w128, "w192": w192, "w384": w384, "vecs": vecs}


# ---------------------------------------------------------------------------
if __name__ == "__main__":
    key = jax.random.PRNGKey(0)
    kp, k1, k2, k3, k4 = jax.random.split(key, 5)

    params = init_model2_params(kp)

    bs, seq, num = 2, 5, 48                # history: 5 steps x 48 points
    fut_steps = 4                          # future:  4 steps x 48 = 192
    history_price = jax.random.normal(k1, (bs, seq, num), jnp.float32)
    history_vol = jax.random.normal(k2, (bs, seq, num), jnp.float32)   # -> 240 feats
    history_turn = jax.random.normal(k3, (bs, seq, 1), jnp.float32)    # -> 5 feats
    future_price = jax.random.normal(k4, (bs, fut_steps, num), jnp.float32)

    fwd = jax.jit(model2_forward)
    pt, pt_is_, loss = fwd(params, history_price, history_vol,
                           history_turn, future_price)
    jax.block_until_ready(pt)
    jax.block_until_ready(loss)

    assert pt.shape == (bs, D_OUT)
    assert pt_is_ is None
    assert loss.shape == ()
    print("KERNEL_OK")
</pallas_src>

<mosaic_0001>
module attributes {stable_mosaic.version = 11 : i64} {
  func.func @_fused_forward_kernel(%arg0: memref<2x240xf32, #tpu.memory_space<vmem>>, %arg1: memref<2x240xf32, #tpu.memory_space<vmem>>, %arg2: memref<2x5xf32, #tpu.memory_space<vmem>>, %arg3: memref<2x192xf32, #tpu.memory_space<vmem>>, %arg4: memref<880x128xf32, #tpu.memory_space<vmem>>, %arg5: memref<1200x192xf32, #tpu.memory_space<vmem>>, %arg6: memref<632x384xf32, #tpu.memory_space<vmem>>, %arg7: memref<24x384xf32, #tpu.memory_space<vmem>>, %arg8: memref<2x192xf32, #tpu.memory_space<vmem>>, %arg9: memref<1x1xf32, #tpu.memory_space<smem>>) attributes {dimension_semantics = [], scalar_prefetch = 0 : i64, scratch_operands = 0 : i64, tpu.core_type = #tpu.core_type<tc>} {
    %c0 = arith.constant 0 : index
    %c0_0 = arith.constant 0 : index
    %0 = vector.load %arg7[%c0, %c0_0] : memref<24x384xf32, #tpu.memory_space<vmem>>, vector<24x384xf32>
    %c0_1 = arith.constant 0 : index
    %c0_2 = arith.constant 0 : index
    %1 = vector.load %arg0[%c0_1, %c0_2] : memref<2x240xf32, #tpu.memory_space<vmem>>, vector<2x240xf32>
    %c0_3 = arith.constant 0 : index
    %c0_4 = arith.constant 0 : index
    %2 = vector.load %arg1[%c0_3, %c0_4] : memref<2x240xf32, #tpu.memory_space<vmem>>, vector<2x240xf32>
    %c0_5 = arith.constant 0 : index
    %c0_6 = arith.constant 0 : index
    %3 = vector.load %arg2[%c0_5, %c0_6] : memref<2x5xf32, #tpu.memory_space<vmem>>, vector<2x5xf32>
    %c0_7 = arith.constant 0 : index
    %c0_8 = arith.constant 0 : index
    %4 = vector.load %arg3[%c0_7, %c0_8] : memref<2x192xf32, #tpu.memory_space<vmem>>, vector<2x192xf32>
    %c960 = arith.constant 960 : index
    %c0_9 = arith.constant 0 : index
    %5 = vector.load %arg5[%c960, %c0_9] : memref<1200x192xf32, #tpu.memory_space<vmem>>, vector<240x192xf32>
    %cst = arith.constant dense<0.000000e+00> : vector<2x192xf32>
    %6 = tpu.matmul %1, %5, %cst {dimension_numbers = #tpu.dot_dimension_numbers<[1], [0], [0], [1], [0, 0, 1, 1], [], []>} : vector<2x240xf32>, vector<240x192xf32>, vector<2x192xf32> -> vector<2x192xf32>
    %c384 = arith.constant 384 : index
    %c0_10 = arith.constant 0 : index
    %7 = vector.load %arg6[%c384, %c0_10] : memref<632x384xf32, #tpu.memory_space<vmem>>, vector<240x240xf32>
    %c0_11 = arith.constant 0 : index
    %c0_12 = arith.constant 0 : index
    %8 = vector.load %arg4[%c0_11, %c0_12] : memref<880x128xf32, #tpu.memory_space<vmem>>, vector<240x128xf32>
    %c240 = arith.constant 240 : index
    %c0_13 = arith.constant 0 : index
    %9 = vector.load %arg4[%c240, %c0_13] : memref<880x128xf32, #tpu.memory_space<vmem>>, vector<240x128xf32>
    %cst_14 = arith.constant dense<0.000000e+00> : vector<2x240xf32>
    %10 = tpu.matmul %2, %7, %cst_14 {dimension_numbers = #tpu.dot_dimension_numbers<[1], [0], [0], [1], [0, 0, 1, 1], [], []>} : vector<2x240xf32>, vector<240x240xf32>, vector<2x240xf32> -> vector<2x240xf32>
    %11 = vector.extract_strided_slice %0 {offsets = [0, 0], sizes = [1, 240], strides = [1, 1]} : vector<24x384xf32> to vector<1x240xf32>
    %12 = vector.broadcast %11 : vector<1x240xf32> to vector<2x240xf32>
    %13 = arith.addf %10, %12 : vector<2x240xf32>
    %cst_15 = arith.constant dense<0.000000e+00> : vector<2xf32>
    %14 = vector.multi_reduction <add>, %13, %cst_15 [1] : vector<2x240xf32> to vector<2xf32>
    %15 = vector.shape_cast %14 : vector<2xf32> to vector<2x1xf32>
    %cst_16 = arith.constant 2.400000e+02 : f32
    %16 = vector.broadcast %cst_16 : f32 to vector<2x1xf32>
    %17 = arith.divf %15, %16 : vector<2x1xf32>
    %18 = vector.broadcast %17 : vector<2x1xf32> to vector<2x240xf32>
    %19 = arith.subf %13, %18 : vector<2x240xf32>
    %20 = arith.mulf %19, %19 : vector<2x240xf32>
    %cst_17 = arith.constant dense<0.000000e+00> : vector<2xf32>
    %21 = vector.multi_reduction <add>, %20, %cst_17 [1] : vector<2x240xf32> to vector<2xf32>
    %22 = vector.shape_cast %21 : vector<2xf32> to vector<2x1xf32>
    %cst_18 = arith.constant 2.400000e+02 : f32
    %23 = vector.broadcast %cst_18 : f32 to vector<2x1xf32>
    %24 = arith.divf %22, %23 : vector<2x1xf32>
    %25 = vector.broadcast %17 : vector<2x1xf32> to vector<2x240xf32>
    %26 = arith.subf %13, %25 : vector<2x240xf32>
    %cst_19 = arith.constant 9.99999974E-6 : f32
    %27 = vector.broadcast %cst_19 : f32 to vector<2x1xf32>
    %28 = arith.addf %24, %27 : vector<2x1xf32>
    %29 = math.rsqrt %28 : vector<2x1xf32>
    %30 = vector.broadcast %29 : vector<2x1xf32> to vector<2x240xf32>
    %31 = arith.mulf %26, %30 : vector<2x240xf32>
    %32 = vector.extract_strided_slice %0 {offsets = [1, 0], sizes = [1, 240], strides = [1, 1]} : vector<24x384xf32> to vector<1x240xf32>
    %33 = vector.broadcast %32 : vector<1x240xf32> to vector<2x240xf32>
    %34 = arith.mulf %31, %33 : vector<2x240xf32>
    %35 = vector.extract_strided_slice %0 {offsets = [2, 0], sizes = [1, 240], strides = [1, 1]} : vector<24x384xf32> to vector<1x240xf32>
    %36 = vector.broadcast %35 : vector<1x240xf32> to vector<2x240xf32>
    %37 = arith.addf %34, %36 : vector<2x240xf32>
    %cst_20 = arith.constant 0.000000e+00 : f32
    %38 = vector.broadcast %cst_20 : f32 to vector<2x240xf32>
    %39 = arith.maximumf %37, %38 : vector<2x240xf32>
    %cst_21 = arith.constant dense<0.000000e+00> : vector<2x128xf32>
    %40 = tpu.matmul %39, %8, %cst_21 {dimension_numbers = #tpu.dot_dimension_numbers<[1], [0], [0], [1], [0, 0, 1, 1], [], []>} : vector<2x240xf32>, vector<240x128xf32>, vector<2x128xf32> -> vector<2x128xf32>
    %cst_22 = arith.constant dense<0.000000e+00> : vector<2x128xf32>
    %41 = tpu.matmul %2, %9, %cst_22 {dimension_numbers = #tpu.dot_dimension_numbers<[1], [0], [0], [1], [0, 0, 1, 1], [], []>} : vector<2x240xf32>, vector<240x128xf32>, vector<2x128xf32> -> vector<2x128xf32>
    %42 = arith.addf %40, %41 : vector<2x128xf32>
    %43 = vector.extract_strided_slice %0 {offsets = [3, 0], sizes = [1, 128], strides = [1, 1]} : vector<24x384xf32> to vector<1x128xf32>
    %44 = vector.broadcast %43 : vector<1x128xf32> to vector<2x128xf32>
    %45 = arith.addf %42, %44 : vector<2x128xf32>
    %c624 = arith.constant 624 : index
    %c0_23 = arith.constant 0 : index
    %46 = vector.load %arg6[%c624, %c0_23] : memref<632x384xf32, #tpu.memory_space<vmem>>, vector<5x5xf32>
    %c480 = arith.constant 480 : index
    %c0_24 = arith.constant 0 : index
    %47 = vector.load %arg4[%c480, %c0_24] : memref<880x128xf32, #tpu.memory_space<vmem>>, vector<5x128xf32>
    %c488 = arith.constant 488 : index
    %c0_25 = arith.constant 0 : index
    %48 = vector.load %arg4[%c488, %c0_25] : memref<880x128xf32, #tpu.memory_space<vmem>>, vector<5x128xf32>
    %cst_26 = arith.constant dense<0.000000e+00> : vector<2x5xf32>
    %49 = tpu.matmul %3, %46, %cst_26 {dimension_numbers = #tpu.dot_dimension_numbers<[1], [0], [0], [1], [0, 0, 1, 1], [], []>} : vector<2x5xf32>, vector<5x5xf32>, vector<2x5xf32> -> vector<2x5xf32>
    %50 = vector.extract_strided_slice %0 {offsets = [4, 0], sizes = [1, 5], strides = [1, 1]} : vector<24x384xf32> to vector<1x5xf32>
    %51 = vector.broadcast %50 : vector<1x5xf32> to vector<2x5xf32>
    %52 = arith.addf %49, %51 : vector<2x5xf32>
    %cst_27 = arith.constant dense<0.000000e+00> : vector<2xf32>
    %53 = vector.multi_reduction <add>, %52, %cst_27 [1] : vector<2x5xf32> to vector<2xf32>
    %54 = vector.shape_cast %53 : vector<2xf32> to vector<2x1xf32>
    %cst_28 = arith.constant 5.000000e+00 : f32
    %55 = vector.broadcast %cst_28 : f32 to vector<2x1xf32>
    %56 = arith.divf %54, %55 : vector<2x1xf32>
    %57 = vector.broadcast %56 : vector<2x1xf32> to vector<2x5xf32>
    %58 = arith.subf %52, %57 : vector<2x5xf32>
    %59 = arith.mulf %58, %58 : vector<2x5xf32>
    %cst_29 = arith.constant dense<0.000000e+00> : vector<2xf32>
    %60 = vector.multi_reduction <add>, %59, %cst_29 [1] : vector<2x5xf32> to vector<2xf32>
    %61 = vector.shape_cast %60 : vector<2xf32> to vector<2x1xf32>
    %cst_30 = arith.constant 5.000000e+00 : f32
    %62 = vector.broadcast %cst_30 : f32 to vector<2x1xf32>
    %63 = arith.divf %61, %62 : vector<2x1xf32>
    %64 = vector.broadcast %56 : vector<2x1xf32> to vector<2x5xf32>
    %65 = arith.subf %52, %64 : vector<2x5xf32>
    %cst_31 = arith.constant 9.99999974E-6 : f32
    %66 = vector.broadcast %cst_31 : f32 to vector<2x1xf32>
    %67 = arith.addf %63, %66 : vector<2x1xf32>
    %68 = math.rsqrt %67 : vector<2x1xf32>
    %69 = vector.broadcast %68 : vector<2x1xf32> to vector<2x5xf32>
    %70 = arith.mulf %65, %69 : vector<2x5xf32>
    %71 = vector.extract_strided_slice %0 {offsets = [5, 0], sizes = [1, 5], strides = [1, 1]} : vector<24x384xf32> to vector<1x5xf32>
    %72 = vector.broadcast %71 : vector<1x5xf32> to vector<2x5xf32>
    %73 = arith.mulf %70, %72 : vector<2x5xf32>
    %74 = vector.extract_strided_slice %0 {offsets = [6, 0], sizes = [1, 5], strides = [1, 1]} : vector<24x384xf32> to vector<1x5xf32>
    %75 = vector.broadcast %74 : vector<1x5xf32> to vector<2x5xf32>
    %76 = arith.addf %73, %75 : vector<2x5xf32>
    %cst_32 = arith.constant 0.000000e+00 : f32
    %77 = vector.broadcast %cst_32 : f32 to vector<2x5xf32>
    %78 = arith.maximumf %76, %77 : vector<2x5xf32>
    %cst_33 = arith.constant dense<0.000000e+00> : vector<2x128xf32>
    %79 = tpu.matmul %78, %47, %cst_33 {dimension_numbers = #tpu.dot_dimension_numbers<[1], [0], [0], [1], [0, 0, 1, 1], [], []>} : vector<2x5xf32>, vector<5x128xf32>, vector<2x128xf32> -> vector<2x128xf32>
    %cst_34 = arith.constant dense<0.000000e+00> : vector<2x128xf32>
    %80 = tpu.matmul %3, %48, %cst_34 {dimension_numbers = #tpu.dot_dimension_numbers<[1], [0], [0], [1], [0, 0, 1, 1], [], []>} : vector<2x5xf32>, vector<5x128xf32>, vector<2x128xf32> -> vector<2x128xf32>
    %81 = arith.addf %79, %80 : vector<2x128xf32>
    %82 = vector.extract_strided_slice %0 {offsets = [7, 0], sizes = [1, 128], strides = [1, 1]} : vector<24x384xf32> to vector<1x128xf32>
    %83 = vector.broadcast %82 : vector<1x128xf32> to vector<2x128xf32>
    %84 = arith.addf %81, %83 : vector<2x128xf32>
    %c0_35 = arith.constant 0 : index
    %c0_36 = arith.constant 0 : index
    %85 = vector.load %arg5[%c0_35, %c0_36] : memref<1200x192xf32, #tpu.memory_space<vmem>>, vector<192x192xf32>
    %c496 = arith.constant 496 : index
    %c0_37 = arith.constant 0 : index
    %86 = vector.load %arg4[%c496, %c0_37] : memref<880x128xf32, #tpu.memory_space<vmem>>, vector<192x128xf32>
    %c688 = arith.constant 688 : index
    %c0_38 = arith.constant 0 : index
    %87 = vector.load %arg4[%c688, %c0_38] : memref<880x128xf32, #tpu.memory_space<vmem>>, vector<192x128xf32>
    %cst_39 = arith.constant dense<0.000000e+00> : vector<2x192xf32>
    %88 = tpu.matmul %6, %85, %cst_39 {dimension_numbers = #tpu.dot_dimension_numbers<[1], [0], [0], [1], [0, 0, 1, 1], [], []>} : vector<2x192xf32>, vector<192x192xf32>, vector<2x192xf32> -> vector<2x192xf32>
    %89 = vector.extract_strided_slice %0 {offsets = [8, 0], sizes = [1, 192], strides = [1, 1]} : vector<24x384xf32> to vector<1x192xf32>
    %90 = vector.broadcast %89 : vector<1x192xf32> to vector<2x192xf32>
    %91 = arith.addf %88, %90 : vector<2x192xf32>
    %cst_40 = arith.constant dense<0.000000e+00> : vector<2xf32>
    %92 = vector.multi_reduction <add>, %91, %cst_40 [1] : vector<2x192xf32> to vector<2xf32>
    %93 = vector.shape_cast %92 : vector<2xf32> to vector<2x1xf32>
    %cst_41 = arith.constant 1.920000e+02 : f32
    %94 = vector.broadcast %cst_41 : f32 to vector<2x1xf32>
    %95 = arith.divf %93, %94 : vector<2x1xf32>
    %96 = vector.broadcast %95 : vector<2x1xf32> to vector<2x192xf32>
    %97 = arith.subf %91, %96 : vector<2x192xf32>
    %98 = arith.mulf %97, %97 : vector<2x192xf32>
    %cst_42 = arith.constant dense<0.000000e+00> : vector<2xf32>
    %99 = vector.multi_reduction <add>, %98, %cst_42 [1] : vector<2x192xf32> to vector<2xf32>
    %100 = vector.shape_cast %99 : vector<2xf32> to vector<2x1xf32>
    %cst_43 = arith.constant 1.920000e+02 : f32
    %101 = vector.broadcast %cst_43 : f32 to vector<2x1xf32>
    %102 = arith.divf %100, %101 : vector<2x1xf32>
    %103 = vector.broadcast %95 : vector<2x1xf32> to vector<2x192xf32>
    %104 = arith.subf %91, %103 : vector<2x192xf32>
    %cst_44 = arith.constant 9.99999974E-6 : f32
    %105 = vector.broadcast %cst_44 : f32 to vector<2x1xf32>
    %106 = arith.addf %102, %105 : vector<2x1xf32>
    %107 = math.rsqrt %106 : vector<2x1xf32>
    %108 = vector.broadcast %107 : vector<2x1xf32> to vector<2x192xf32>
    %109 = arith.mulf %104, %108 : vector<2x192xf32>
    %110 = vector.extract_strided_slice %0 {offsets = [9, 0], sizes = [1, 192], strides = [1, 1]} : vector<24x384xf32> to vector<1x192xf32>
    %111 = vector.broadcast %110 : vector<1x192xf32> to vector<2x192xf32>
    %112 = arith.mulf %109, %111 : vector<2x192xf32>
    %113 = vector.extract_strided_slice %0 {offsets = [10, 0], sizes = [1, 192], strides = [1, 1]} : vector<24x384xf32> to vector<1x192xf32>
    %114 = vector.broadcast %113 : vector<1x192xf32> to vector<2x192xf32>
    %115 = arith.addf %112, %114 : vector<2x192xf32>
    %cst_45 = arith.constant 0.000000e+00 : f32
    %116 = vector.broadcast %cst_45 : f32 to vector<2x192xf32>
    %117 = arith.maximumf %115, %116 : vector<2x192xf32>
    %cst_46 = arith.constant dense<0.000000e+00> : vector<2x128xf32>
    %118 = tpu.matmul %117, %86, %cst_46 {dimension_numbers = #tpu.dot_dimension_numbers<[1], [0], [0], [1], [0, 0, 1, 1], [], []>} : vector<2x192xf32>, vector<192x128xf32>, vector<2x128xf32> -> vector<2x128xf32>
    %cst_47 = arith.constant dense<0.000000e+00> : vector<2x128xf32>
    %119 = tpu.matmul %6, %87, %cst_47 {dimension_numbers = #tpu.dot_dimension_numbers<[1], [0], [0], [1], [0, 0, 1, 1], [], []>} : vector<2x192xf32>, vector<192x128xf32>, vector<2x128xf32> -> vector<2x128xf32>
    %120 = arith.addf %118, %119 : vector<2x128xf32>
    %121 = vector.extract_strided_slice %0 {offsets = [11, 0], sizes = [1, 128], strides = [1, 1]} : vector<24x384xf32> to vector<1x128xf32>
    %122 = vector.broadcast %121 : vector<1x128xf32> to vector<2x128xf32>
    %123 = arith.addf %120, %122 : vector<2x128xf32>
    %124 = tpu.concatenate %45, %84, %123 in 1 : vector<2x128xf32>, vector<2x128xf32>, vector<2x128xf32> -> vector<2x384xf32>
    %c0_48 = arith.constant 0 : index
    %c0_49 = arith.constant 0 : index
    %125 = vector.load %arg6[%c0_48, %c0_49] : memref<632x384xf32, #tpu.memory_space<vmem>>, vector<384x384xf32>
    %cst_50 = arith.constant dense<0.000000e+00> : vector<2x384xf32>
    %126 = tpu.matmul %124, %125, %cst_50 {dimension_numbers = #tpu.dot_dimension_numbers<[1], [0], [0], [1], [0, 0, 1, 1], [], []>} : vector<2x384xf32>, vector<384x384xf32>, vector<2x384xf32> -> vector<2x384xf32>
    %127 = vector.extract_strided_slice %0 {offsets = [12, 0], sizes = [1, 384], strides = [1, 1]} : vector<24x384xf32> to vector<1x384xf32>
    %128 = vector.broadcast %127 : vector<1x384xf32> to vector<2x384xf32>
    %129 = arith.addf %126, %128 : vector<2x384xf32>
    %cst_51 = arith.constant dense<0.000000e+00> : vector<2xf32>
    %130 = vector.multi_reduction <add>, %129, %cst_51 [1] : vector<2x384xf32> to vector<2xf32>
    %131 = vector.shape_cast %130 : vector<2xf32> to vector<2x1xf32>
    %cst_52 = arith.constant 3.840000e+02 : f32
    %132 = vector.broadcast %cst_52 : f32 to vector<2x1xf32>
    %133 = arith.divf %131, %132 : vector<2x1xf32>
    %134 = vector.broadcast %133 : vector<2x1xf32> to vector<2x384xf32>
    %135 = arith.subf %129, %134 : vector<2x384xf32>
    %136 = arith.mulf %135, %135 : vector<2x384xf32>
    %cst_53 = arith.constant dense<0.000000e+00> : vector<2xf32>
    %137 = vector.multi_reduction <add>, %136, %cst_53 [1] : vector<2x384xf32> to vector<2xf32>
    %138 = vector.shape_cast %137 : vector<2xf32> to vector<2x1xf32>
    %cst_54 = arith.constant 3.840000e+02 : f32
    %139 = vector.broadcast %cst_54 : f32 to vector<2x1xf32>
    %140 = arith.divf %138, %139 : vector<2x1xf32>
    %141 = vector.broadcast %133 : vector<2x1xf32> to vector<2x384xf32>
    %142 = arith.subf %129, %141 : vector<2x384xf32>
    %cst_55 = arith.constant 9.99999974E-6 : f32
    %143 = vector.broadcast %cst_55 : f32 to vector<2x1xf32>
    %144 = arith.addf %140, %143 : vector<2x1xf32>
    %145 = math.rsqrt %144 : vector<2x1xf32>
    %146 = vector.broadcast %145 : vector<2x1xf32> to vector<2x384xf32>
    %147 = arith.mulf %142, %146 : vector<2x384xf32>
    %148 = vector.extract_strided_slice %0 {offsets = [13, 0], sizes = [1, 384], strides = [1, 1]} : vector<24x384xf32> to vector<1x384xf32>
    %149 = vector.broadcast %148 : vector<1x384xf32> to vector<2x384xf32>
    %150 = arith.mulf %147, %149 : vector<2x384xf32>
    %151 = vector.extract_strided_slice %0 {offsets = [14, 0], sizes = [1, 384], strides = [1, 1]} : vector<24x384xf32> to vector<1x384xf32>
    %152 = vector.broadcast %151 : vector<1x384xf32> to vector<2x384xf32>
    %153 = arith.addf %150, %152 : vector<2x384xf32>
    %cst_56 = arith.constant 0.000000e+00 : f32
    %154 = vector.broadcast %cst_56 : f32 to vector<2x384xf32>
    %155 = arith.maximumf %153, %154 : vector<2x384xf32>
    %c192 = arith.constant 192 : index
    %c0_57 = arith.constant 0 : index
    %156 = vector.load %arg5[%c192, %c0_57] : memref<1200x192xf32, #tpu.memory_space<vmem>>, vector<384x192xf32>
    %cst_58 = arith.constant dense<0.000000e+00> : vector<2x192xf32>
    %157 = tpu.matmul %155, %156, %cst_58 {dimension_numbers = #tpu.dot_dimension_numbers<[1], [0], [0], [1], [0, 0, 1, 1], [], []>} : vector<2x384xf32>, vector<384x192xf32>, vector<2x192xf32> -> vector<2x192xf32>
    %158 = vector.extract_strided_slice %0 {offsets = [15, 0], sizes = [1, 192], strides = [1, 1]} : vector<24x384xf32> to vector<1x192xf32>
    %159 = vector.broadcast %158 : vector<1x192xf32> to vector<2x192xf32>
    %160 = arith.addf %157, %159 : vector<2x192xf32>
    %161 = arith.addf %6, %160 : vector<2x192xf32>
    %c576 = arith.constant 576 : index
    %c0_59 = arith.constant 0 : index
    %162 = vector.load %arg5[%c576, %c0_59] : memref<1200x192xf32, #tpu.memory_space<vmem>>, vector<192x192xf32>
    %cst_60 = arith.constant dense<0.000000e+00> : vector<2x192xf32>
    %163 = tpu.matmul %161, %162, %cst_60 {dimension_numbers = #tpu.dot_dimension_numbers<[1], [0], [0], [1], [0, 0, 1, 1], [], []>} : vector<2x192xf32>, vector<192x192xf32>, vector<2x192xf32> -> vector<2x192xf32>
    %164 = vector.extract_strided_slice %0 {offsets = [16, 0], sizes = [1, 192], strides = [1, 1]} : vector<24x384xf32> to vector<1x192xf32>
    %165 = vector.broadcast %164 : vector<1x192xf32> to vector<2x192xf32>
    %166 = arith.addf %163, %165 : vector<2x192xf32>
    %cst_61 = arith.constant dense<0.000000e+00> : vector<2xf32>
    %167 = vector.multi_reduction <add>, %166, %cst_61 [1] : vector<2x192xf32> to vector<2xf32>
    %168 = vector.shape_cast %167 : vector<2xf32> to vector<2x1xf32>
    %cst_62 = arith.constant 1.920000e+02 : f32
    %169 = vector.broadcast %cst_62 : f32 to vector<2x1xf32>
    %170 = arith.divf %168, %169 : vector<2x1xf32>
    %171 = vector.broadcast %170 : vector<2x1xf32> to vector<2x192xf32>
    %172 = arith.subf %166, %171 : vector<2x192xf32>
    %173 = arith.mulf %172, %172 : vector<2x192xf32>
    %cst_63 = arith.constant dense<0.000000e+00> : vector<2xf32>
    %174 = vector.multi_reduction <add>, %173, %cst_63 [1] : vector<2x192xf32> to vector<2xf32>
    %175 = vector.shape_cast %174 : vector<2xf32> to vector<2x1xf32>
    %cst_64 = arith.constant 1.920000e+02 : f32
    %176 = vector.broadcast %cst_64 : f32 to vector<2x1xf32>
    %177 = arith.divf %175, %176 : vector<2x1xf32>
    %178 = vector.broadcast %170 : vector<2x1xf32> to vector<2x192xf32>
    %179 = arith.subf %166, %178 : vector<2x192xf32>
    %cst_65 = arith.constant 9.99999974E-6 : f32
    %180 = vector.broadcast %cst_65 : f32 to vector<2x1xf32>
    %181 = arith.addf %177, %180 : vector<2x1xf32>
    %182 = math.rsqrt %181 : vector<2x1xf32>
    %183 = vector.broadcast %182 : vector<2x1xf32> to vector<2x192xf32>
    %184 = arith.mulf %179, %183 : vector<2x192xf32>
    %185 = vector.extract_strided_slice %0 {offsets = [17, 0], sizes = [1, 192], strides = [1, 1]} : vector<24x384xf32> to vector<1x192xf32>
    %186 = vector.broadcast %185 : vector<1x192xf32> to vector<2x192xf32>
    %187 = arith.mulf %184, %186 : vector<2x192xf32>
    %188 = vector.extract_strided_slice %0 {offsets = [18, 0], sizes = [1, 192], strides = [1, 1]} : vector<24x384xf32> to vector<1x192xf32>
    %189 = vector.broadcast %188 : vector<1x192xf32> to vector<2x192xf32>
    %190 = arith.addf %187, %189 : vector<2x192xf32>
    %cst_66 = arith.constant 0.000000e+00 : f32
    %191 = vector.broadcast %cst_66 : f32 to vector<2x192xf32>
    %192 = arith.maximumf %190, %191 : vector<2x192xf32>
    %c768 = arith.constant 768 : index
    %c0_67 = arith.constant 0 : index
    %193 = vector.load %arg5[%c768, %c0_67] : memref<1200x192xf32, #tpu.memory_space<vmem>>, vector<192x192xf32>
    %cst_68 = arith.constant dense<0.000000e+00> : vector<2x192xf32>
    %194 = tpu.matmul %192, %193, %cst_68 {dimension_numbers = #tpu.dot_dimension_numbers<[1], [0], [0], [1], [0, 0, 1, 1], [], []>} : vector<2x192xf32>, vector<192x192xf32>, vector<2x192xf32> -> vector<2x192xf32>
    %195 = vector.extract_strided_slice %0 {offsets = [19, 0], sizes = [1, 192], strides = [1, 1]} : vector<24x384xf32> to vector<1x192xf32>
    %196 = vector.broadcast %195 : vector<1x192xf32> to vector<2x192xf32>
    %197 = arith.addf %194, %196 : vector<2x192xf32>
    %c0_69 = arith.constant 0 : index
    %c0_70 = arith.constant 0 : index
    %198 = vector.load %arg8[%c0_69, %c0_70] : memref<2x192xf32, #tpu.memory_space<vmem>>, vector<2x192xf32>
    tpu.vector_store %arg8[%c0_69, %c0_70], %197 {strides = array<i32>} : memref<2x192xf32, #tpu.memory_space<vmem>>, vector<2x192xf32>,
    %199 = arith.subf %4, %197 : vector<2x192xf32>
    %200 = arith.mulf %199, %199 : vector<2x192xf32>
    %201 = vector.shape_cast %200 : vector<2x192xf32> to vector<1x2x192xf32>
    %cst_71 = arith.constant dense<0.000000e+00> : vector<1xf32>
    %202 = vector.multi_reduction <add>, %201, %cst_71 [1, 2] : vector<1x2x192xf32> to vector<1xf32>
    %203 = vector.shape_cast %202 : vector<1xf32> to vector<1x1x1xf32>
    %204 = vector.extract %203[0, 0, 0] : f32 from vector<1x1x1xf32>
    %cst_72 = arith.constant 0.00260416674 : f32
    %205 = arith.mulf %204, %cst_72 : f32
    %c0_73 = arith.constant 0 : index
    %c0_74 = arith.constant 0 : index
    %206 = memref.load %arg9[%c0_73, %c0_74] : memref<1x1xf32, #tpu.memory_space<smem>>
    memref.store %205, %arg9[%c0_73, %c0_74] : memref<1x1xf32, #tpu.memory_space<smem>>
    return
  }
}

</mosaic_0001>

<bundles_post_ra>
// kernel: model2_forward.1
= control target key start
LH: loop header
LB: loop body
LE: loop exit
PB: predicated region body
PF: predicated region fallthrough
CT: control target
= control target key end

     0   :  { %15 = vsyncpa [#allocation3], 0  ;;  %vm109_vm0 = vcmask 916480   ;;  %s4198_s0 = inlined_call_operand.vmem [shape: f32[2,240], index: 0, kind: input, shape index: {}]   ;;  %s4199_s1 = inlined_call_operand.vmem [shape: f32[2,240], index: 1, kind: input, shape index: {}]   ;;  %s4200_s2 = inlined_call_operand.vmem [shape: f32[2,5], index: 2, kind: input, shape index: {}]   ;;  %s4201_s3 = inlined_call_operand.vmem [shape: f32[2,192], index: 3, kind: input, shape index: {}]   ;;  %s4202_s4 = inlined_call_operand.vmem [shape: f32[880,128], index: 4, kind: input, shape index: {}]   ;;  %s4203_s5 = inlined_call_operand.vmem [shape: f32[1200,192], index: 5, kind: input, shape index: {}]   ;;  %s4204_s6 = inlined_call_operand.vmem [shape: f32[632,384], index: 6, kind: input, shape index: {}]   ;;  %s4205_s7 = inlined_call_operand.vmem [shape: f32[24,384], index: 7, kind: input, shape index: {}]   ;;  %s4206_s8 = inlined_call_operand.hbm [shape: f32[2,192], index: 8, kind: output, shape index: {0}]   ;;  %s4207_s9 = inlined_call_operand.hbm [shape: f32[1,1], index: 9, kind: output, shape index: {1}]  }
   0x1   :  { %v74_v0 = vld [vmem:[%s4203_s5 + $0x870] sm:$0xff]  ;;  %v75_v2 = vld [vmem:[%s4203_s5 + $0x878] sm:$0xff]  ;;  %v72_v4 = vld [vmem:[%s4203_s5 + $0x860] sm:$0xff] }
   0x2   :  { %v102_v1 = vld [vmem:[%s4203_s5 + $0x950] sm:$0xff]  ;;  %112 = vmatpush.msra.mxu0 %v74_v0  ;;  %v103_v3 = vld [vmem:[%s4203_s5 + $0x958] sm:$0xff]  ;;  %v100_v5 = vld [vmem:[%s4203_s5 + $0x940] sm:$0xff]  ;;  %152 = vmatpush.msra.mxu2 %v75_v2 }
   0x3   :  { %134 = vmatpush.msra.mxu1 %v102_v1  ;;  %174 = vmatpush.msra.mxu3 %v103_v3  ;;  %v73_v6 = vld [vmem:[%s4203_s5 + $0x868] sm:$0xff]  ;;  %v70_v8 = vld [vmem:[%s4203_s5 + $0x850] sm:$0xff]  ;;  %v71_v10 = vld [vmem:[%s4203_s5 + $0x858] sm:$0xff] }
   0x4   :  { %v101_v7 = vld [vmem:[%s4203_s5 + $0x948] sm:$0xff]  ;;  %113 = vmatpush.msra.mxu0 %v72_v4  ;;  %v98_v9 = vld [vmem:[%s4203_s5 + $0x930] sm:$0xff]  ;;  %v99_v11 = vld [vmem:[%s4203_s5 + $0x938] sm:$0xff]  ;;  %153 = vmatpush.msra.mxu2 %v73_v6 }
   0x5   :  { %135 = vmatpush.msra.mxu1 %v100_v5  ;;  %175 = vmatpush.msra.mxu3 %v101_v7  ;;  %v68_v12 = vld [vmem:[%s4203_s5 + $0x840] sm:$0xff]  ;;  %v69_v14 = vld [vmem:[%s4203_s5 + $0x848] sm:$0xff]  ;;  %v66_v16 = vld [vmem:[%s4203_s5 + $0x830] sm:$0xff] }
   0x6   :  { %v96_v13 = vld [vmem:[%s4203_s5 + $0x920] sm:$0xff]  ;;  %114 = vmatpush.msra.mxu0 %v70_v8  ;;  %v97_v15 = vld [vmem:[%s4203_s5 + $0x928] sm:$0xff]  ;;  %154 = vmatpush.msra.mxu2 %v71_v10  ;;  %v94_v17 = vld [vmem:[%s4203_s5 + $0x910] sm:$0xff] }
   0x7   :  { %136 = vmatpush.msra.mxu1 %v98_v9  ;;  %176 = vmatpush.msra.mxu3 %v99_v11  ;;  %v67_v18 = vld [vmem:[%s4203_s5 + $0x838] sm:$0xff]  ;;  %v64_v20 = vld [vmem:[%s4203_s5 + $0x820] sm:$0xff]  ;;  %v65_v22 = vld [vmem:[%s4203_s5 + $0x828] sm:$0xff] }
   0x8   :  { %115 = vmatpush.msra.mxu0 %v68_v12  ;;  %v95_v19 = vld [vmem:[%s4203_s5 + $0x918] sm:$0xff]  ;;  %155 = vmatpush.msra.mxu2 %v69_v14  ;;  %v92_v21 = vld [vmem:[%s4203_s5 + $0x900] sm:$0xff]  ;;  %v93_v23 = vld [vmem:[%s4203_s5 + $0x908] sm:$0xff] }
   0x9   :  { %137 = vmatpush.msra.mxu1 %v96_v13  ;;  %177 = vmatpush.msra.mxu3 %v97_v15  ;;  %v62_v24 = vld [vmem:[%s4203_s5 + $0x810] sm:$0xff]  ;;  %v63_v26 = vld [vmem:[%s4203_s5 + $0x818] sm:$0xff]  ;;  %v60_v28 = vld [vmem:[%s4203_s5 + $0x800] sm:$0xff] }
   0xa   :  { %116 = vmatpush.msra.mxu0 %v66_v16  ;;  %156 = vmatpush.msra.mxu2 %v67_v18  ;;  %v90_v25 = vld [vmem:[%s4203_s5 + $0x8f0] sm:$0xff]  ;;  %v91_v27 = vld [vmem:[%s4203_s5 + $0x8f8] sm:$0xff]  ;;  %v88_v29 = vld [vmem:[%s4203_s5 + $0x8e0] sm:$0xff] }
   0xb   :  { %138 = vmatpush.msra.mxu1 %v94_v17  ;;  %178 = vmatpush.msra.mxu3 %v95_v19  ;;  %v61_v30 = vld [vmem:[%s4203_s5 + $0x808] sm:$0xff]  ;;  %v58_v32 = vld [vmem:[%s4203_s5 + $0x7f0] sm:$0xff]  ;;  %v59_v34 = vld [vmem:[%s4203_s5 + $0x7f8] sm:$0xff] }
   0xc   :  { %117 = vmatpush.msra.mxu0 %v64_v20  ;;  %157 = vmatpush.msra.mxu2 %v65_v22  ;;  %v89_v31 = vld [vmem:[%s4203_s5 + $0x8e8] sm:$0xff]  ;;  %v86_v33 = vld [vmem:[%s4203_s5 + $0x8d0] sm:$0xff]  ;;  %v87_v35 = vld [vmem:[%s4203_s5 + $0x8d8] sm:$0xff] }
   0xd   :  { %139 = vmatpush.msra.mxu1 %v92_v21  ;;  %179 = vmatpush.msra.mxu3 %v93_v23  ;;  %v56_v36 = vld [vmem:[%s4203_s5 + $0x7e0] sm:$0xff]  ;;  %v57_v38 = vld [vmem:[%s4203_s5 + $0x7e8] sm:$0xff]  ;;  %v54_v40 = vld [vmem:[%s4203_s5 + $0x7d0] sm:$0xff] }
   0xe   :  { %118 = vmatpush.msra.mxu0 %v62_v24  ;;  %158 = vmatpush.msra.mxu2 %v63_v26  ;;  %v84_v37 = vld [vmem:[%s4203_s5 + $0x8c0] sm:$0xff]  ;;  %v85_v39 = vld [vmem:[%s4203_s5 + $0x8c8] sm:$0xff]  ;;  %v82_v41 = vld [vmem:[%s4203_s5 + $0x8b0] sm:$0xff] }
   0xf   :  { %140 = vmatpush.msra.mxu1 %v90_v25  ;;  %180 = vmatpush.msra.mxu3 %v91_v27  ;;  %v55_v42 = vld [vmem:[%s4203_s5 + $0x7d8] sm:$0xff]  ;;  %v52_v44 = vld [vmem:[%s4203_s5 + $0x7c0] sm:$0xff]  ;;  %v53_v46 = vld [vmem:[%s4203_s5 + $0x7c8] sm:$0xff] }
  0x10   :  { %119 = vmatpush.msra.mxu0 %v60_v28  ;;  %159 = vmatpush.msra.mxu2 %v61_v30  ;;  %v83_v43 = vld [vmem:[%s4203_s5 + $0x8b8] sm:$0xff]  ;;  %v80_v45 = vld [vmem:[%s4203_s5 + $0x8a0] sm:$0xff]  ;;  %v81_v47 = vld [vmem:[%s4203_s5 + $0x8a8] sm:$0xff] }
  0x11   :  { %141 = vmatpush.msra.mxu1 %v88_v29  ;;  %181 = vmatpush.msra.mxu3 %v89_v31  ;;  %v50_v48 = vld [vmem:[%s4203_s5 + $0x7b0] sm:$0xff]  ;;  %v51_v50 = vld [vmem:[%s4203_s5 + $0x7b8] sm:$0xff]  ;;  %v48_v52 = vld [vmem:[%s4203_s5 + $0x7a0] sm:$0xff] }
  0x12   :  { %120 = vmatpush.msra.mxu0 %v58_v32  ;;  %160 = vmatpush.msra.mxu2 %v59_v34  ;;  %v78_v49 = vld [vmem:[%s4203_s5 + $0x890] sm:$0xff]  ;;  %v79_v51 = vld [vmem:[%s4203_s5 + $0x898] sm:$0xff]  ;;  %v76_v53 = vld [vmem:[%s4203_s5 + $0x880] sm:$0xff] }
  0x13   :  { %142 = vmatpush.msra.mxu1 %v86_v33  ;;  %182 = vmatpush.msra.mxu3 %v87_v35  ;;  %v49_v54 = vld [vmem:[%s4203_s5 + $0x7a8] sm:$0xff]  ;;  %v250_v57 = vld [vmem:[%s4204_s6 + $0x738] sm:$0xff]  ;;  %v46_v58 = vld [vmem:[%s4203_s5 + $0x790] sm:$0xff] }
  0x14   :  { %121 = vmatpush.msra.mxu0 %v56_v36  ;;  %161 = vmatpush.msra.mxu2 %v57_v38  ;;  %v77_v55 = vld [vmem:[%s4203_s5 + $0x888] sm:$0xff]  ;;  %v47_v59 = vld [vmem:[%s4203_s5 + $0x798] sm:$0xff]  ;;  %v220_v60 = vld [vmem:[%s4204_s6 + $0x5d0] sm:$0xff] }
  0x15   :  { %143 = vmatpush.msra.mxu1 %v84_v37  ;;  %183 = vmatpush.msra.mxu3 %v85_v39  ;;  %v222_v56 = vld [vmem:[%s4204_s6 + $0x5e8] sm:$0xff]  ;;  %v248_v61 = vld [vmem:[%s4204_s6 + $0x720] sm:$0xff]  ;;  %v218_v0 = vld [vmem:[%s4204_s6 + $0x5b8] sm:$0xff] }
  0x16   :  { %122 = vmatpush.msra.mxu0 %v54_v40  ;;  %162 = vmatpush.msra.mxu2 %v55_v42  ;;  %v44_v62 = vld [vmem:[%s4203_s5 + $0x780] sm:$0xff]  ;;  %v45_v63 = vld [vmem:[%s4203_s5 + $0x788] sm:$0xff]  ;;  %v223_v3 = vld [vmem:[%s4204_s6 + $0x5f0] sm:$0xff] }
  0x17   :  { %144 = vmatpush.msra.mxu1 %v82_v41  ;;  %184 = vmatpush.msra.mxu3 %v83_v43  ;;  %v246_v1 = vld [vmem:[%s4204_s6 + $0x708] sm:$0xff]  ;;  %v40_v2 = vld [vmem:[%s4198_s0] sm:$0xf]  ;;  %v244_v6 = vld [vmem:[%s4204_s6 + $0x6f0] sm:$0xff] }
  0x18   :  { %123 = vmatpush.msra.mxu0 %v52_v44  ;;  %163 = vmatpush.msra.mxu2 %v53_v46  ;;  %v251_v4 = vld [vmem:[%s4204_s6 + $0x740] sm:$0xff]  ;;  %105 = vst [vmem:[#allocation1] ss:$4 sm:$0xff] %v40_v2  ;;  %v221_v7 = vld [vmem:[%s4204_s6 + $0x5d8] sm:$0xff]  ;;  %v249_v8 = vld [vmem:[%s4204_s6 + $0x728] sm:$0xff] }
  0x19   :  { %145 = vmatpush.msra.mxu1 %v80_v45  ;;  %185 = vmatpush.msra.mxu3 %v81_v47  ;;  %v216_v5 = vld [vmem:[%s4204_s6 + $0x5a0] sm:$0xff]  ;;  %v214_v9 = vld [vmem:[%s4204_s6 + $0x588] sm:$0xff]  ;;  %v242_v10 = vld [vmem:[%s4204_s6 + $0x6d8] sm:$0xff] }
  0x1a   :  { %124 = vmatpush.msra.mxu0 %v50_v48  ;;  %164 = vmatpush.msra.mxu2 %v51_v50  ;;  %v219_v11 = vld [vmem:[%s4204_s6 + $0x5c0] sm:$0xff]  ;;  %v247_v12 = vld [vmem:[%s4204_s6 + $0x710] sm:$0xff]  ;;  %v217_v15 = vld [vmem:[%s4204_s6 + $0x5a8] sm:$0xff] }
  0x1b   :  { %146 = vmatpush.msra.mxu1 %v78_v49  ;;  %186 = vmatpush.msra.mxu3 %v79_v51  ;;  %v212_v13 = vld [vmem:[%s4204_s6 + $0x570] sm:$0xff]  ;;  %v240_v14 = vld [vmem:[%s4204_s6 + $0x6c0] sm:$0xff]  ;;  %v245_v17 = vld [vmem:[%s4204_s6 + $0x6f8] sm:$0xff] }
  0x1c   :  { %125 = vmatpush.msra.mxu0 %v48_v52  ;;  %165 = vmatpush.msra.mxu2 %v49_v54  ;;  %v41_v16 = vld [vmem:[%s4199_s1] sm:$0xf]  ;;  %v210_v18 = vld [vmem:[%s4204_s6 + $0x558] sm:$0xff]  ;;  %v238_v19 = vld [vmem:[%s4204_s6 + $0x6a8] sm:$0xff] }
  0x1d   :  { %147 = vmatpush.msra.mxu1 %v76_v53  ;;  %187 = vmatpush.msra.mxu3 %v77_v55  ;;  %v215_v22 = vld [vmem:[%s4204_s6 + $0x590] sm:$0xff]  ;;  %v243_v23 = vld [vmem:[%s4204_s6 + $0x6e0] sm:$0xff]  ;;  %v213_v26 = vld [vmem:[%s4204_s6 + $0x578] sm:$0xff] }
  0x1e   :  { %126 = vmatpush.msra.mxu0 %v46_v58  ;;  %166 = vmatpush.msra.mxu2 %v47_v59  ;;  %v208_v24 = vld [vmem:[%s4204_s6 + $0x540] sm:$0xff]  ;;  %v236_v25 = vld [vmem:[%s4204_s6 + $0x690] sm:$0xff]  ;;  %v241_v27 = vld [vmem:[%s4204_s6 + $0x6c8] sm:$0xff] }
  0x1f   :  { %321 = vmatpush.msrb.mxu1 %v222_v56  ;;  %343 = vmatpush.msrb.mxu3 %v250_v57  ;;  %v2340_v20 = vld.sshfl [vmem:[#allocation1] sm:$0xff pattern:$0x73625140]  ;;  %v2342_v21 = vld.sshfl [vmem:[#allocation1 + $0x8] sm:$0xff pattern:$0x73625140] }
  0x20   :  { %127 = vmatpush.msra.mxu0 %v44_v62  ;;  %167 = vmatpush.msra.mxu2 %v45_v63  ;;  %315 = vst [vmem:[#allocation1] ss:$4 sm:$0xff] %v41_v16  ;;  %v206_v28 = vld [vmem:[%s4204_s6 + $0x528] sm:$0xff]  ;;  %v234_v29 = vld [vmem:[%s4204_s6 + $0x678] sm:$0xff]  ;;  %v211_v30 = vld [vmem:[%s4204_s6 + $0x560] sm:$0xff] }
  0x21   :  { %322 = vmatpush.msrb.mxu1 %v220_v60  ;;  %344 = vmatpush.msrb.mxu3 %v248_v61  ;;  %v239_v31 = vld [vmem:[%s4204_s6 + $0x6b0] sm:$0xff]  ;;  %v232_v33 = vld [vmem:[%s4204_s6 + $0x660] sm:$0xff]  ;;  %v209_v34 = vld [vmem:[%s4204_s6 + $0x548] sm:$0xff] }
  0x22   :  { %361 = vmatpush.msrb.mxu0 %v223_v3  ;;  %383 = vmatpush.msrb.mxu2 %v251_v4  ;;  %v204_v32 = vld [vmem:[%s4204_s6 + $0x510] sm:$0xff]  ;;  %v237_v35 = vld [vmem:[%s4204_s6 + $0x698] sm:$0xff]  ;;  %v230_v39 = vld [vmem:[%s4204_s6 + $0x648] sm:$0xff] }
  0x23   :  { %323 = vmatpush.msrb.mxu1 %v218_v0  ;;  %345 = vmatpush.msrb.mxu3 %v246_v1  ;;  %v202_v38 = vld [vmem:[%s4204_s6 + $0x4f8] sm:$0xff]  ;;  %v207_v40 = vld [vmem:[%s4204_s6 + $0x530] sm:$0xff]  ;;  %v235_v41 = vld [vmem:[%s4204_s6 + $0x680] sm:$0xff] }
  0x24   :  { %362 = vmatpush.msrb.mxu0 %v221_v7  ;;  %384 = vmatpush.msrb.mxu2 %v249_v8  ;;  %v200_v42 = vld [vmem:[%s4204_s6 + $0x4e0] sm:$0xff]  ;;  %v228_v43 = vld [vmem:[%s4204_s6 + $0x630] sm:$0xff] }
  0x25   :  { %324 = vmatpush.msrb.mxu1 %v216_v5  ;;  %346 = vmatpush.msrb.mxu3 %v244_v6 }
  0x26   :  { %363 = vmatpush.msrb.mxu0 %v219_v11  ;;  %385 = vmatpush.msrb.mxu2 %v247_v12 }
  0x27   :  { %325 = vmatpush.msrb.mxu1 %v214_v9  ;;  %347 = vmatpush.msrb.mxu3 %v242_v10  ;;  %v2386_v36 = vld.sshfl [vmem:[#allocation1 + $0x8] sm:$0xff pattern:$0x73625140]  ;;  %v2388_v37 = vld.sshfl [vmem:[#allocation1] sm:$0xff pattern:$0x73625140] }
  0x28   :  { %364 = vmatpush.msrb.mxu0 %v217_v15  ;;  %386 = vmatpush.msrb.mxu2 %v245_v17  ;;  %449 = vst [vmem:[#allocation1] ss:$4 sm:$0xff] %v41_v16 }
  0x29   :  { %326 = vmatpush.msrb.mxu1 %v212_v13  ;;  %348 = vmatpush.msrb.mxu3 %v240_v14 }
  0x2a   :  { %365 = vmatpush.msrb.mxu0 %v215_v22  ;;  %387 = vmatpush.msrb.mxu2 %v243_v23 }
  0x2b   :  { %327 = vmatpush.msrb.mxu1 %v210_v18  ;;  %349 = vmatpush.msrb.mxu3 %v238_v19 }
  0x2c   :  { %366 = vmatpush.msrb.mxu0 %v213_v26  ;;  %388 = vmatpush.msrb.mxu2 %v241_v27 }
  0x2d   :  { %328 = vmatpush.msrb.mxu1 %v208_v24  ;;  %350 = vmatpush.msrb.mxu3 %v236_v25 }
  0x2e   :  { %367 = vmatpush.msrb.mxu0 %v211_v30  ;;  %389 = vmatpush.msrb.mxu2 %v239_v31 }
  0x2f   :  { %329 = vmatpush.msrb.mxu1 %v206_v28  ;;  %351 = vmatpush.msrb.mxu3 %v234_v29 }
  0x30   :  { %168 = vmatmul.f32.vlgmr.msra.gmra.mxu2 %v2340_v20  ;;  %1945 = vmatmul.msk.f32.vlgmr.msra.gmra.mxu3 %vm109_vm0, %v2342_v21 }
  0x31   :  { %330 = vmatpush.msrb.mxu1 %v204_v32  ;;  %352 = vmatpush.msrb.mxu3 %v232_v33 }
  0x32   :  { %368 = vmatpush.msrb.mxu0 %v209_v34  ;;  %390 = vmatpush.msrb.mxu2 %v237_v35 }
  0x33   :  { %16 = vsyncpa [#allocation4], 0  ;;  %331 = vmatpush.msrb.mxu1 %v202_v38  ;;  %353 = vmatpush.msrb.mxu3 %v230_v39  ;;  %v205_v44 = vld [vmem:[%s4204_s6 + $0x518] sm:$0xff]  ;;  %v233_v45 = vld [vmem:[%s4204_s6 + $0x668] sm:$0xff]  ;;  %vm548_vm1 = vcmask 1044480   ;;  %vm544_vm2 = vcmask 39936  }
  0x34   :  { %369 = vmatpush.msrb.mxu0 %v207_v40  ;;  %391 = vmatpush.msrb.mxu2 %v235_v41  ;;  %v198_v46 = vld [vmem:[%s4204_s6 + $0x4c8] sm:$0xff]  ;;  %v226_v47 = vld [vmem:[%s4204_s6 + $0x618] sm:$0xff]  ;;  %v203_v48 = vld [vmem:[%s4204_s6 + $0x500] sm:$0xff]  ;;  %vm756_vm3 = vcmask 523264   ;;  %vm401_vm4 = vcmask 1041408   ;;  %vm403_vm5 = vcmask 910336  }
  0x35   :  { %332 = vmatpush.msrb.mxu1 %v200_v42  ;;  %354 = vmatpush.msrb.mxu3 %v228_v43  ;;  %v231_v49 = vld [vmem:[%s4204_s6 + $0x650] sm:$0xff]  ;;  %v224_v51 = vld [vmem:[%s4204_s6 + $0x600] sm:$0xff]  ;;  %v201_v52 = vld [vmem:[%s4204_s6 + $0x4e8] sm:$0xff]  ;;  %vm572_vm6 = vcmask 33792   ;;  %vm841_vm15 = vcmask 517120   ;;  %s2036_s0 = smov [#allocation2]  }
  0x36   :  { %370 = vmatpush.msrb.mxu0 %v205_v44  ;;  %392 = vmatpush.msrb.mxu2 %v233_v45  ;;  %v196_v50 = vld [vmem:[%s4204_s6 + $0x4b0] sm:$0xff]  ;;  %v229_v53 = vld [vmem:[%s4204_s6 + $0x638] sm:$0xff]  ;;  %v297_v54 = vld [vmem:[%s4202_s4 + $0x168] sm:$0xff]  ;;  %s1920_s26 = sshll.u32 %s4206_s8, 4  ;;  %s1929_s28 = sshll.u32 %s4207_s9, 4  ;;  %s1921_s26 = int_to_ptr.hbm [resolvable:$true] %s1920_s26  ;;  %s1930_s28 = int_to_ptr.hbm [resolvable:$true] %s1929_s28 }
  0x37   :  { %333 = vmatpush.msrb.mxu1 %v198_v46  ;;  %355 = vmatpush.msrb.mxu3 %v226_v47  ;;  %v194_v55 = vld [vmem:[%s4204_s6 + $0x498] sm:$0xff]  ;;  %v199_v56 = vld [vmem:[%s4204_s6 + $0x4d0] sm:$0xff]  ;;  %v227_v57 = vld [vmem:[%s4204_s6 + $0x620] sm:$0xff]  ;;  %s2037_s8 = smov [#allocation5]  }
  0x38   :  { %371 = vmatpush.msrb.mxu0 %v203_v48  ;;  %393 = vmatpush.msrb.mxu2 %v231_v49  ;;  %v296_v58 = vld [vmem:[%s4202_s4 + $0x160] sm:$0xff]  ;;  %v197_v60 = vld [vmem:[%s4204_s6 + $0x4b8] sm:$0xff]  ;;  %v225_v61 = vld [vmem:[%s4204_s6 + $0x608] sm:$0xff] }
  0x39   :  { %334 = vmatpush.msrb.mxu1 %v196_v50  ;;  %356 = vmatpush.msrb.mxu3 %v224_v51  ;;  %v192_v59 = vld [vmem:[%s4204_s6 + $0x480] sm:$0xff]  ;;  %v295_v62 = vld [vmem:[%s4202_s4 + $0x158] sm:$0xff]  ;;  %v294_v1 = vld [vmem:[%s4202_s4 + $0x150] sm:$0xff] }
  0x3a   :  { %372 = vmatpush.msrb.mxu0 %v201_v52  ;;  %394 = vmatpush.msrb.mxu2 %v229_v53  ;;  %v311_v63 = vld [vmem:[%s4202_s4 + $0x1d8] sm:$0xff]  ;;  %v195_v0 = vld [vmem:[%s4204_s6 + $0x4a0] sm:$0xff]  ;;  %v310_v2 = vld [vmem:[%s4202_s4 + $0x1d0] sm:$0xff] }
  0x3b   :  { %128 = vmatmul.f32.vlgmr.msra.gmra.mxu0 %v2340_v20  ;;  %1944 = vmatmul.msk.f32.vlgmr.msra.gmra.mxu1 %vm109_vm0, %v2342_v21  ;;  %v193_v3 = vld [vmem:[%s4204_s6 + $0x488] sm:$0xff]  ;;  %v292_v6 = vld [vmem:[%s4202_s4 + $0x140] sm:$0xff]  ;;  %v291_v8 = vld [vmem:[%s4202_s4 + $0x138] sm:$0xff] }
  0x3c   :  { %455 = vmatpush.msra.mxu3 %v297_v54  ;;  %335 = vmatpush.msrb.mxu1 %v194_v55  ;;  %v293_v4 = vld [vmem:[%s4202_s4 + $0x148] sm:$0xff]  ;;  %v308_v7 = vld [vmem:[%s4202_s4 + $0x1c0] sm:$0xff]  ;;  %v307_v9 = vld [vmem:[%s4202_s4 + $0x1b8] sm:$0xff] }
  0x3d   :  { %373 = vmatpush.msrb.mxu0 %v199_v56  ;;  %395 = vmatpush.msrb.mxu2 %v227_v57  ;;  %v309_v5 = vld [vmem:[%s4202_s4 + $0x1c8] sm:$0xff]  ;;  %v290_v10 = vld [vmem:[%s4202_s4 + $0x130] sm:$0xff]  ;;  %v288_v14 = vld [vmem:[%s4202_s4 + $0x120] sm:$0xff] }
  0x3e   :  { %456 = vmatpush.msra.mxu3 %v296_v58  ;;  %336 = vmatpush.msrb.mxu1 %v192_v59  ;;  %v306_v11 = vld [vmem:[%s4202_s4 + $0x1b0] sm:$0xff]  ;;  %v289_v12 = vld [vmem:[%s4202_s4 + $0x128] sm:$0xff]  ;;  %v304_v15 = vld [vmem:[%s4202_s4 + $0x1a0] sm:$0xff] }
  0x3f   :  { %374 = vmatpush.msrb.mxu0 %v197_v60  ;;  %396 = vmatpush.msrb.mxu2 %v225_v61  ;;  %v305_v13 = vld [vmem:[%s4202_s4 + $0x1a8] sm:$0xff]  ;;  %v287_v16 = vld [vmem:[%s4202_s4 + $0x118] sm:$0xff]  ;;  %v286_v18 = vld [vmem:[%s4202_s4 + $0x110] sm:$0xff] }
  0x40   :  { %1946 = vmatmul.msk.f32.vlgmr.msrb.gmra.mxu3 %vm109_vm0, %v2386_v36  ;;  %1947 = vmatmul.msk.f32.vlgmr.msrb.gmra.mxu2 %vm109_vm0, %v2386_v36  ;;  %v303_v17 = vld [vmem:[%s4202_s4 + $0x198] sm:$0xff]  ;;  %v302_v19 = vld [vmem:[%s4202_s4 + $0x190] sm:$0xff]  ;;  %v285_v20 = vld [vmem:[%s4202_s4 + $0x108] sm:$0xff] }
  0x41   :  { %457 = vmatpush.msra.mxu3 %v295_v62  ;;  %477 = vmatpush.msra.mxu1 %v311_v63  ;;  %v301_v21 = vld [vmem:[%s4202_s4 + $0x188] sm:$0xff]  ;;  %v284_v22 = vld [vmem:[%s4202_s4 + $0x100] sm:$0xff]  ;;  %v283_v24 = vld [vmem:[%s4202_s4 + $0xf8] sm:$0xff] }
  0x42   :  { %375 = vmatpush.msrb.mxu0 %v195_v0  ;;  %v300_v23 = vld [vmem:[%s4202_s4 + $0x180] sm:$0xff]  ;;  %v299_v25 = vld [vmem:[%s4202_s4 + $0x178] sm:$0xff]  ;;  %v282_v26 = vld [vmem:[%s4202_s4 + $0xf0] sm:$0xff] }
  0x43   :  { %458 = vmatpush.msra.mxu3 %v294_v1  ;;  %478 = vmatpush.msra.mxu1 %v310_v2  ;;  %v298_v27 = vld [vmem:[%s4202_s4 + $0x170] sm:$0xff]  ;;  %v450_v28 = vld.sshfl [vmem:[#allocation1] sm:$0xff pattern:$0x73625140]  ;;  %v689_v30 = vld [vmem:[%s4203_s5 + $0xf8] sm:$0xff] }
  0x44   :  { %376 = vmatpush.msrb.mxu0 %v193_v3  ;;  %337 = vmatmul.f32.vlgmr.msrb.gmra.mxu1 %v2388_v37  ;;  %v451_v29 = vld.sshfl [vmem:[#allocation1 + $0x8] sm:$0xff pattern:$0x73625140]  ;;  %v540_v31 = vld [vmem:[%s4204_s6 + $0x750] sm:$0x1f]  ;;  %v685_v34 = vld [vmem:[%s4203_s5 + $0xd8] sm:$0xff] }
  0x45   :  { %377 = vmatmul.f32.vlgmr.msrb.gmra.mxu0 %v2388_v37  ;;  %459 = vmatpush.msra.mxu3 %v293_v4  ;;  %v542_v32 = vld [vmem:[%s4202_s4 + $0x1e8] sm:$0x1f]  ;;  %v42_v36 = vld [vmem:[%s4200_s2] sm:$0x3]  ;;  %v681_v37 = vld [vmem:[%s4203_s5 + $0xb8] sm:$0xff]  ;;  %s1918_s2 = sshll.u32 %s2036_s0, 4  ;;  %s1919_s2 = int_to_ptr.vmem [resolvable:$true] %s1918_s2 }
  0x46   :  { %479 = vmatpush.msra.mxu1 %v309_v5  ;;  %v687_v33 = vld [vmem:[%s4203_s5 + $0xe8] sm:$0xff]  ;;  %v704_v38 = vld [vmem:[%s4203_s5 + $0x170] sm:$0xff]  ;;  %v702_v40 = vld [vmem:[%s4203_s5 + $0x160] sm:$0xff] }
  0x47   :  { %460 = vmatpush.msra.mxu3 %v292_v6  ;;  %v683_v35 = vld [vmem:[%s4203_s5 + $0xc8] sm:$0xff]  ;;  %v677_v41 = vld [vmem:[%s4203_s5 + $0x98] sm:$0xff]  ;;  %v700_v42 = vld [vmem:[%s4203_s5 + $0x150] sm:$0xff] }
  0x48   :  { %480 = vmatpush.msra.mxu1 %v308_v7  ;;  %v679_v39 = vld [vmem:[%s4203_s5 + $0xa8] sm:$0xff]  ;;  %v698_v44 = vld [vmem:[%s4203_s5 + $0x140] sm:$0xff]  ;;  %v673_v45 = vld [vmem:[%s4203_s5 + $0x78] sm:$0xff] }
  0x49   :  { %461 = vmatpush.msra.mxu3 %v291_v8  ;;  %v675_v43 = vld [vmem:[%s4203_s5 + $0x88] sm:$0xff]  ;;  %v696_v46 = vld [vmem:[%s4203_s5 + $0x130] sm:$0xff]  ;;  %v694_v48 = vld [vmem:[%s4203_s5 + $0x120] sm:$0xff] }
  0x4a   :  { %481 = vmatpush.msra.mxu1 %v307_v9  ;;  %v671_v47 = vld [vmem:[%s4203_s5 + $0x68] sm:$0xff]  ;;  %v692_v49 = vld [vmem:[%s4203_s5 + $0x110] sm:$0xff]  ;;  %v690_v50 = vld [vmem:[%s4203_s5 + $0x100] sm:$0xff] }
  0x4b   :  { %462 = vmatpush.msra.mxu3 %v290_v10  ;;  %v745_v51 = vld [vmem:[%s4202_s4 + $0x328] sm:$0xff]  ;;  %v744_v52 = vld [vmem:[%s4202_s4 + $0x320] sm:$0xff]  ;;  %v743_v53 = vld [vmem:[%s4202_s4 + $0x318] sm:$0xff] }
  0x4c   :  { %482 = vmatpush.msra.mxu1 %v306_v11  ;;  %v742_v54 = vld [vmem:[%s4202_s4 + $0x310] sm:$0xff]  ;;  %v741_v55 = vld [vmem:[%s4202_s4 + $0x308] sm:$0xff]  ;;  %v740_v56 = vld [vmem:[%s4202_s4 + $0x300] sm:$0xff] }
  0x4d   :  { %463 = vmatpush.msra.mxu3 %v289_v12  ;;  %v739_v57 = vld [vmem:[%s4202_s4 + $0x2f8] sm:$0xff]  ;;  %v738_v58 = vld [vmem:[%s4202_s4 + $0x2f0] sm:$0xff]  ;;  %v737_v59 = vld [vmem:[%s4202_s4 + $0x2e8] sm:$0xff] }
  0x4e   :  { %483 = vmatpush.msra.mxu1 %v305_v13  ;;  %v736_v60 = vld [vmem:[%s4202_s4 + $0x2e0] sm:$0xff]  ;;  %v669_v61 = vld [vmem:[%s4203_s5 + $0x58] sm:$0xff]  ;;  %v667_v63 = vld [vmem:[%s4203_s5 + $0x48] sm:$0xff] }
  0x4f   :  { %464 = vmatpush.msra.mxu3 %v288_v14  ;;  %v735_v62 = vld [vmem:[%s4202_s4 + $0x2d8] sm:$0xff]  ;;  %v734_v0 = vld [vmem:[%s4202_s4 + $0x2d0] sm:$0xff]  ;;  %v733_v2 = vld [vmem:[%s4202_s4 + $0x2c8] sm:$0xff] }
  0x50   :  { %484 = vmatpush.msra.mxu1 %v304_v15  ;;  %v665_v1 = vld [vmem:[%s4203_s5 + $0x38] sm:$0xff]  ;;  %v663_v3 = vld [vmem:[%s4203_s5 + $0x28] sm:$0xff]  ;;  %v732_v4 = vld [vmem:[%s4202_s4 + $0x2c0] sm:$0xff] }
  0x51   :  { %465 = vmatpush.msra.mxu3 %v287_v16  ;;  %v661_v5 = vld [vmem:[%s4203_s5 + $0x18] sm:$0xff]  ;;  %v659_v7 = vld [vmem:[%s4203_s5 + $0x8] sm:$0xff]  ;;  %v730_v8 = vld [vmem:[%s4202_s4 + $0x2b0] sm:$0xff] }
  0x52   :  { %485 = vmatpush.msra.mxu1 %v303_v17  ;;  %v731_v6 = vld [vmem:[%s4202_s4 + $0x2b8] sm:$0xff]  ;;  %v2708_v15 = vld [vmem:[%s4205_s7] sm:$0xff]  ;;  %v2713_v16 = vld [vmem:[%s4205_s7 + $0x8] sm:$0xff] }
  0x53   :  { %466 = vmatpush.msra.mxu3 %v286_v18  ;;  %v312_v17 = vperm.slane %v2708_v15, 0  ;;  %v313_v18 = vperm.slane %v2713_v16, 0 }
  0x54   :  { %486 = vmatpush.msra.mxu1 %v302_v19 }
  0x55   :  { %467 = vmatpush.msra.mxu3 %v285_v20 }
  0x56   :  { %487 = vmatpush.msra.mxu1 %v301_v21 }
  0x57   :  { %468 = vmatpush.msra.mxu3 %v284_v22 }
  0x58   :  { %488 = vmatpush.msra.mxu1 %v300_v23 }
  0x59   :  { %469 = vmatpush.msra.mxu3 %v283_v24 }
  0x5a   :  { %489 = vmatpush.msra.mxu1 %v299_v25 }
  0x5b   :  { %470 = vmatpush.msra.mxu3 %v282_v26 }
  0x5c   :  { %490 = vmatpush.msra.mxu1 %v298_v27  ;;  %471 = vmatmul.f32.vlgmr.msra.gmra.mxu3 %v450_v28 }
  0x5d   :  { %1948 = vmatmul.msk.f32.vlgmr.msra.gmra.mxu1 %vm109_vm0, %v451_v29  ;;  %800 = vmatpush.msrb.mxu3 %v689_v30 }
  0x5e   :  { %1950 = vmatpush.msk.msrb.mxu1 %vm548_vm1, %v540_v31  ;;  %v543_v31 = vperm.slane %v2708_v15, 4 }
  0x5f   :  { %801 = vmatpush.msrb.mxu3 %v687_v33 }
  0x60   :  { %1952 = vmatpush.msk.msra.mxu1 %vm548_vm1, %v542_v32 }
  0x61   :  { %802 = vmatpush.msrb.mxu3 %v685_v34 }
  0x63   :  { %803 = vmatpush.msrb.mxu3 %v683_v35  ;;  %v2032_v35 = vmov 240.0  }
  0x64   :  { %1972 = vrcp.f32 %v2032_v35  ;;  %v676_v35 = vld [vmem:[%s4203_s5 + $0x90] sm:$0xff] }
  0x65   :  { %1951 = vmatmul.msk.f32.vlgmr.msrb.gmra.mxu1 %vm544_vm2, %v42_v36  ;;  %804 = vmatpush.msrb.mxu3 %v681_v37 }
  0x66   :  { %788 = vmatpush.msrb.mxu1 %v704_v38 }
  0x67   :  { %805 = vmatpush.msrb.mxu3 %v679_v39 }
  0x68   :  { %789 = vmatpush.msrb.mxu1 %v702_v40 }
  0x69   :  { %806 = vmatpush.msrb.mxu3 %v677_v41 }
  0x6a   :  { %790 = vmatpush.msrb.mxu1 %v700_v42 }
  0x6b   :  { %807 = vmatpush.msrb.mxu3 %v675_v43 }
  0x6c   :  { %791 = vmatpush.msrb.mxu1 %v698_v44  ;;  %v2033_v44 = vmov 5.0  }
  0x6d   :  { %1953 = vmatmul.msk.f32.vlgmr.msra.gmra.mxu1 %vm544_vm2, %v42_v36  ;;  %808 = vmatpush.msrb.mxu3 %v673_v45  ;;  %v1973_v36 = vpop.eup %1972  ;;  %1974 = vrcp.f32 %v2033_v44  ;;  %v668_v44 = vld [vmem:[%s4203_s5 + $0x50] sm:$0xff] }
  0x6e   :  { %792 = vmatpush.msrb.mxu1 %v696_v46  ;;  %v409_v37 = vmul.f32 240.0, %v1973_v36  ;;  %vm413_vm7 = vweird.f32 %v1973_v36 }
  0x6f   :  { %809 = vmatpush.msrb.mxu3 %v671_v47  ;;  %v267_v47 = vld [vmem:[%s4202_s4 + $0x78] sm:$0xff] }
  0x70   :  { %793 = vmatpush.msrb.mxu1 %v694_v48  ;;  %v410_v38 = vsub.f32 1.0, %v409_v37  ;;  %v266_v48 = vld [vmem:[%s4202_s4 + $0x70] sm:$0xff]  ;;  %498 = vmatpush.msra.mxu2 %v267_v47  ;;  %v674_v37 = vld [vmem:[%s4203_s5 + $0x80] sm:$0xff] }
  0x71   :  { %810 = vmatpush.msrb.mxu3 %v669_v61  ;;  %v261_v61 = vld [vmem:[%s4202_s4 + $0x48] sm:$0xff]  ;;  %v268_v47 = vld [vmem:[%s4202_s4 + $0x80] sm:$0xff] }
  0x72   :  { %794 = vmatpush.msrb.mxu1 %v692_v49  ;;  %v411_v39 = vmul.f32 %v1973_v36, %v410_v38  ;;  %499 = vmatpush.msra.mxu2 %v266_v48  ;;  %v271_v38 = vld [vmem:[%s4202_s4 + $0x98] sm:$0xff]  ;;  %v666_v48 = vld [vmem:[%s4203_s5 + $0x40] sm:$0xff] }
  0x73   :  { %811 = vmatpush.msrb.mxu3 %v667_v63 }
  0x74   :  { %795 = vmatpush.msrb.mxu1 %v690_v50  ;;  %v412_v40 = vadd.f32 %v1973_v36, %v411_v39  ;;  %v672_v39 = vld [vmem:[%s4203_s5 + $0x70] sm:$0xff] }
  0x75   :  { %812 = vmatpush.msrb.mxu3 %v665_v1  ;;  %v258_v1 = vld [vmem:[%s4202_s4 + $0x30] sm:$0xff] }
  0x76   :  { %887 = vmatpush.msra.mxu1 %v745_v51  ;;  %v2724_v41 = vsel %vm413_vm7, %v1973_v36, %v412_v40  ;;  %v265_v51 = vld [vmem:[%s4202_s4 + $0x68] sm:$0xff]  ;;  %v272_v36 = vld [vmem:[%s4202_s4 + $0xa0] sm:$0xff]  ;;  %v270_v40 = vld [vmem:[%s4202_s4 + $0x90] sm:$0xff] }
  0x77   :  { %813 = vmatpush.msrb.mxu3 %v663_v3  ;;  %500 = vmatpush.msra.mxu2 %v265_v51  ;;  %v257_v3 = vld [vmem:[%s4202_s4 + $0x28] sm:$0xff] }
  0x78   :  { %888 = vmatpush.msra.mxu1 %v744_v52  ;;  %v1975_v52 = vpop.eup %1974 }
  0x79   :  { %814 = vmatpush.msrb.mxu3 %v661_v5  ;;  %vm581_vm8 = vweird.f32 %v1975_v52 }
  0x7a   :  { %889 = vmatpush.msra.mxu1 %v743_v53 }
  0x7b   :  { %815 = vmatpush.msrb.mxu3 %v659_v7 }
  0x7c   :  { %890 = vmatpush.msra.mxu1 %v742_v54 }
  0x7e   :  { %891 = vmatpush.msra.mxu1 %v741_v55 }
  0x80   :  { %892 = vmatpush.msra.mxu1 %v740_v56  ;;  %v264_v56 = vld [vmem:[%s4202_s4 + $0x60] sm:$0xff] }
  0x81   :  { %501 = vmatpush.msra.mxu2 %v264_v56 }
  0x82   :  { %893 = vmatpush.msra.mxu1 %v739_v57  ;;  %v577_v57 = vmul.f32 5.0, %v1975_v52 }
  0x84   :  { %894 = vmatpush.msra.mxu1 %v738_v58  ;;  %v263_v58 = vld [vmem:[%s4202_s4 + $0x58] sm:$0xff] }
  0x85   :  { %502 = vmatpush.msra.mxu2 %v263_v58 }
  0x86   :  { %895 = vmatpush.msra.mxu1 %v737_v59  ;;  %v262_v59 = vld [vmem:[%s4202_s4 + $0x50] sm:$0xff] }
  0x87   :  { %503 = vmatpush.msra.mxu2 %v262_v59 }
  0x88   :  { %896 = vmatpush.msra.mxu1 %v736_v60  ;;  %v578_v60 = vsub.f32 1.0, %v577_v57 }
  0x89   :  { %504 = vmatpush.msra.mxu2 %v261_v61 }
  0x8a   :  { %897 = vmatpush.msra.mxu1 %v735_v62  ;;  %v260_v62 = vld [vmem:[%s4202_s4 + $0x40] sm:$0xff]  ;;  %v579_v63 = vmul.f32 %v1975_v52, %v578_v60 }
  0x8b   :  { %505 = vmatpush.msra.mxu2 %v260_v62  ;;  %v440_v62 = vperm.slane %v2713_v16, 1 }
  0x8c   :  { %898 = vmatpush.msra.mxu1 %v734_v0  ;;  %v259_v0 = vld [vmem:[%s4202_s4 + $0x38] sm:$0xff] }
  0x8d   :  { %506 = vmatpush.msra.mxu2 %v259_v0 }
  0x8e   :  { %899 = vmatpush.msra.mxu1 %v733_v2  ;;  %v580_v2 = vadd.f32 %v1975_v52, %v579_v63  ;;  %v439_v63 = vperm.slane %v2708_v15, 1 }
  0x8f   :  { %507 = vmatpush.msra.mxu2 %v258_v1  ;;  %v444_v1 = vperm.slane %v2713_v16, 2  ;;  %v705_v16 = vld [vmem:[%s4203_s5 + $0x178] sm:$0xff] }
  0x90   :  { %900 = vmatpush.msra.mxu1 %v732_v4  ;;  %v256_v4 = vld [vmem:[%s4202_s4 + $0x20] sm:$0xff]  ;;  %v2773_v5 = vsel %vm581_vm8, %v1975_v52, %v580_v2 }
  0x91   :  { %508 = vmatpush.msra.mxu2 %v257_v3  ;;  %v662_v52 = vld [vmem:[%s4203_s5 + $0x20] sm:$0xff] }
  0x92   :  { %901 = vmatpush.msra.mxu1 %v731_v6 }
  0x93   :  { %509 = vmatpush.msra.mxu2 %v256_v4  ;;  %v443_v4 = vperm.slane %v2708_v15, 2 }
  0x94   :  { %902 = vmatpush.msra.mxu1 %v730_v8 }
  0xb3   :  { %v169_v9 = vpop.f32.mrf.mxu2  ;;  %v189_v10 = vpop.f32.mrf.mxu3 }
  0xb4   :  { %v2698_v11 = vadd.f32 %v189_v10, %v169_v9 }
  0xb6   :  { %1956 = vmatmul.msk.f32.vlgmr.msrb.gmra.mxu1 %vm756_vm3, %v2698_v11 }
  0xb8   :  { %v129_v12 = vpop.f32.mrf.mxu0  ;;  %v149_v13 = vpop.f32.mrf.mxu1 }
  0xb9   :  { %v2702_v14 = vadd.f32 %v149_v13, %v129_v12  ;;  %v255_v12 = vld [vmem:[%s4202_s4 + $0x18] sm:$0xff]  ;;  %v254_v13 = vld [vmem:[%s4202_s4 + $0x10] sm:$0xff] }
  0xba   :  { %510 = vmatpush.msra.mxu2 %v255_v12 }
  0xbb   :  { %816 = vmatmul.f32.vlgmr.msrb.gmra.mxu3 %v2702_v14 }
  0xbc   :  { %511 = vmatpush.msra.mxu2 %v254_v13 }
  0xbe   :  { %903 = vmatmul.f32.vlgmr.msra.gmra.mxu1 %v2702_v14 }
  0xc1   :  { %v338_v19 = vpop.f32.mrf.mxu1 }
  0xc2   :  { %v339_v20 = vadd.f32 %v338_v19, %v312_v17  ;;  %v378_v21 = vpop.f32.mrf.mxu0  ;;  %v281_v17 = vld [vmem:[%s4202_s4 + $0xe8] sm:$0xff]  ;;  %v280_v19 = vld [vmem:[%s4202_s4 + $0xe0] sm:$0xff] }
  0xc3   :  { %v379_v22 = vadd.f32 %v378_v21, %v313_v18  ;;  %v358_v23 = vpop.f32.mrf.mxu3  ;;  %v398_v24 = vpop.f32.mrf.mxu2  ;;  %520 = vmatpush.msra.mxu0 %v281_v17  ;;  %v253_v18 = vld [vmem:[%s4202_s4 + $0x8] sm:$0xff]  ;;  %v279_v21 = vld [vmem:[%s4202_s4 + $0xd8] sm:$0xff] }
  0xc4   :  { %v359_v25 = vadd.f32 %v358_v23, %v339_v20  ;;  %512 = vmatpush.msra.mxu2 %v253_v18  ;;  %v252_v20 = vld [vmem:[%s4202_s4] sm:$0xff]  ;;  %v278_v23 = vld [vmem:[%s4202_s4 + $0xd0] sm:$0xff] }
  0xc5   :  { %v399_v26 = vadd.f32 %v398_v24, %v379_v22  ;;  %521 = vmatpush.msra.mxu0 %v280_v19  ;;  %v688_v22 = vld [vmem:[%s4203_s5 + $0xf0] sm:$0xff]  ;;  %v686_v24 = vld [vmem:[%s4203_s5 + $0xe0] sm:$0xff] }
  0xc6   :  { %v402_v27 = vsel %vm401_vm4, %v359_v25, 0.0  ;;  %513 = vmatpush.msra.mxu2 %v252_v20 }
  0xc7   :  { %v404_v28 = vsel %vm403_vm5, %v399_v26, 0.0  ;;  %522 = vmatpush.msra.mxu0 %v279_v21  ;;  %v697_v21 = vld [vmem:[%s4203_s5 + $0x138] sm:$0xff] }
  0xc8   :  { %v405_v29 = vadd.f32 %v404_v28, %v402_v27  ;;  %760 = vmatpush.msrb.mxu2 %v688_v22  ;;  %v276_v27 = vld [vmem:[%s4202_s4 + $0xc0] sm:$0xff] }
  0xc9   :  { %523 = vmatpush.msra.mxu0 %v278_v23  ;;  %v682_v28 = vld [vmem:[%s4203_s5 + $0xc0] sm:$0xff]  ;;  %v695_v23 = vld [vmem:[%s4203_s5 + $0x128] sm:$0xff] }
  0xca   :  { %406 = vadd.xlane.f32.xlu0 %v405_v29  ;;  %761 = vmatpush.msrb.mxu2 %v686_v24  ;;  %v275_v29 = vld [vmem:[%s4202_s4 + $0xb8] sm:$0xff] }
  0xda   :  { %v2720_v30 = vpop.f32.mrf.mxu1 }
  0xe2   :  { %v569_v32 = vpop.f32.mrf.mxu1 }
  0xe3   :  { %v570_v33 = vadd.f32 %v569_v32, %v543_v31  ;;  %v680_v31 = vld [vmem:[%s4203_s5 + $0xb0] sm:$0xff] }
  0xe4   :  { %v274_v32 = vld [vmem:[%s4202_s4 + $0xb0] sm:$0xff] }
  0xe5   :  { %v573_v34 = vsel %vm572_vm6, %v570_v33, 0.0 }
  0xe6   :  { %574 = vadd.xlane.f32.xlu0 %v573_v34  ;;  %v273_v34 = vld [vmem:[%s4202_s4 + $0xa8] sm:$0xff] }
 0x13d   :  { %v407_v42 = vpop.xlane.xlu0 %406 }
 0x13e   :  { %v415_v43 = vmul.f32 %v2724_v41, %v407_v42  ;;  %v670_v42 = vld [vmem:[%s4203_s5 + $0x60] sm:$0xff] }
 0x140   :  { %v2727_v45 = vsub.f32 %v359_v25, %v415_v43  ;;  %v2729_v46 = vsub.f32 %v399_v26, %v415_v43  ;;  %v277_v25 = vld [vmem:[%s4202_s4 + $0xc8] sm:$0xff]  ;;  %v684_v26 = vld [vmem:[%s4203_s5 + $0xd0] sm:$0xff] }
 0x141   :  { %524 = vmatpush.msra.mxu0 %v277_v25  ;;  %762 = vmatpush.msrb.mxu2 %v684_v26  ;;  %v269_v43 = vld [vmem:[%s4202_s4 + $0x88] sm:$0xff]  ;;  %v693_v25 = vld [vmem:[%s4203_s5 + $0x118] sm:$0xff] }
 0x142   :  { %v418_v49 = vmul.f32 %v2727_v45, %v2727_v45  ;;  %v419_v50 = vmul.f32 %v2729_v46, %v2729_v46 }
 0x143   :  { %525 = vmatpush.msra.mxu0 %v276_v27  ;;  %763 = vmatpush.msrb.mxu2 %v682_v28  ;;  %v691_v27 = vld [vmem:[%s4203_s5 + $0x108] sm:$0xff] }
 0x144   :  { %v420_v53 = vsel %vm401_vm4, %v418_v49, 0.0  ;;  %v421_v54 = vsel %vm403_vm5, %v419_v50, 0.0  ;;  %v664_v50 = vld [vmem:[%s4203_s5 + $0x30] sm:$0xff] }
 0x145   :  { %v422_v55 = vadd.f32 %v421_v54, %v420_v53  ;;  %526 = vmatpush.msra.mxu0 %v275_v29  ;;  %764 = vmatpush.msrb.mxu2 %v680_v31  ;;  %v660_v54 = vld [vmem:[%s4203_s5 + $0x10] sm:$0xff]  ;;  %v602_v31 = vperm.slane %v2708_v15, 5 }
 0x147   :  { %423 = vadd.xlane.f32.xlu1 %v422_v55  ;;  %527 = vmatpush.msra.mxu0 %v274_v32  ;;  %v658_v55 = vld [vmem:[%s4203_s5] sm:$0xff] }
 0x149   :  { %528 = vmatpush.msra.mxu0 %v273_v34  ;;  %v604_v34 = vperm.slane %v2708_v15, 6 }
 0x14b   :  { %529 = vmatpush.msra.mxu0 %v272_v36 }
 0x14d   :  { %530 = vmatpush.msra.mxu0 %v271_v38  ;;  %v753_v38 = vld [vmem:[%s4202_s4 + $0x368] sm:$0xff] }
 0x14f   :  { %531 = vmatpush.msra.mxu0 %v270_v40  ;;  %v750_v40 = vld [vmem:[%s4202_s4 + $0x350] sm:$0xff] }
 0x151   :  { %532 = vmatpush.msra.mxu0 %v269_v43  ;;  %v748_v43 = vld [vmem:[%s4202_s4 + $0x340] sm:$0xff] }
 0x153   :  { %533 = vmatpush.msra.mxu0 %v268_v47  ;;  %v746_v47 = vld [vmem:[%s4202_s4 + $0x330] sm:$0xff] }
 0x159   :  { %v575_v6 = vpop.xlane.xlu0 %574 }
 0x15a   :  { %v583_v7 = vmul.f32 %v2773_v5, %v575_v6 }
 0x15c   :  { %v2776_v8 = vsub.f32 %v570_v33, %v583_v7  ;;  %v678_v33 = vld [vmem:[%s4203_s5 + $0xa0] sm:$0xff] }
 0x15d   :  { %765 = vmatpush.msrb.mxu2 %v678_v33 }
 0x15e   :  { %v585_v9 = vmul.f32 %v2776_v8, %v2776_v8 }
 0x15f   :  { %766 = vmatpush.msrb.mxu2 %v676_v35 }
 0x160   :  { %v586_v10 = vsel %vm572_vm6, %v585_v9, 0.0 }
 0x161   :  { %587 = vadd.xlane.f32.xlu1 %v586_v10  ;;  %767 = vmatpush.msrb.mxu2 %v674_v37 }
 0x163   :  { %768 = vmatpush.msrb.mxu2 %v672_v39  ;;  %v752_v39 = vld [vmem:[%s4202_s4 + $0x360] sm:$0xff] }
 0x165   :  { %769 = vmatpush.msrb.mxu2 %v670_v42  ;;  %v749_v42 = vld [vmem:[%s4202_s4 + $0x348] sm:$0xff] }
 0x167   :  { %770 = vmatpush.msrb.mxu2 %v668_v44  ;;  %v747_v44 = vld [vmem:[%s4202_s4 + $0x338] sm:$0xff] }
 0x169   :  { %771 = vmatpush.msrb.mxu2 %v666_v48  ;;  %v1017_v48 = vld [vmem:[%s4204_s6 + $0x168] sm:$0xff] }
 0x16b   :  { %772 = vmatpush.msrb.mxu2 %v664_v50  ;;  %v1014_v50 = vld [vmem:[%s4204_s6 + $0x150] sm:$0xff] }
 0x16d   :  { %773 = vmatpush.msrb.mxu2 %v662_v52  ;;  %v1008_v52 = vld [vmem:[%s4204_s6 + $0x120] sm:$0xff] }
 0x16f   :  { %774 = vmatpush.msrb.mxu2 %v660_v54  ;;  %v1002_v54 = vld [vmem:[%s4204_s6 + $0xf0] sm:$0xff] }
 0x171   :  { %775 = vmatpush.msrb.mxu2 %v658_v55  ;;  %v999_v55 = vld [vmem:[%s4204_s6 + $0xd8] sm:$0xff] }
 0x1ba   :  { %v424_v49 = vpop.xlane.xlu1 %423 }
 0x1bb   :  { %v425_v51 = vmul.f32 %v424_v49, %v2724_v41  ;;  %v541_v41 = vld [vmem:[%s4202_s4 + $0x1e0] sm:$0x1f]  ;;  %v1065_v49 = vld [vmem:[%s4204_s6 + $0x2e8] sm:$0xff] }
 0x1bc   :  { %1954 = vmatpush.msk.msrb.mxu0 %vm548_vm1, %v541_v41  ;;  %1139 = vmatpush.msrb.mxu1 %v1065_v49  ;;  %v996_v41 = vld [vmem:[%s4204_s6 + $0xc0] sm:$0xff] }
 0x1bd   :  { %v426_v53 = vadd.f32 1e-05, %v425_v51  ;;  %v1011_v51 = vld [vmem:[%s4204_s6 + $0x138] sm:$0xff] }
 0x1bf   :  { %1976 = vrsqrt.f32 %v426_v53  ;;  %vm433_vm10 = vweird.f32 %v426_v53 }
 0x1c5   :  { %v1977_v56 = vpop.eup %1976 }
 0x1c6   :  { %v428_v57 = vmul.f32 %v1977_v56, %v426_v53  ;;  %vm434_vm9 = vweird.f32 %v1977_v56  ;;  %v1005_v53 = vld [vmem:[%s4204_s6 + $0x108] sm:$0xff] }
 0x1c7   :  { %vm435_vm11 = vmor %vm433_vm10, %vm434_vm9 }
 0x1c8   :  { %v429_v58 = vmul.f32 %v1977_v56, %v428_v57  ;;  %v990_v57 = vld [vmem:[%s4204_s6 + $0x90] sm:$0xff] }
 0x1ca   :  { %v430_v59 = vmul.f32 0.5, %v429_v58  ;;  %v987_v58 = vld [vmem:[%s4204_s6 + $0x78] sm:$0xff] }
 0x1cc   :  { %v431_v60 = vsub.f32 1.5, %v430_v59  ;;  %v984_v59 = vld [vmem:[%s4204_s6 + $0x60] sm:$0xff] }
 0x1ce   :  { %v432_v61 = vmul.f32 %v1977_v56, %v431_v60  ;;  %v981_v60 = vld [vmem:[%s4204_s6 + $0x48] sm:$0xff] }
 0x1d0   :  { %v436_v0 = vsel %vm435_vm11, %v1977_v56, %v432_v61  ;;  %v993_v56 = vld [vmem:[%s4204_s6 + $0xa8] sm:$0xff]  ;;  %v978_v61 = vld [vmem:[%s4204_s6 + $0x30] sm:$0xff] }
 0x1d1   :  { %v437_v2 = vmul.f32 %v436_v0, %v2727_v45  ;;  %v438_v3 = vmul.f32 %v436_v0, %v2729_v46  ;;  %v703_v45 = vld [vmem:[%s4203_s5 + $0x168] sm:$0xff]  ;;  %v701_v46 = vld [vmem:[%s4203_s5 + $0x158] sm:$0xff]  ;;  %v1066_v0 = vld [vmem:[%s4204_s6 + $0x2f0] sm:$0xff] }
 0x1d3   :  { %v442_v6 = vmul.f32 %v440_v62, %v438_v3  ;;  %v441_v7 = vmul.f32 %v439_v63, %v437_v2  ;;  %v975_v62 = vld [vmem:[%s4204_s6 + $0x18] sm:$0xff]  ;;  %v972_v63 = vld [vmem:[%s4204_s6] sm:$0xff] }
 0x1d4   :  { %v588_v9 = vpop.xlane.xlu1 %587  ;;  %v1063_v2 = vld [vmem:[%s4204_s6 + $0x2d8] sm:$0xff] }
 0x1d5   :  { %v589_v10 = vmul.f32 %v588_v9, %v2773_v5  ;;  %v445_v12 = vadd.f32 %v443_v4, %v441_v7  ;;  %v446_v13 = vadd.f32 %v444_v1, %v442_v6  ;;  %v699_v5 = vld [vmem:[%s4203_s5 + $0x148] sm:$0xff]  ;;  %v1062_v1 = vld [vmem:[%s4204_s6 + $0x2d0] sm:$0xff]  ;;  %v1059_v3 = vld [vmem:[%s4204_s6 + $0x2b8] sm:$0xff] }
 0x1d6   :  { %1140 = vmatpush.msrb.mxu1 %v1062_v1  ;;  %v1060_v4 = vld [vmem:[%s4204_s6 + $0x2c0] sm:$0xff]  ;;  %v1057_v7 = vld [vmem:[%s4204_s6 + $0x2a8] sm:$0xff]  ;;  %v719_v1 = vld [vmem:[%s4202_s4 + $0x258] sm:$0xff] }
 0x1d7   :  { %v590_v17 = vadd.f32 1e-05, %v589_v10  ;;  %v447_v18 = vmax.f32 %v445_v12, 0.0  ;;  %v448_v19 = vmax.f32 %v446_v13, 0.0  ;;  %v1056_v6 = vld [vmem:[%s4204_s6 + $0x2a0] sm:$0xff]  ;;  %v1053_v9 = vld [vmem:[%s4204_s6 + $0x288] sm:$0xff] }
 0x1d8   :  { %1141 = vmatpush.msrb.mxu1 %v1059_v3  ;;  %v1054_v10 = vld [vmem:[%s4204_s6 + $0x290] sm:$0xff]  ;;  %v1051_v13 = vld [vmem:[%s4204_s6 + $0x278] sm:$0xff] }
 0x1d9   :  { %1978 = vrsqrt.f32 %v590_v17  ;;  %514 = vmatmul.f32.vlgmr.msra.gmra.mxu2 %v447_v18  ;;  %1949 = vmatmul.msk.f32.vlgmr.msra.gmra.mxu0 %vm109_vm0, %v448_v19  ;;  %vm597_vm13 = vweird.f32 %v590_v17  ;;  %v1050_v12 = vld [vmem:[%s4204_s6 + $0x270] sm:$0xff]  ;;  %v1048_v18 = vld [vmem:[%s4204_s6 + $0x260] sm:$0xff] }
 0x1da   :  { %828 = vmatpush.msra.mxu0 %v705_v16  ;;  %1142 = vmatpush.msrb.mxu1 %v1056_v6  ;;  %v1044_v19 = vld [vmem:[%s4204_s6 + $0x240] sm:$0xff]  ;;  %v1045_v16 = vld [vmem:[%s4204_s6 + $0x248] sm:$0xff]  ;;  %v718_v3 = vld [vmem:[%s4202_s4 + $0x250] sm:$0xff] }
 0x1dc   :  { %829 = vmatpush.msra.mxu0 %v703_v45  ;;  %1143 = vmatpush.msrb.mxu1 %v1053_v9  ;;  %v1041_v45 = vld [vmem:[%s4204_s6 + $0x228] sm:$0xff]  ;;  %v715_v9 = vld [vmem:[%s4202_s4 + $0x238] sm:$0xff] }
 0x1de   :  { %830 = vmatpush.msra.mxu0 %v701_v46  ;;  %1144 = vmatpush.msrb.mxu1 %v1050_v12  ;;  %v1042_v46 = vld [vmem:[%s4204_s6 + $0x230] sm:$0xff] }
 0x1df   :  { %v1979_v20 = vpop.eup %1978  ;;  %v714_v12 = vld [vmem:[%s4202_s4 + $0x230] sm:$0xff] }
 0x1e0   :  { %v592_v22 = vmul.f32 %v1979_v20, %v590_v17  ;;  %831 = vmatpush.msra.mxu0 %v699_v5  ;;  %vm598_vm12 = vweird.f32 %v1979_v20  ;;  %v1047_v17 = vld [vmem:[%s4204_s6 + $0x258] sm:$0xff]  ;;  %v1038_v5 = vld [vmem:[%s4204_s6 + $0x210] sm:$0xff] }
 0x1e1   :  { %776 = vmatmul.f32.vlgmr.msrb.gmra.mxu2 %v2702_v14  ;;  %vm599_vm14 = vmor %vm597_vm13, %vm598_vm12  ;;  %1145 = vmatpush.msrb.mxu1 %v1047_v17  ;;  %vm1887_vm13 = vcmask 519170  }
 0x1e2   :  { %v593_v24 = vmul.f32 %v1979_v20, %v592_v22  ;;  %832 = vmatpush.msra.mxu0 %v697_v21  ;;  %v1035_v21 = vld [vmem:[%s4204_s6 + $0x1f8] sm:$0xff]  ;;  %v1036_v22 = vld [vmem:[%s4204_s6 + $0x200] sm:$0xff] }
 0x1e3   :  { %1146 = vmatpush.msrb.mxu1 %v1044_v19  ;;  %v711_v19 = vld [vmem:[%s4202_s4 + $0x218] sm:$0xff] }
 0x1e4   :  { %v594_v26 = vmul.f32 0.5, %v593_v24  ;;  %833 = vmatpush.msra.mxu0 %v695_v23  ;;  %v1032_v23 = vld [vmem:[%s4204_s6 + $0x1e0] sm:$0xff]  ;;  %v1033_v24 = vld [vmem:[%s4204_s6 + $0x1e8] sm:$0xff] }
 0x1e5   :  { %1147 = vmatpush.msrb.mxu1 %v1041_v45  ;;  %v710_v45 = vld [vmem:[%s4202_s4 + $0x210] sm:$0xff] }
 0x1e6   :  { %v595_v28 = vsub.f32 1.5, %v594_v26  ;;  %834 = vmatpush.msra.mxu0 %v693_v25  ;;  %v1029_v25 = vld [vmem:[%s4204_s6 + $0x1c8] sm:$0xff]  ;;  %v1030_v26 = vld [vmem:[%s4204_s6 + $0x1d0] sm:$0xff] }
 0x1e7   :  { %1148 = vmatpush.msrb.mxu1 %v1038_v5  ;;  %v709_v5 = vld [vmem:[%s4202_s4 + $0x208] sm:$0xff] }
 0x1e8   :  { %v596_v29 = vmul.f32 %v1979_v20, %v595_v28  ;;  %835 = vmatpush.msra.mxu0 %v691_v27  ;;  %v1026_v27 = vld [vmem:[%s4204_s6 + $0x1b0] sm:$0xff]  ;;  %v1027_v28 = vld [vmem:[%s4204_s6 + $0x1b8] sm:$0xff] }
 0x1e9   :  { %1149 = vmatpush.msrb.mxu1 %v1035_v21  ;;  %v708_v21 = vld [vmem:[%s4202_s4 + $0x200] sm:$0xff] }
 0x1ea   :  { %v600_v32 = vsel %vm599_vm14, %v1979_v20, %v596_v29  ;;  %v1039_v20 = vld [vmem:[%s4204_s6 + $0x218] sm:$0xff] }
 0x1eb   :  { %v601_v33 = vmul.f32 %v600_v32, %v2776_v8  ;;  %v751_v8 = vld [vmem:[%s4202_s4 + $0x358] sm:$0xff]  ;;  %1150 = vmatpush.msrb.mxu1 %v1032_v23  ;;  %v1020_v32 = vld [vmem:[%s4204_s6 + $0x180] sm:$0xff] }
 0x1ec   :  { %v1023_v29 = vld [vmem:[%s4204_s6 + $0x198] sm:$0xff] }
 0x1ed   :  { %v603_v35 = vmul.f32 %v602_v31, %v601_v33  ;;  %1151 = vmatpush.msrb.mxu1 %v1029_v25  ;;  %v1024_v31 = vld [vmem:[%s4204_s6 + $0x1a0] sm:$0xff]  ;;  %v1021_v33 = vld [vmem:[%s4204_s6 + $0x188] sm:$0xff] }
 0x1ef   :  { %v605_v36 = vadd.f32 %v604_v34, %v603_v35  ;;  %1152 = vmatpush.msrb.mxu1 %v1026_v27  ;;  %v472_v34 = vpop.f32.mrf.mxu3  ;;  %v706_v27 = vld [vmem:[%s4202_s4 + $0x1f0] sm:$0xff] }
 0x1f0   :  { %v493_v35 = vadd.f32 %v2720_v30, %v472_v34  ;;  %v656_v30 = vperm.slane %v2708_v15, 7  ;;  %v1012_v34 = vld [vmem:[%s4204_s6 + $0x140] sm:$0xff] }
 0x1f1   :  { %v606_v37 = vmax.f32 %v605_v36, 0.0  ;;  %1153 = vmatpush.msrb.mxu1 %v1023_v29 }
 0x1f3   :  { %1955 = vmatmul.msk.f32.vlgmr.msrb.gmra.mxu0 %vm544_vm2, %v606_v37  ;;  %1154 = vmatpush.msrb.mxu1 %v1020_v32 }
 0x1f4   :  { %915 = vmatpush.msrb.mxu0 %v753_v38  ;;  %v538_v38 = vperm.slane %v2708_v15, 3 }
 0x1f6   :  { %916 = vmatpush.msrb.mxu0 %v752_v39 }
 0x1f8   :  { %917 = vmatpush.msrb.mxu0 %v751_v8 }
 0x1fa   :  { %918 = vmatpush.msrb.mxu0 %v750_v40 }
 0x1fb   :  { %1957 = vmatmul.msk.f32.vlgmr.msra.gmra.mxu0 %vm756_vm3, %v2698_v11 }
 0x1fc   :  { %919 = vmatpush.msrb.mxu0 %v749_v42  ;;  %v627_v42 = vpop.f32.mrf.mxu1 }
 0x1fe   :  { %920 = vmatpush.msrb.mxu0 %v748_v43  ;;  %v3105_v43 = vld [vmem:[%s4205_s7 + $0x18] sm:$0xff] }
 0x200   :  { %921 = vmatpush.msrb.mxu0 %v747_v44  ;;  %v754_v44 = vperm.slane %v3105_v43, 0 }
 0x202   :  { %922 = vmatpush.msrb.mxu0 %v746_v47  ;;  %v3112_v47 = vld [vmem:[%s4205_s7 + $0x20] sm:$0xff] }
 0x203   :  { %1958 = vmatmul.msk.f32.vlgmr.msrb.gmra.mxu0 %vm756_vm3, %v2698_v11 }
 0x204   :  { %1119 = vmatpush.msra.mxu0 %v1017_v48 }
 0x206   :  { %1120 = vmatpush.msra.mxu0 %v1014_v50 }
 0x208   :  { %1121 = vmatpush.msra.mxu0 %v1011_v51  ;;  %v755_v51 = vperm.slane %v3112_v47, 0 }
 0x20a   :  { %1122 = vmatpush.msra.mxu0 %v1008_v52 }
 0x20c   :  { %1123 = vmatpush.msra.mxu0 %v1005_v53 }
 0x20e   :  { %1124 = vmatpush.msra.mxu0 %v1002_v54  ;;  %v817_v54 = vpop.f32.mrf.mxu3 }
 0x20f   :  { %v818_v15 = vadd.f32 %v817_v54, %v755_v51  ;;  %v985_v51 = vld [vmem:[%s4204_s6 + $0x68] sm:$0xff]  ;;  %v982_v54 = vld [vmem:[%s4204_s6 + $0x50] sm:$0xff] }
 0x210   :  { %1125 = vmatpush.msra.mxu0 %v999_v55  ;;  %v797_v55 = vpop.f32.mrf.mxu1 }
 0x212   :  { %1126 = vmatpush.msra.mxu0 %v996_v41 }
 0x214   :  { %1127 = vmatpush.msra.mxu0 %v993_v56 }
 0x216   :  { %1128 = vmatpush.msra.mxu0 %v990_v57 }
 0x218   :  { %1129 = vmatpush.msra.mxu0 %v987_v58 }
 0x21a   :  { %1130 = vmatpush.msra.mxu0 %v984_v59 }
 0x21c   :  { %1131 = vmatpush.msra.mxu0 %v981_v60 }
 0x21e   :  { %1132 = vmatpush.msra.mxu0 %v978_v61  ;;  %v2034_v61 = vmov 192.0  }
 0x21f   :  { %1980 = vrcp.f32 %v2034_v61 }
 0x220   :  { %1133 = vmatpush.msra.mxu0 %v975_v62  ;;  %v721_v62 = vld [vmem:[%s4202_s4 + $0x268] sm:$0xff] }
 0x221   :  { %930 = vmatpush.msra.mxu2 %v721_v62 }
 0x222   :  { %1134 = vmatpush.msra.mxu0 %v972_v63  ;;  %v720_v63 = vld [vmem:[%s4202_s4 + $0x260] sm:$0xff] }
 0x223   :  { %931 = vmatpush.msra.mxu2 %v720_v63 }
 0x224   :  { %1199 = vmatpush.msrb.mxu0 %v1066_v0 }
 0x225   :  { %v1981_v0 = vpop.eup %1980  ;;  %932 = vmatpush.msra.mxu2 %v719_v1 }
 0x226   :  { %1200 = vmatpush.msrb.mxu0 %v1063_v2  ;;  %v847_v2 = vmul.f32 192.0, %v1981_v0  ;;  %vm851_vm0 = vweird.f32 %v1981_v0 }
 0x227   :  { %933 = vmatpush.msra.mxu2 %v718_v3 }
 0x228   :  { %1201 = vmatpush.msrb.mxu0 %v1060_v4  ;;  %v717_v4 = vld [vmem:[%s4202_s4 + $0x248] sm:$0xff]  ;;  %v848_v6 = vsub.f32 1.0, %v847_v2 }
 0x229   :  { %934 = vmatpush.msra.mxu2 %v717_v4  ;;  %v878_v4 = vperm.slane %v3112_v47, 1 }
 0x22a   :  { %1202 = vmatpush.msrb.mxu0 %v1057_v7  ;;  %v716_v7 = vld [vmem:[%s4202_s4 + $0x240] sm:$0xff] }
 0x22b   :  { %935 = vmatpush.msra.mxu2 %v716_v7 }
 0x22c   :  { %1203 = vmatpush.msrb.mxu0 %v1054_v10  ;;  %v849_v10 = vmul.f32 %v1981_v0, %v848_v6  ;;  %v877_v6 = vperm.slane %v3105_v43, 1 }
 0x22d   :  { %936 = vmatpush.msra.mxu2 %v715_v9 }
 0x22e   :  { %1204 = vmatpush.msrb.mxu0 %v1051_v13  ;;  %v713_v13 = vld [vmem:[%s4202_s4 + $0x228] sm:$0xff]  ;;  %v850_v17 = vadd.f32 %v1981_v0, %v849_v10 }
 0x22f   :  { %937 = vmatpush.msra.mxu2 %v714_v12  ;;  %v881_v12 = vperm.slane %v3105_v43, 2 }
 0x230   :  { %1205 = vmatpush.msrb.mxu0 %v1048_v18  ;;  %v712_v18 = vld [vmem:[%s4202_s4 + $0x220] sm:$0xff] }
 0x231   :  { %938 = vmatpush.msra.mxu2 %v713_v13  ;;  %v882_v13 = vperm.slane %v3112_v47, 2 }
 0x232   :  { %1206 = vmatpush.msrb.mxu0 %v1045_v16  ;;  %v3154_v16 = vsel %vm851_vm0, %v1981_v0, %v850_v17 }
 0x233   :  { %939 = vmatpush.msra.mxu2 %v712_v18 }
 0x234   :  { %1207 = vmatpush.msrb.mxu0 %v1042_v46 }
 0x235   :  { %940 = vmatpush.msra.mxu2 %v711_v19 }
 0x236   :  { %1208 = vmatpush.msrb.mxu0 %v1039_v20 }
 0x237   :  { %941 = vmatpush.msra.mxu2 %v710_v45 }
 0x238   :  { %1209 = vmatpush.msrb.mxu0 %v1036_v22 }
 0x239   :  { %942 = vmatpush.msra.mxu2 %v709_v5 }
 0x23a   :  { %1210 = vmatpush.msrb.mxu0 %v1033_v24  ;;  %v707_v24 = vld [vmem:[%s4202_s4 + $0x1f8] sm:$0xff] }
 0x23b   :  { %943 = vmatpush.msra.mxu2 %v708_v21  ;;  %v1064_v21 = vld [vmem:[%s4204_s6 + $0x2e0] sm:$0xff] }
 0x23c   :  { %1211 = vmatpush.msrb.mxu0 %v1030_v26 }
 0x23d   :  { %944 = vmatpush.msra.mxu2 %v707_v24  ;;  %v1061_v24 = vld [vmem:[%s4204_s6 + $0x2c8] sm:$0xff] }
 0x23e   :  { %1212 = vmatpush.msrb.mxu0 %v1027_v28 }
 0x23f   :  { %945 = vmatpush.msra.mxu2 %v706_v27  ;;  %v1104_v27 = vld [vmem:[%s4204_s6 + $0x420] sm:$0xff] }
 0x240   :  { %1213 = vmatpush.msrb.mxu0 %v1024_v31  ;;  %v1018_v31 = vld [vmem:[%s4204_s6 + $0x170] sm:$0xff] }
 0x241   :  { %1179 = vmatpush.msrb.mxu2 %v1018_v31  ;;  %v1111_v31 = vld [vmem:[%s4204_s6 + $0x458] sm:$0xff] }
 0x242   :  { %1214 = vmatpush.msrb.mxu0 %v1021_v33  ;;  %v1015_v33 = vld [vmem:[%s4204_s6 + $0x158] sm:$0xff] }
 0x243   :  { %1180 = vmatpush.msrb.mxu2 %v1015_v33  ;;  %v1101_v33 = vld [vmem:[%s4204_s6 + $0x408] sm:$0xff] }
 0x245   :  { %1181 = vmatpush.msrb.mxu2 %v1012_v34  ;;  %v1112_v34 = vld [vmem:[%s4204_s6 + $0x460] sm:$0xff] }
 0x256   :  { %v535_v39 = vpop.f32.mrf.mxu0 }
 0x25c   :  { %v515_v36 = vpop.f32.mrf.mxu2 }
 0x25d   :  { %v516_v37 = vadd.f32 %v515_v36, %v493_v35  ;;  %v1009_v35 = vld [vmem:[%s4204_s6 + $0x128] sm:$0xff]  ;;  %v1006_v36 = vld [vmem:[%s4204_s6 + $0x110] sm:$0xff] }
 0x25e   :  { %1182 = vmatpush.msrb.mxu2 %v1009_v35  ;;  %v1108_v35 = vld [vmem:[%s4204_s6 + $0x440] sm:$0xff] }
 0x25f   :  { %v536_v8 = vadd.f32 %v535_v39, %v516_v37  ;;  %v1003_v37 = vld [vmem:[%s4204_s6 + $0xf8] sm:$0xff]  ;;  %v997_v39 = vld [vmem:[%s4204_s6 + $0xc8] sm:$0xff] }
 0x260   :  { %1183 = vmatpush.msrb.mxu2 %v1006_v36  ;;  %v1052_v36 = vld [vmem:[%s4204_s6 + $0x280] sm:$0xff] }
 0x261   :  { %v3099_v40 = vadd.f32 %v538_v38, %v536_v8  ;;  %v1000_v38 = vld [vmem:[%s4204_s6 + $0xe0] sm:$0xff]  ;;  %v729_v8 = vld [vmem:[%s4202_s4 + $0x2a8] sm:$0xff] }
 0x262   :  { %1184 = vmatpush.msrb.mxu2 %v1003_v37  ;;  %958 = vmatpush.msra.mxu3 %v729_v8  ;;  %v1098_v37 = vld [vmem:[%s4204_s6 + $0x3f0] sm:$0xff]  ;;  %v1049_v8 = vld [vmem:[%s4204_s6 + $0x268] sm:$0xff] }
 0x263   :  { %1135 = vmatmul.f32.vlgmr.msra.gmra.mxu0 %v3099_v40 }
 0x264   :  { %v777_v48 = vpop.f32.mrf.mxu2  ;;  %1185 = vmatpush.msrb.mxu2 %v1000_v38  ;;  %v1109_v38 = vld [vmem:[%s4204_s6 + $0x448] sm:$0xff] }
 0x265   :  { %v778_v52 = vadd.f32 %v777_v48, %v754_v44  ;;  %v728_v44 = vld [vmem:[%s4202_s4 + $0x2a0] sm:$0xff]  ;;  %v727_v48 = vld [vmem:[%s4202_s4 + $0x298] sm:$0xff] }
 0x266   :  { %1186 = vmatpush.msrb.mxu2 %v997_v39  ;;  %959 = vmatpush.msra.mxu3 %v728_v44  ;;  %v1105_v39 = vld [vmem:[%s4204_s6 + $0x428] sm:$0xff]  ;;  %v1106_v44 = vld [vmem:[%s4204_s6 + $0x430] sm:$0xff] }
 0x267   :  { %v798_v41 = vadd.f32 %v797_v55, %v778_v52  ;;  %v725_v52 = vld [vmem:[%s4202_s4 + $0x288] sm:$0xff]  ;;  %v724_v55 = vld [vmem:[%s4202_s4 + $0x280] sm:$0xff] }
 0x268   :  { %960 = vmatpush.msra.mxu3 %v727_v48  ;;  %v1046_v48 = vld [vmem:[%s4204_s6 + $0x250] sm:$0xff] }
 0x269   :  { %v840_v58 = vsel %vm401_vm4, %v798_v41, 0.0 }
 0x270   :  { %v653_v49 = vpop.f32.mrf.mxu0 }
 0x271   :  { %v654_v50 = vadd.f32 %v653_v49, %v627_v42  ;;  %v994_v42 = vld [vmem:[%s4204_s6 + $0xb0] sm:$0xff]  ;;  %v988_v49 = vld [vmem:[%s4204_s6 + $0x80] sm:$0xff] }
 0x272   :  { %1187 = vmatpush.msrb.mxu2 %v994_v42  ;;  %v1095_v42 = vld [vmem:[%s4204_s6 + $0x3d8] sm:$0xff] }
 0x273   :  { %v3115_v53 = vadd.f32 %v656_v30, %v654_v50  ;;  %v991_v30 = vld [vmem:[%s4204_s6 + $0x98] sm:$0xff]  ;;  %v726_v50 = vld [vmem:[%s4202_s4 + $0x290] sm:$0xff] }
 0x274   :  { %1188 = vmatpush.msrb.mxu2 %v991_v30  ;;  %961 = vmatpush.msra.mxu3 %v726_v50  ;;  %v1102_v30 = vld [vmem:[%s4204_s6 + $0x410] sm:$0xff]  ;;  %v1103_v50 = vld [vmem:[%s4204_s6 + $0x418] sm:$0xff] }
 0x275   :  { %1155 = vmatmul.f32.vlgmr.msrb.gmra.mxu1 %v3115_v53  ;;  %1215 = vmatmul.f32.vlgmr.msrb.gmra.mxu0 %v3115_v53 }
 0x276   :  { %1189 = vmatpush.msrb.mxu2 %v988_v49  ;;  %962 = vmatpush.msra.mxu3 %v725_v52  ;;  %v1092_v49 = vld [vmem:[%s4204_s6 + $0x3c0] sm:$0xff]  ;;  %v1043_v52 = vld [vmem:[%s4204_s6 + $0x238] sm:$0xff] }
 0x278   :  { %v837_v56 = vpop.f32.mrf.mxu0  ;;  %1190 = vmatpush.msrb.mxu2 %v985_v51  ;;  %963 = vmatpush.msra.mxu3 %v724_v55  ;;  %v1099_v51 = vld [vmem:[%s4204_s6 + $0x3f8] sm:$0xff]  ;;  %v1100_v55 = vld [vmem:[%s4204_s6 + $0x400] sm:$0xff] }
 0x279   :  { %v838_v57 = vadd.f32 %v837_v56, %v818_v15  ;;  %v979_v15 = vld [vmem:[%s4204_s6 + $0x38] sm:$0xff]  ;;  %v976_v56 = vld [vmem:[%s4204_s6 + $0x20] sm:$0xff] }
 0x27a   :  { %1191 = vmatpush.msrb.mxu2 %v982_v54  ;;  %v1089_v54 = vld [vmem:[%s4204_s6 + $0x3a8] sm:$0xff] }
 0x27b   :  { %v842_v59 = vsel %vm841_vm15, %v838_v57, 0.0 }
 0x27c   :  { %v843_v60 = vadd.f32 %v842_v59, %v840_v58  ;;  %1192 = vmatpush.msrb.mxu2 %v979_v15  ;;  %v973_v58 = vld [vmem:[%s4204_s6 + $0x8] sm:$0xff]  ;;  %v1096_v15 = vld [vmem:[%s4204_s6 + $0x3e0] sm:$0xff] }
 0x27e   :  { %844 = vadd.xlane.f32.xlu2 %v843_v60  ;;  %1193 = vmatpush.msrb.mxu2 %v976_v56  ;;  %v1086_v56 = vld [vmem:[%s4204_s6 + $0x390] sm:$0xff] }
 0x280   :  { %1194 = vmatpush.msrb.mxu2 %v973_v58  ;;  %v1093_v58 = vld [vmem:[%s4204_s6 + $0x3c8] sm:$0xff] }
 0x2f1   :  { %v845_v46 = vpop.xlane.xlu2 %844 }
 0x2f2   :  { %v853_v20 = vmul.f32 %v3154_v16, %v845_v46 }
 0x2f4   :  { %v3166_v22 = vsub.f32 %v798_v41, %v853_v20  ;;  %v3168_v23 = vsub.f32 %v838_v57, %v853_v20  ;;  %v723_v41 = vld [vmem:[%s4202_s4 + $0x278] sm:$0xff]  ;;  %v722_v57 = vld [vmem:[%s4202_s4 + $0x270] sm:$0xff] }
 0x2f5   :  { %964 = vmatpush.msra.mxu3 %v723_v41  ;;  %v1067_v20 = vld [vmem:[%s4204_s6 + $0x2f8] sm:$0xff]  ;;  %v1040_v41 = vld [vmem:[%s4204_s6 + $0x220] sm:$0xff] }
 0x2f6   :  { %v856_v25 = vmul.f32 %v3166_v22, %v3166_v22  ;;  %v857_v26 = vmul.f32 %v3168_v23, %v3168_v23 }
 0x2f7   :  { %965 = vmatpush.msra.mxu3 %v722_v57  ;;  %v1097_v57 = vld [vmem:[%s4204_s6 + $0x3e8] sm:$0xff] }
 0x2f8   :  { %v858_v28 = vsel %vm401_vm4, %v856_v25, 0.0  ;;  %v859_v29 = vsel %vm841_vm15, %v857_v26, 0.0  ;;  %v1107_v25 = vld [vmem:[%s4204_s6 + $0x438] sm:$0xff]  ;;  %v1058_v26 = vld [vmem:[%s4204_s6 + $0x2b0] sm:$0xff] }
 0x2f9   :  { %v860_v32 = vadd.f32 %v859_v29, %v858_v28  ;;  %v1114_v28 = vld [vmem:[%s4204_s6 + $0x470] sm:$0xff]  ;;  %v1115_v29 = vld [vmem:[%s4204_s6 + $0x478] sm:$0xff] }
 0x2fa   :  { %1219 = vmatpush.msra.mxu1 %v1114_v28  ;;  %1279 = vmatpush.msra.mxu0 %v1115_v29  ;;  %v1079_v28 = vld [vmem:[%s4204_s6 + $0x358] sm:$0xff] }
 0x2fb   :  { %861 = vadd.xlane.f32.xlu2 %v860_v32  ;;  %v1055_v32 = vld [vmem:[%s4204_s6 + $0x298] sm:$0xff] }
 0x2fc   :  { %1220 = vmatpush.msra.mxu1 %v1111_v31  ;;  %1280 = vmatpush.msra.mxu0 %v1112_v34  ;;  %v1075_v29 = vld [vmem:[%s4204_s6 + $0x338] sm:$0xff]  ;;  %v992_v31 = vld [vmem:[%s4204_s6 + $0xa0] sm:$0xff]  ;;  %v989_v34 = vld [vmem:[%s4204_s6 + $0x88] sm:$0xff] }
 0x2fe   :  { %1221 = vmatpush.msra.mxu1 %v1108_v35  ;;  %1281 = vmatpush.msra.mxu0 %v1109_v38  ;;  %v1073_v35 = vld [vmem:[%s4204_s6 + $0x328] sm:$0xff]  ;;  %v1070_v38 = vld [vmem:[%s4204_s6 + $0x310] sm:$0xff] }
 0x300   :  { %1222 = vmatpush.msra.mxu1 %v1105_v39  ;;  %1282 = vmatpush.msra.mxu0 %v1106_v44  ;;  %v983_v39 = vld [vmem:[%s4204_s6 + $0x58] sm:$0xff]  ;;  %v974_v44 = vld [vmem:[%s4204_s6 + $0x10] sm:$0xff] }
 0x302   :  { %1223 = vmatpush.msra.mxu1 %v1102_v30  ;;  %1283 = vmatpush.msra.mxu0 %v1103_v50  ;;  %v924_v30 = vpop.f32.mrf.mxu0 }
 0x304   :  { %1224 = vmatpush.msra.mxu1 %v1099_v51  ;;  %1284 = vmatpush.msra.mxu0 %v1100_v55 }
 0x306   :  { %1225 = vmatpush.msra.mxu1 %v1096_v15  ;;  %1285 = vmatpush.msra.mxu0 %v1097_v57  ;;  %v1116_v57 = vperm.slane %v3105_v43, 4 }
 0x308   :  { %1226 = vmatpush.msra.mxu1 %v1093_v58  ;;  %v1117_v58 = vperm.slane %v3112_v47, 4 }
 0x36e   :  { %v862_v59 = vpop.xlane.xlu2 %861 }
 0x36f   :  { %v863_v60 = vmul.f32 %v862_v59, %v3154_v16  ;;  %v1037_v59 = vld [vmem:[%s4204_s6 + $0x208] sm:$0xff] }
 0x371   :  { %v864_v61 = vadd.f32 1e-05, %v863_v60  ;;  %v1083_v60 = vld [vmem:[%s4204_s6 + $0x378] sm:$0xff] }
 0x373   :  { %1982 = vrsqrt.f32 %v864_v61  ;;  %vm871_vm2 = vweird.f32 %v864_v61 }
 0x379   :  { %v1983_v62 = vpop.eup %1982 }
 0x37a   :  { %v866_v63 = vmul.f32 %v1983_v62, %v864_v61  ;;  %vm872_vm1 = vweird.f32 %v1983_v62  ;;  %v1094_v61 = vld [vmem:[%s4204_s6 + $0x3d0] sm:$0xff] }
 0x37b   :  { %vm873_vm5 = vmor %vm871_vm2, %vm872_vm1  ;;  %1286 = vmatpush.msra.mxu0 %v1094_v61  ;;  %v3511_v61 = vld [vmem:[%s4205_s7 + $0x28] sm:$0xff] }
 0x37c   :  { %v867_v0 = vmul.f32 %v1983_v62, %v866_v63  ;;  %v1034_v63 = vld [vmem:[%s4204_s6 + $0x1f0] sm:$0xff] }
 0x37e   :  { %v868_v1 = vmul.f32 0.5, %v867_v0  ;;  %v1080_v0 = vld [vmem:[%s4204_s6 + $0x360] sm:$0xff] }
 0x380   :  { %v869_v2 = vsub.f32 1.5, %v868_v1  ;;  %v1091_v1 = vld [vmem:[%s4204_s6 + $0x3b8] sm:$0xff] }
 0x381   :  { %1287 = vmatpush.msra.mxu0 %v1091_v1 }
 0x382   :  { %v870_v3 = vmul.f32 %v1983_v62, %v869_v2  ;;  %v1087_v2 = vld [vmem:[%s4204_s6 + $0x398] sm:$0xff] }
 0x384   :  { %v874_v7 = vsel %vm873_vm5, %v1983_v62, %v870_v3  ;;  %v1090_v62 = vld [vmem:[%s4204_s6 + $0x3b0] sm:$0xff]  ;;  %v1031_v3 = vld [vmem:[%s4204_s6 + $0x1d8] sm:$0xff] }
 0x385   :  { %v875_v9 = vmul.f32 %v874_v7, %v3166_v22  ;;  %v876_v10 = vmul.f32 %v874_v7, %v3168_v23  ;;  %v1113_v22 = vld [vmem:[%s4204_s6 + $0x468] sm:$0xff]  ;;  %v1110_v23 = vld [vmem:[%s4204_s6 + $0x450] sm:$0xff]  ;;  %1227 = vmatpush.msra.mxu1 %v1090_v62  ;;  %v1084_v7 = vld [vmem:[%s4204_s6 + $0x380] sm:$0xff] }
 0x386   :  { %1159 = vmatpush.msrb.mxu3 %v1113_v22  ;;  %v1010_v22 = vld [vmem:[%s4204_s6 + $0x130] sm:$0xff] }
 0x387   :  { %v880_v17 = vmul.f32 %v878_v4, %v876_v10  ;;  %v879_v18 = vmul.f32 %v877_v6, %v875_v9  ;;  %v1077_v4 = vld [vmem:[%s4204_s6 + $0x348] sm:$0xff]  ;;  %v1088_v6 = vld [vmem:[%s4204_s6 + $0x3a0] sm:$0xff]  ;;  %v1074_v10 = vld [vmem:[%s4204_s6 + $0x330] sm:$0xff]  ;;  %1228 = vmatpush.msra.mxu1 %v1087_v2  ;;  %v1118_v2 = vperm.slane %v3511_v61, 4 }
 0x388   :  { %1160 = vmatpush.msrb.mxu3 %v1110_v23  ;;  %v1028_v9 = vld [vmem:[%s4204_s6 + $0x1c0] sm:$0xff]  ;;  %1288 = vmatpush.msra.mxu0 %v1088_v6  ;;  %v1007_v23 = vld [vmem:[%s4204_s6 + $0x118] sm:$0xff] }
 0x389   :  { %v883_v19 = vadd.f32 %v881_v12, %v879_v18  ;;  %v884_v45 = vadd.f32 %v882_v13, %v880_v17  ;;  %v1085_v12 = vld [vmem:[%s4204_s6 + $0x388] sm:$0xff]  ;;  %v1071_v18 = vld [vmem:[%s4204_s6 + $0x318] sm:$0xff]  ;;  %1229 = vmatpush.msra.mxu1 %v1084_v7 }
 0x38a   :  { %1161 = vmatpush.msrb.mxu3 %v1107_v25  ;;  %v1081_v13 = vld [vmem:[%s4204_s6 + $0x368] sm:$0xff]  ;;  %1289 = vmatpush.msra.mxu0 %v1085_v12  ;;  %v998_v25 = vld [vmem:[%s4204_s6 + $0xd0] sm:$0xff] }
 0x38b   :  { %v885_v46 = vmax.f32 %v883_v19, 0.0  ;;  %v886_v5 = vmax.f32 %v884_v45, 0.0  ;;  %v1025_v17 = vld [vmem:[%s4204_s6 + $0x1a8] sm:$0xff]  ;;  %v1082_v19 = vld [vmem:[%s4204_s6 + $0x370] sm:$0xff]  ;;  %1230 = vmatpush.msra.mxu1 %v1081_v13 }
 0x38c   :  { %1162 = vmatpush.msrb.mxu3 %v1104_v27  ;;  %v1022_v45 = vld [vmem:[%s4204_s6 + $0x190] sm:$0xff]  ;;  %1290 = vmatpush.msra.mxu0 %v1082_v19  ;;  %v995_v27 = vld [vmem:[%s4204_s6 + $0xb8] sm:$0xff] }
 0x38d   :  { %946 = vmatmul.f32.vlgmr.msra.gmra.mxu2 %v885_v46  ;;  %1959 = vmatmul.msk.f32.vlgmr.msra.gmra.mxu3 %vm756_vm3, %v886_v5  ;;  %v1068_v46 = vld [vmem:[%s4204_s6 + $0x300] sm:$0xff]  ;;  %v1019_v5 = vld [vmem:[%s4204_s6 + $0x178] sm:$0xff] }
 0x38e   :  { %1259 = vmatpush.msra.mxu2 %v1067_v20  ;;  %1163 = vmatpush.msrb.mxu3 %v1101_v33  ;;  %v1016_v20 = vld [vmem:[%s4204_s6 + $0x160] sm:$0xff] }
 0x38f   :  { %1291 = vmatpush.msra.mxu0 %v1079_v28  ;;  %v1072_v33 = vld [vmem:[%s4204_s6 + $0x320] sm:$0xff] }
 0x390   :  { %1260 = vmatpush.msra.mxu2 %v1064_v21  ;;  %1164 = vmatpush.msrb.mxu3 %v1098_v37  ;;  %v1013_v21 = vld [vmem:[%s4204_s6 + $0x148] sm:$0xff]  ;;  %v986_v37 = vld [vmem:[%s4204_s6 + $0x70] sm:$0xff] }
 0x392   :  { %1261 = vmatpush.msra.mxu2 %v1061_v24  ;;  %1165 = vmatpush.msrb.mxu3 %v1095_v42  ;;  %v1001_v24 = vld [vmem:[%s4204_s6 + $0xe8] sm:$0xff] }
 0x393   :  { %v977_v42 = vld [vmem:[%s4204_s6 + $0x28] sm:$0xff] }
 0x394   :  { %1262 = vmatpush.msra.mxu2 %v1058_v26  ;;  %1166 = vmatpush.msrb.mxu3 %v1092_v49  ;;  %v1078_v26 = vld [vmem:[%s4204_s6 + $0x350] sm:$0xff] }
 0x395   :  { %1195 = vmatmul.f32.vlgmr.msrb.gmra.mxu2 %v3099_v40  ;;  %1231 = vmatpush.msra.mxu1 %v1078_v26  ;;  %v1381_v26 = vld [vmem:[%s4203_s5 + $0x240] sm:$0xff] }
 0x396   :  { %1263 = vmatpush.msra.mxu2 %v1055_v32  ;;  %1167 = vmatpush.msrb.mxu3 %v1089_v54  ;;  %v1076_v32 = vld [vmem:[%s4204_s6 + $0x340] sm:$0xff] }
 0x397   :  { %1232 = vmatpush.msra.mxu1 %v1075_v29  ;;  %1292 = vmatpush.msra.mxu0 %v1076_v32  ;;  %v1379_v29 = vld [vmem:[%s4203_s5 + $0x230] sm:$0xff]  ;;  %v1377_v32 = vld [vmem:[%s4203_s5 + $0x220] sm:$0xff] }
 0x398   :  { %1264 = vmatpush.msra.mxu2 %v1052_v36  ;;  %1168 = vmatpush.msrb.mxu3 %v1086_v56  ;;  %v1069_v36 = vld [vmem:[%s4204_s6 + $0x308] sm:$0xff] }
 0x399   :  { %1233 = vmatpush.msra.mxu1 %v1072_v33  ;;  %1293 = vmatpush.msra.mxu0 %v1073_v35  ;;  %v1409_v33 = vld [vmem:[%s4203_s5 + $0x320] sm:$0xff]  ;;  %v1388_v35 = vld [vmem:[%s4203_s5 + $0x278] sm:$0xff] }
 0x39a   :  { %1265 = vmatpush.msra.mxu2 %v1049_v8  ;;  %1169 = vmatpush.msrb.mxu3 %v1083_v60  ;;  %v980_v8 = vld [vmem:[%s4204_s6 + $0x40] sm:$0xff] }
 0x39b   :  { %1234 = vmatpush.msra.mxu1 %v1069_v36  ;;  %1294 = vmatpush.msra.mxu0 %v1070_v38  ;;  %v1407_v38 = vld [vmem:[%s4203_s5 + $0x310] sm:$0xff] }
 0x39c   :  { %1266 = vmatpush.msra.mxu2 %v1046_v48  ;;  %1170 = vmatpush.msrb.mxu3 %v1080_v0  ;;  %v904_v48 = vpop.f32.mrf.mxu1 }
 0x39d   :  { %v925_v49 = vadd.f32 %v924_v30, %v904_v48  ;;  %1515 = vmatpush.msrb.mxu0 %v1388_v35  ;;  %v1403_v30 = vld [vmem:[%s4203_s5 + $0x2f0] sm:$0xff]  ;;  %v1369_v48 = vld [vmem:[%s4203_s5 + $0x1e0] sm:$0xff]  ;;  %v1372_v35 = vld [vmem:[%s4203_s5 + $0x1f8] sm:$0xff] }
 0x39e   :  { %1267 = vmatpush.msra.mxu2 %v1043_v52  ;;  %1171 = vmatpush.msrb.mxu3 %v1077_v4  ;;  %v970_v52 = vperm.slane %v3105_v43, 3 }
 0x3a0   :  { %1268 = vmatpush.msra.mxu2 %v1040_v41  ;;  %1172 = vmatpush.msrb.mxu3 %v1074_v10  ;;  %v1136_v41 = vpop.f32.mrf.mxu0 }
 0x3a1   :  { %v1137_v62 = vadd.f32 %v1136_v41, %v1116_v57 }
 0x3a2   :  { %1269 = vmatpush.msra.mxu2 %v1037_v59  ;;  %1173 = vmatpush.msrb.mxu3 %v1071_v18 }
 0x3a4   :  { %1270 = vmatpush.msra.mxu2 %v1034_v63  ;;  %1174 = vmatpush.msrb.mxu3 %v1068_v46  ;;  %v1156_v56 = vpop.f32.mrf.mxu1  ;;  %v2035_v46 = vmov 384.0  }
 0x3a5   :  { %v1157_v1 = vadd.f32 %v1156_v56, %v1137_v62  ;;  %1984 = vrcp.f32 %v2035_v46  ;;  %v1443_v46 = vld [vmem:[%s4203_s5 + $0x430] sm:$0xff] }
 0x3a6   :  { %1271 = vmatpush.msra.mxu2 %v1031_v3  ;;  %1239 = vmatpush.msra.mxu3 %v1019_v5 }
 0x3a8   :  { %1272 = vmatpush.msra.mxu2 %v1028_v9  ;;  %1240 = vmatpush.msra.mxu3 %v1016_v20  ;;  %v1216_v0 = vpop.f32.mrf.mxu0  ;;  %v1387_v20 = vld [vmem:[%s4203_s5 + $0x270] sm:$0xff] }
 0x3a9   :  { %1455 = vmatpush.msrb.mxu1 %v1387_v20  ;;  %v1420_v20 = vld [vmem:[%s4203_s5 + $0x378] sm:$0xff] }
 0x3aa   :  { %1273 = vmatpush.msra.mxu2 %v1025_v17  ;;  %1241 = vmatpush.msra.mxu3 %v1013_v21  ;;  %v1419_v21 = vld [vmem:[%s4203_s5 + $0x370] sm:$0xff] }
 0x3ab   :  { %v1985_v5 = vpop.eup %1984 }
 0x3ac   :  { %1274 = vmatpush.msra.mxu2 %v1022_v45  ;;  %1242 = vmatpush.msra.mxu3 %v1010_v22  ;;  %v1385_v22 = vld [vmem:[%s4203_s5 + $0x260] sm:$0xff]  ;;  %vm1311_vm6 = vweird.f32 %v1985_v5 }
 0x3ad   :  { %1275 = vmatmul.f32.vlgmr.msra.gmra.mxu2 %v3115_v53  ;;  %v1004_v53 = vld [vmem:[%s4204_s6 + $0x100] sm:$0xff]  ;;  %1456 = vmatpush.msrb.mxu1 %v1385_v22 }
 0x3ae   :  { %1243 = vmatpush.msra.mxu3 %v1007_v23  ;;  %v1417_v23 = vld [vmem:[%s4203_s5 + $0x360] sm:$0xff] }
 0x3af   :  { %v1441_v22 = vld [vmem:[%s4203_s5 + $0x420] sm:$0xff] }
 0x3b0   :  { %1244 = vmatpush.msra.mxu3 %v1004_v53  ;;  %v1307_v53 = vmul.f32 384.0, %v1985_v5 }
 0x3b2   :  { %1245 = vmatpush.msra.mxu3 %v1001_v24  ;;  %v1383_v24 = vld [vmem:[%s4203_s5 + $0x250] sm:$0xff]  ;;  %v1308_v28 = vsub.f32 1.0, %v1307_v53  ;;  %v1418_v53 = vld [vmem:[%s4203_s5 + $0x368] sm:$0xff] }
 0x3b3   :  { %1457 = vmatpush.msrb.mxu1 %v1383_v24  ;;  %v1450_v24 = vld [vmem:[%s4203_s5 + $0x468] sm:$0xff] }
 0x3b4   :  { %1246 = vmatpush.msra.mxu3 %v998_v25  ;;  %v1415_v25 = vld [vmem:[%s4203_s5 + $0x350] sm:$0xff]  ;;  %v1309_v36 = vmul.f32 %v1985_v5, %v1308_v28  ;;  %v1448_v28 = vld [vmem:[%s4203_s5 + $0x458] sm:$0xff] }
 0x3b5   :  { %1458 = vmatpush.msrb.mxu1 %v1381_v26  ;;  %v1376_v26 = vld [vmem:[%s4203_s5 + $0x218] sm:$0xff] }
 0x3b6   :  { %1247 = vmatpush.msra.mxu3 %v995_v27  ;;  %v1413_v27 = vld [vmem:[%s4203_s5 + $0x340] sm:$0xff] }
 0x3b7   :  { %1459 = vmatpush.msrb.mxu1 %v1379_v29  ;;  %v1437_v29 = vld [vmem:[%s4203_s5 + $0x400] sm:$0xff] }
 0x3b8   :  { %1248 = vmatpush.msra.mxu3 %v992_v31  ;;  %v1411_v31 = vld [vmem:[%s4203_s5 + $0x330] sm:$0xff] }
 0x3b9   :  { %1460 = vmatpush.msrb.mxu1 %v1377_v32  ;;  %v1414_v32 = vld [vmem:[%s4203_s5 + $0x348] sm:$0xff] }
 0x3ba   :  { %1249 = vmatpush.msra.mxu3 %v989_v34  ;;  %v1451_v34 = vld [vmem:[%s4203_s5 + $0x470] sm:$0xff] }
 0x3bb   :  { %1495 = vmatpush.msrb.mxu2 %v1451_v34  ;;  %v1435_v34 = vld [vmem:[%s4203_s5 + $0x3f0] sm:$0xff] }
 0x3bc   :  { %1250 = vmatpush.msra.mxu3 %v986_v37  ;;  %v1375_v37 = vld [vmem:[%s4203_s5 + $0x210] sm:$0xff] }
 0x3bd   :  { %1461 = vmatpush.msrb.mxu1 %v1375_v37  ;;  %v1444_v37 = vld [vmem:[%s4203_s5 + $0x438] sm:$0xff] }
 0x3be   :  { %1251 = vmatpush.msra.mxu3 %v983_v39  ;;  %v1373_v39 = vld [vmem:[%s4203_s5 + $0x200] sm:$0xff] }
 0x3bf   :  { %1462 = vmatpush.msrb.mxu1 %v1373_v39  ;;  %v1370_v39 = vld [vmem:[%s4203_s5 + $0x1e8] sm:$0xff] }
 0x3c0   :  { %1252 = vmatpush.msra.mxu3 %v980_v8  ;;  %v1405_v8 = vld [vmem:[%s4203_s5 + $0x300] sm:$0xff] }
 0x3c2   :  { %1253 = vmatpush.msra.mxu3 %v977_v42  ;;  %v1310_v42 = vadd.f32 %v1985_v5, %v1309_v36  ;;  %v1412_v36 = vld [vmem:[%s4203_s5 + $0x338] sm:$0xff] }
 0x3c4   :  { %1254 = vmatpush.msra.mxu3 %v974_v44  ;;  %v1371_v44 = vld [vmem:[%s4203_s5 + $0x1f0] sm:$0xff] }
 0x3c5   :  { %1463 = vmatpush.msrb.mxu1 %v1371_v44  ;;  %v1431_v44 = vld [vmem:[%s4203_s5 + $0x3d0] sm:$0xff] }
 0x3c7   :  { %1464 = vmatpush.msrb.mxu1 %v1369_v48  ;;  %v1408_v48 = vld [vmem:[%s4203_s5 + $0x318] sm:$0xff] }
 0x410   :  { %v947_v50 = vpop.f32.mrf.mxu2  ;;  %v967_v54 = vpop.f32.mrf.mxu3 }
 0x411   :  { %v948_v51 = vadd.f32 %v947_v50, %v925_v49  ;;  %v1401_v49 = vld [vmem:[%s4203_s5 + $0x2e0] sm:$0xff]  ;;  %v3592_v50 = vsel %vm1311_vm6, %v1985_v5, %v1310_v42  ;;  %v1380_v5 = vld [vmem:[%s4203_s5 + $0x238] sm:$0xff]  ;;  %v1442_v42 = vld [vmem:[%s4203_s5 + $0x428] sm:$0xff] }
 0x413   :  { %v968_v55 = vadd.f32 %v967_v54, %v948_v51  ;;  %v1367_v51 = vld [vmem:[%s4203_s5 + $0x1d0] sm:$0xff] }
 0x414   :  { %1465 = vmatpush.msrb.mxu1 %v1367_v51  ;;  %v1429_v51 = vld [vmem:[%s4203_s5 + $0x3c0] sm:$0xff] }
 0x415   :  { %v971_v15 = vadd.f32 %v970_v52, %v968_v55  ;;  %v1399_v52 = vld [vmem:[%s4203_s5 + $0x2d0] sm:$0xff]  ;;  %v1365_v55 = vld [vmem:[%s4203_s5 + $0x1c0] sm:$0xff] }
 0x416   :  { %1466 = vmatpush.msrb.mxu1 %v1365_v55  ;;  %v1438_v55 = vld [vmem:[%s4203_s5 + $0x408] sm:$0xff] }
 0x417   :  { %1175 = vmatmul.f32.vlgmr.msrb.gmra.mxu3 %v971_v15  ;;  %1235 = vmatmul.f32.vlgmr.msra.gmra.mxu1 %v971_v15 }
 0x418   :  { %1295 = vmatmul.f32.vlgmr.msra.gmra.mxu0 %v971_v15  ;;  %v1196_v59 = vpop.f32.mrf.mxu2  ;;  %1475 = vmatpush.msrb.mxu3 %v1419_v21  ;;  %v1397_v15 = vld [vmem:[%s4203_s5 + $0x2c0] sm:$0xff]  ;;  %v1452_v21 = vld [vmem:[%s4203_s5 + $0x478] sm:$0xff] }
 0x419   :  { %v1197_v63 = vadd.f32 %v1196_v59, %v1117_v58 }
 0x41a   :  { %1476 = vmatpush.msrb.mxu3 %v1417_v23  ;;  %v1378_v23 = vld [vmem:[%s4203_s5 + $0x228] sm:$0xff] }
 0x41b   :  { %v1217_v3 = vadd.f32 %v1216_v0, %v1197_v63 }
 0x41c   :  { %1477 = vmatpush.msrb.mxu3 %v1415_v25  ;;  %v1439_v25 = vld [vmem:[%s4203_s5 + $0x410] sm:$0xff] }
 0x41e   :  { %1478 = vmatpush.msrb.mxu3 %v1413_v27  ;;  %v1416_v27 = vld [vmem:[%s4203_s5 + $0x358] sm:$0xff] }
 0x41f   :  { %1255 = vmatmul.f32.vlgmr.msra.gmra.mxu3 %v3099_v40 }
 0x420   :  { %1479 = vmatpush.msrb.mxu3 %v1411_v31  ;;  %v1374_v31 = vld [vmem:[%s4203_s5 + $0x208] sm:$0xff] }
 0x422   :  { %1480 = vmatpush.msrb.mxu3 %v1409_v33  ;;  %v1446_v33 = vld [vmem:[%s4203_s5 + $0x448] sm:$0xff] }
 0x424   :  { %1481 = vmatpush.msrb.mxu3 %v1407_v38  ;;  %v1433_v38 = vld [vmem:[%s4203_s5 + $0x3e0] sm:$0xff] }
 0x426   :  { %1482 = vmatpush.msrb.mxu3 %v1405_v8  ;;  %v1410_v8 = vld [vmem:[%s4203_s5 + $0x328] sm:$0xff] }
 0x428   :  { %1483 = vmatpush.msrb.mxu3 %v1403_v30  ;;  %v1368_v30 = vld [vmem:[%s4203_s5 + $0x1d8] sm:$0xff] }
 0x42a   :  { %1484 = vmatpush.msrb.mxu3 %v1401_v49  ;;  %v1440_v49 = vld [vmem:[%s4203_s5 + $0x418] sm:$0xff] }
 0x42c   :  { %1485 = vmatpush.msrb.mxu3 %v1399_v52  ;;  %v1366_v52 = vld [vmem:[%s4203_s5 + $0x1c8] sm:$0xff] }
 0x42e   :  { %1486 = vmatpush.msrb.mxu3 %v1397_v15  ;;  %v1427_v15 = vld [vmem:[%s4203_s5 + $0x3b0] sm:$0xff] }
 0x430   :  { %v1276_v7 = vpop.f32.mrf.mxu2 }
 0x494   :  { %v1236_v40 = vpop.f32.mrf.mxu1 }
 0x495   :  { %v3516_v6 = vadd.f32 %v1236_v40, %v1217_v3  ;;  %v1296_v12 = vpop.f32.mrf.mxu0  ;;  %v1363_v3 = vld [vmem:[%s4203_s5 + $0x1b0] sm:$0xff] }
 0x496   :  { %1467 = vmatpush.msrb.mxu1 %v1363_v3  ;;  %v1400_v3 = vld [vmem:[%s4203_s5 + $0x2d8] sm:$0xff] }
 0x497   :  { %v1300_v13 = vsel %vm401_vm4, %v3516_v6, 0.0 }
 0x49a   :  { %v1176_v60 = vpop.f32.mrf.mxu3 }
 0x49b   :  { %v3514_v4 = vadd.f32 %v1176_v60, %v1157_v1 }
 0x49d   :  { %v1299_v9 = vsel %vm401_vm4, %v3514_v4, 0.0 }
 0x49e   :  { %v1301_v18 = vadd.f32 %v1300_v13, %v1299_v9  ;;  %v1447_v9 = vld [vmem:[%s4203_s5 + $0x450] sm:$0xff] }
 0x49f   :  { %v1391_v13 = vld [vmem:[%s4203_s5 + $0x290] sm:$0xff] }
 0x4a2   :  { %v1256_v43 = vpop.f32.mrf.mxu3 }
 0x4a3   :  { %v1257_v47 = vadd.f32 %v1256_v43, %v1118_v2  ;;  %v1449_v43 = vld [vmem:[%s4203_s5 + $0x460] sm:$0xff] }
 0x4a4   :  { %1496 = vmatpush.msrb.mxu2 %v1449_v43  ;;  %v1421_v43 = vld [vmem:[%s4203_s5 + $0x380] sm:$0xff] }
 0x4a5   :  { %v1277_v10 = vadd.f32 %v1276_v7, %v1257_v47  ;;  %v1361_v47 = vld [vmem:[%s4203_s5 + $0x1a0] sm:$0xff] }
 0x4a6   :  { %v1393_v7 = vld [vmem:[%s4203_s5 + $0x2a0] sm:$0xff]  ;;  %1468 = vmatpush.msrb.mxu1 %v1361_v47  ;;  %1497 = vmatpush.msrb.mxu2 %v1447_v9  ;;  %v1398_v47 = vld [vmem:[%s4203_s5 + $0x2c8] sm:$0xff] }
 0x4a7   :  { %v3522_v17 = vadd.f32 %v1296_v12, %v1277_v10  ;;  %v1384_v10 = vld [vmem:[%s4203_s5 + $0x258] sm:$0xff]  ;;  %v1359_v12 = vld [vmem:[%s4203_s5 + $0x190] sm:$0xff] }
 0x4a8   :  { %1469 = vmatpush.msrb.mxu1 %v1359_v12  ;;  %v1428_v12 = vld [vmem:[%s4203_s5 + $0x3b8] sm:$0xff] }
 0x4a9   :  { %v1302_v19 = vsel %vm401_vm4, %v3522_v17, 0.0 }
 0x4aa   :  { %v1303_v45 = vadd.f32 %v1302_v19, %v1301_v18  ;;  %v1382_v18 = vld [vmem:[%s4203_s5 + $0x248] sm:$0xff]  ;;  %v1357_v19 = vld [vmem:[%s4203_s5 + $0x180] sm:$0xff] }
 0x4ab   :  { %1470 = vmatpush.msrb.mxu1 %v1357_v19 }
 0x4ac   :  { %1304 = vadd.xlane.f32.xlu0 %v1303_v45  ;;  %v1389_v45 = vld [vmem:[%s4203_s5 + $0x280] sm:$0xff] }
 0x4ad   :  { %1535 = vmatpush.msra.mxu1 %v1420_v20  ;;  %v1607_v20 = vld [vmem:[%s4203_s5 + $0x570] sm:$0xff] }
 0x4af   :  { %1536 = vmatpush.msra.mxu1 %v1418_v53 }
 0x4b1   :  { %1537 = vmatpush.msra.mxu1 %v1416_v27 }
 0x4b3   :  { %1538 = vmatpush.msra.mxu1 %v1414_v32 }
 0x4b5   :  { %1539 = vmatpush.msra.mxu1 %v1412_v36 }
 0x4b7   :  { %1540 = vmatpush.msra.mxu1 %v1410_v8 }
 0x4b9   :  { %1541 = vmatpush.msra.mxu1 %v1408_v48 }
 0x51f   :  { %v1305_v54 = vpop.xlane.xlu0 %1304 }
 0x520   :  { %v1313_v41 = vmul.f32 %v3592_v50, %v1305_v54  ;;  %v1406_v54 = vld [vmem:[%s4203_s5 + $0x308] sm:$0xff] }
 0x521   :  { %1542 = vmatpush.msra.mxu1 %v1406_v54 }
 0x522   :  { %v3608_v56 = vsub.f32 %v3514_v4, %v1313_v41  ;;  %v3611_v57 = vsub.f32 %v3516_v6, %v1313_v41  ;;  %v3614_v58 = vsub.f32 %v3522_v17, %v1313_v41  ;;  %v1395_v4 = vld [vmem:[%s4203_s5 + $0x2b0] sm:$0xff]  ;;  %v1386_v6 = vld [vmem:[%s4203_s5 + $0x268] sm:$0xff]  ;;  %v1445_v17 = vld [vmem:[%s4203_s5 + $0x440] sm:$0xff] }
 0x523   :  { %1487 = vmatpush.msrb.mxu3 %v1395_v4  ;;  %1516 = vmatpush.msrb.mxu0 %v1386_v6  ;;  %v1364_v41 = vld [vmem:[%s4203_s5 + $0x1b8] sm:$0xff]  ;;  %v1358_v6 = vld [vmem:[%s4203_s5 + $0x188] sm:$0xff] }
 0x524   :  { %v1317_v59 = vmul.f32 %v3608_v56, %v3608_v56  ;;  %v1318_v60 = vmul.f32 %v3611_v57, %v3611_v57  ;;  %v1319_v62 = vmul.f32 %v3614_v58, %v3614_v58  ;;  %1498 = vmatpush.msrb.mxu2 %v1445_v17  ;;  %v1432_v4 = vld [vmem:[%s4203_s5 + $0x3d8] sm:$0xff]  ;;  %v1394_v17 = vld [vmem:[%s4203_s5 + $0x2a8] sm:$0xff] }
 0x525   :  { %1488 = vmatpush.msrb.mxu3 %v1393_v7  ;;  %1517 = vmatpush.msrb.mxu0 %v1384_v10  ;;  %v1430_v7 = vld [vmem:[%s4203_s5 + $0x3c8] sm:$0xff]  ;;  %v1396_v10 = vld [vmem:[%s4203_s5 + $0x2b8] sm:$0xff] }
 0x526   :  { %v1320_v63 = vsel %vm401_vm4, %v1317_v59, 0.0  ;;  %v1321_v0 = vsel %vm401_vm4, %v1318_v60, 0.0  ;;  %v1323_v2 = vsel %vm401_vm4, %v1319_v62, 0.0  ;;  %1499 = vmatpush.msrb.mxu2 %v1443_v46  ;;  %v1404_v59 = vld [vmem:[%s4203_s5 + $0x2f8] sm:$0xff]  ;;  %v1425_v62 = vld [vmem:[%s4203_s5 + $0x3a0] sm:$0xff] }
 0x527   :  { %v1322_v1 = vadd.f32 %v1321_v0, %v1320_v63  ;;  %1489 = vmatpush.msrb.mxu3 %v1391_v13  ;;  %1518 = vmatpush.msrb.mxu0 %v1382_v18  ;;  %v1436_v60 = vld [vmem:[%s4203_s5 + $0x3f8] sm:$0xff]  ;;  %v1362_v63 = vld [vmem:[%s4203_s5 + $0x1a8] sm:$0xff] }
 0x528   :  { %1500 = vmatpush.msrb.mxu2 %v1441_v22  ;;  %v1402_v0 = vld [vmem:[%s4203_s5 + $0x2e8] sm:$0xff]  ;;  %1543 = vmatpush.msra.mxu1 %v1404_v59  ;;  %v1424_v46 = vld [vmem:[%s4203_s5 + $0x398] sm:$0xff]  ;;  %v1603_v22 = vld [vmem:[%s4203_s5 + $0x550] sm:$0xff] }
 0x529   :  { %v1324_v40 = vadd.f32 %v1323_v2, %v1322_v1  ;;  %1490 = vmatpush.msrb.mxu3 %v1389_v45  ;;  %1519 = vmatpush.msrb.mxu0 %v1380_v5  ;;  %v1434_v1 = vld [vmem:[%s4203_s5 + $0x3e8] sm:$0xff]  ;;  %v1423_v2 = vld [vmem:[%s4203_s5 + $0x390] sm:$0xff]  ;;  %v1392_v45 = vld [vmem:[%s4203_s5 + $0x298] sm:$0xff] }
 0x52a   :  { %1501 = vmatpush.msrb.mxu2 %v1439_v25  ;;  %1544 = vmatpush.msra.mxu1 %v1402_v0  ;;  %v1426_v18 = vld [vmem:[%s4203_s5 + $0x3a8] sm:$0xff]  ;;  %v1600_v0 = vld [vmem:[%s4203_s5 + $0x538] sm:$0xff] }
 0x52b   :  { %1325 = vadd.xlane.f32.xlu1 %v1324_v40  ;;  %1555 = vmatpush.msra.mxu3 %v1452_v21  ;;  %v1360_v40 = vld [vmem:[%s4203_s5 + $0x198] sm:$0xff]  ;;  %v1422_v5 = vld [vmem:[%s4203_s5 + $0x388] sm:$0xff]  ;;  %v1605_v21 = vld [vmem:[%s4203_s5 + $0x560] sm:$0xff] }
 0x52c   :  { %1520 = vmatpush.msrb.mxu0 %v1378_v23  ;;  %1502 = vmatpush.msrb.mxu2 %v1437_v29 }
 0x52d   :  { %1556 = vmatpush.msra.mxu3 %v1450_v24  ;;  %1545 = vmatpush.msra.mxu1 %v1400_v3  ;;  %v1601_v24 = vld [vmem:[%s4203_s5 + $0x540] sm:$0xff]  ;;  %v1592_v3 = vld [vmem:[%s4203_s5 + $0x4f8] sm:$0xff] }
 0x52e   :  { %1521 = vmatpush.msrb.mxu0 %v1376_v26  ;;  %1503 = vmatpush.msrb.mxu2 %v1435_v34  ;;  %v1599_v26 = vld [vmem:[%s4203_s5 + $0x530] sm:$0xff]  ;;  %v1344_v34 = vperm.slane %v3511_v61, 5 }
 0x52f   :  { %1557 = vmatpush.msra.mxu3 %v1448_v28  ;;  %1546 = vmatpush.msra.mxu1 %v1398_v47  ;;  %v1597_v28 = vld [vmem:[%s4203_s5 + $0x520] sm:$0xff]  ;;  %v1588_v47 = vld [vmem:[%s4203_s5 + $0x4d8] sm:$0xff] }
 0x530   :  { %1522 = vmatpush.msrb.mxu0 %v1374_v31  ;;  %1504 = vmatpush.msrb.mxu2 %v1433_v38  ;;  %v1595_v31 = vld [vmem:[%s4203_s5 + $0x510] sm:$0xff] }
 0x531   :  { %1558 = vmatpush.msra.mxu3 %v1446_v33  ;;  %1547 = vmatpush.msra.mxu1 %v1396_v10  ;;  %v1593_v33 = vld [vmem:[%s4203_s5 + $0x500] sm:$0xff]  ;;  %v1586_v10 = vld [vmem:[%s4203_s5 + $0x4c8] sm:$0xff] }
 0x532   :  { %1523 = vmatpush.msrb.mxu0 %v1372_v35  ;;  %1505 = vmatpush.msrb.mxu2 %v1431_v44  ;;  %v3864_v35 = vld [vmem:[%s4205_s7 + $0x18] sm:$0xff]  ;;  %v1591_v44 = vld [vmem:[%s4203_s5 + $0x4f0] sm:$0xff] }
 0x533   :  { %1559 = vmatpush.msra.mxu3 %v1444_v37  ;;  %1548 = vmatpush.msra.mxu1 %v1394_v17  ;;  %v1342_v36 = vperm.slane %v3864_v35, 5  ;;  %v3870_v37 = vld [vmem:[%s4205_s7 + $0x20] sm:$0xff] }
 0x534   :  { %1524 = vmatpush.msrb.mxu0 %v1370_v39  ;;  %1506 = vmatpush.msrb.mxu2 %v1429_v51  ;;  %v1343_v38 = vperm.slane %v3870_v37, 5  ;;  %v1350_v39 = vperm.slane %v3511_v61, 6  ;;  %v1349_v51 = vperm.slane %v3870_v37, 6  ;;  %v1621_v17 = vld [vmem:[%s4203_s5 + $0x5e0] sm:$0xff] }
 0x535   :  { %1560 = vmatpush.msra.mxu3 %v1442_v42  ;;  %1549 = vmatpush.msra.mxu1 %v1392_v45  ;;  %v1348_v42 = vperm.slane %v3864_v35, 6  ;;  %v1581_v45 = vld [vmem:[%s4203_s5 + $0x4a0] sm:$0xff] }
 0x536   :  { %1525 = vmatpush.msrb.mxu0 %v1368_v30  ;;  %1507 = vmatpush.msrb.mxu2 %v1427_v15 }
 0x537   :  { %1561 = vmatpush.msra.mxu3 %v1440_v49 }
 0x538   :  { %1526 = vmatpush.msrb.mxu0 %v1366_v52  ;;  %1508 = vmatpush.msrb.mxu2 %v1425_v62 }
 0x539   :  { %1562 = vmatpush.msra.mxu3 %v1438_v55 }
 0x53a   :  { %1527 = vmatpush.msrb.mxu0 %v1364_v41  ;;  %1509 = vmatpush.msrb.mxu2 %v1423_v2  ;;  %v1596_v2 = vld [vmem:[%s4203_s5 + $0x518] sm:$0xff] }
 0x53b   :  { %1563 = vmatpush.msra.mxu3 %v1436_v60 }
 0x53c   :  { %1528 = vmatpush.msrb.mxu0 %v1362_v63  ;;  %1510 = vmatpush.msrb.mxu2 %v1421_v43  ;;  %v1602_v63 = vld [vmem:[%s4203_s5 + $0x548] sm:$0xff] }
 0x53d   :  { %1564 = vmatpush.msra.mxu3 %v1434_v1  ;;  %v1598_v1 = vld [vmem:[%s4203_s5 + $0x528] sm:$0xff] }
 0x53e   :  { %1529 = vmatpush.msrb.mxu0 %v1360_v40  ;;  %1630 = vmatpush.msra.mxu2 %v1607_v20  ;;  %v1594_v40 = vld [vmem:[%s4203_s5 + $0x508] sm:$0xff]  ;;  %v1579_v20 = vld [vmem:[%s4203_s5 + $0x490] sm:$0xff] }
 0x53f   :  { %1565 = vmatpush.msra.mxu3 %v1432_v4  ;;  %v1589_v4 = vld [vmem:[%s4203_s5 + $0x4e0] sm:$0xff]  ;;  %v1590_v43 = vld [vmem:[%s4203_s5 + $0x4e8] sm:$0xff] }
 0x540   :  { %1530 = vmatpush.msrb.mxu0 %v1358_v6  ;;  %1631 = vmatpush.msra.mxu2 %v1605_v21  ;;  %v1587_v6 = vld [vmem:[%s4203_s5 + $0x4d0] sm:$0xff]  ;;  %v1617_v21 = vld [vmem:[%s4203_s5 + $0x5c0] sm:$0xff] }
 0x541   :  { %1566 = vmatpush.msra.mxu3 %v1430_v7  ;;  %v1585_v7 = vld [vmem:[%s4203_s5 + $0x4c0] sm:$0xff] }
 0x542   :  { %1632 = vmatpush.msra.mxu2 %v1603_v22  ;;  %v1580_v22 = vld [vmem:[%s4203_s5 + $0x498] sm:$0xff] }
 0x543   :  { %1567 = vmatpush.msra.mxu3 %v1428_v12  ;;  %v1624_v12 = vld [vmem:[%s4203_s5 + $0x5f8] sm:$0xff] }
 0x544   :  { %1633 = vmatpush.msra.mxu2 %v1601_v24  ;;  %v1615_v24 = vld [vmem:[%s4203_s5 + $0x5b0] sm:$0xff] }
 0x545   :  { %1568 = vmatpush.msra.mxu3 %v1426_v18  ;;  %v1584_v18 = vld [vmem:[%s4203_s5 + $0x4b8] sm:$0xff] }
 0x546   :  { %1634 = vmatpush.msra.mxu2 %v1599_v26  ;;  %v1616_v26 = vld [vmem:[%s4203_s5 + $0x5b8] sm:$0xff] }
 0x547   :  { %1569 = vmatpush.msra.mxu3 %v1424_v46  ;;  %v1619_v46 = vld [vmem:[%s4203_s5 + $0x5d0] sm:$0xff] }
 0x548   :  { %1635 = vmatpush.msra.mxu2 %v1597_v28  ;;  %v1614_v28 = vld [vmem:[%s4203_s5 + $0x5a8] sm:$0xff] }
 0x549   :  { %1570 = vmatpush.msra.mxu3 %v1422_v5  ;;  %v1620_v5 = vld [vmem:[%s4203_s5 + $0x5d8] sm:$0xff] }
 0x54a   :  { %1636 = vmatpush.msra.mxu2 %v1595_v31  ;;  %v1612_v31 = vld [vmem:[%s4203_s5 + $0x598] sm:$0xff] }
 0x54c   :  { %1637 = vmatpush.msra.mxu2 %v1593_v33  ;;  %v1610_v33 = vld [vmem:[%s4203_s5 + $0x588] sm:$0xff] }
 0x54e   :  { %1638 = vmatpush.msra.mxu2 %v1591_v44 }
 0x550   :  { %1639 = vmatpush.msra.mxu2 %v1589_v4 }
 0x552   :  { %1640 = vmatpush.msra.mxu2 %v1587_v6 }
 0x554   :  { %1641 = vmatpush.msra.mxu2 %v1585_v7 }
 0x59e   :  { %v1326_v9 = vpop.xlane.xlu1 %1325 }
 0x59f   :  { %v1327_v13 = vmul.f32 %v1326_v9, %v3592_v50  ;;  %v1390_v50 = vld [vmem:[%s4203_s5 + $0x288] sm:$0xff]  ;;  %v1623_v9 = vld [vmem:[%s4203_s5 + $0x5f0] sm:$0xff] }
 0x5a0   :  { %1550 = vmatpush.msra.mxu1 %v1390_v50  ;;  %1658 = vmatpush.msra.mxu0 %v1623_v9  ;;  %v1582_v50 = vld [vmem:[%s4203_s5 + $0x4a8] sm:$0xff] }
 0x5a1   :  { %v1328_v19 = vadd.f32 1e-05, %v1327_v13  ;;  %v1583_v13 = vld [vmem:[%s4203_s5 + $0x4b0] sm:$0xff] }
 0x5a2   :  { %1642 = vmatpush.msra.mxu2 %v1583_v13  ;;  %1659 = vmatpush.msra.mxu0 %v1621_v17  ;;  %v1777_v17 = vld [vmem:[%s4203_s5 + $0x6e0] sm:$0xff] }
 0x5a3   :  { %1986 = vrsqrt.f32 %v1328_v19  ;;  %vm1335_vm8 = vweird.f32 %v1328_v19 }
 0x5a4   :  { %1643 = vmatpush.msra.mxu2 %v1581_v45  ;;  %1660 = vmatpush.msra.mxu0 %v1619_v46  ;;  %v1776_v45 = vld [vmem:[%s4203_s5 + $0x6d8] sm:$0xff]  ;;  %v1773_v46 = vld [vmem:[%s4203_s5 + $0x6c0] sm:$0xff] }
 0x5a6   :  { %1644 = vmatpush.msra.mxu2 %v1579_v20  ;;  %1661 = vmatpush.msra.mxu0 %v1617_v21  ;;  %v1772_v20 = vld [vmem:[%s4203_s5 + $0x6b8] sm:$0xff]  ;;  %v1795_v21 = vld [vmem:[%s4203_s5 + $0x770] sm:$0xff] }
 0x5a8   :  { %1662 = vmatpush.msra.mxu0 %v1615_v24  ;;  %v1767_v24 = vld [vmem:[%s4203_s5 + $0x690] sm:$0xff] }
 0x5a9   :  { %v1987_v23 = vpop.eup %1986 }
 0x5aa   :  { %v1330_v53 = vmul.f32 %v1987_v23, %v1328_v19  ;;  %vm1336_vm7 = vweird.f32 %v1987_v23  ;;  %v1622_v19 = vld [vmem:[%s4203_s5 + $0x5e8] sm:$0xff] }
 0x5ab   :  { %vm1337_vm9 = vmor %vm1335_vm8, %vm1336_vm7 }
 0x5ac   :  { %v1331_v25 = vmul.f32 %v1987_v23, %v1330_v53  ;;  %v1577_v53 = vld [vmem:[%s4203_s5 + $0x480] sm:$0xff] }
 0x5ad   :  { %1645 = vmatpush.msra.mxu2 %v1577_v53  ;;  %v1793_v53 = vld [vmem:[%s4203_s5 + $0x760] sm:$0xff] }
 0x5ae   :  { %v1332_v27 = vmul.f32 0.5, %v1331_v25  ;;  %v1578_v25 = vld [vmem:[%s4203_s5 + $0x488] sm:$0xff] }
 0x5b0   :  { %v1333_v29 = vsub.f32 1.5, %v1332_v27  ;;  %v1613_v27 = vld [vmem:[%s4203_s5 + $0x5a0] sm:$0xff] }
 0x5b1   :  { %1663 = vmatpush.msra.mxu0 %v1613_v27  ;;  %v1765_v27 = vld [vmem:[%s4203_s5 + $0x680] sm:$0xff] }
 0x5b2   :  { %v1334_v32 = vmul.f32 %v1987_v23, %v1333_v29  ;;  %v1611_v29 = vld [vmem:[%s4203_s5 + $0x590] sm:$0xff] }
 0x5b3   :  { %1664 = vmatpush.msra.mxu0 %v1611_v29  ;;  %v1789_v29 = vld [vmem:[%s4203_s5 + $0x740] sm:$0xff] }
 0x5b4   :  { %v1338_v8 = vsel %vm1337_vm9, %v1987_v23, %v1334_v32  ;;  %v1618_v23 = vld [vmem:[%s4203_s5 + $0x5c8] sm:$0xff]  ;;  %v1609_v32 = vld [vmem:[%s4203_s5 + $0x580] sm:$0xff] }
 0x5b5   :  { %v1339_v30 = vmul.f32 %v1338_v8, %v3608_v56  ;;  %v1340_v48 = vmul.f32 %v1338_v8, %v3611_v57  ;;  %v1341_v49 = vmul.f32 %v1338_v8, %v3614_v58  ;;  %v1608_v56 = vld [vmem:[%s4203_s5 + $0x578] sm:$0xff]  ;;  %v1606_v57 = vld [vmem:[%s4203_s5 + $0x568] sm:$0xff]  ;;  %1665 = vmatpush.msra.mxu0 %v1609_v32  ;;  %v1454_v8 = vperm.slane %v3870_v37, 7 }
 0x5b6   :  { %v1604_v58 = vld [vmem:[%s4203_s5 + $0x558] sm:$0xff] }
 0x5b7   :  { %v1345_v52 = vmul.f32 %v1342_v36, %v1339_v30  ;;  %v1346_v54 = vmul.f32 %v1343_v38, %v1340_v48  ;;  %v1347_v55 = vmul.f32 %v1344_v34, %v1341_v49  ;;  %v1453_v36 = vperm.slane %v3864_v35, 7  ;;  %v4008_v35 = vld [vmem:[%s4205_s7 + $0x30] sm:$0xff]  ;;  %v1764_v32 = vld [vmem:[%s4203_s5 + $0x678] sm:$0xff] }
 0x5b8   :  { %v1625_v37 = vperm.slane %v4008_v35, 0 }
 0x5b9   :  { %v1351_v61 = vadd.f32 %v1348_v42, %v1345_v52  ;;  %v1352_v15 = vadd.f32 %v1349_v51, %v1346_v54  ;;  %v1353_v41 = vadd.f32 %v1350_v39, %v1347_v55 }
 0x5bb   :  { %v1354_v59 = vmax.f32 %v1351_v61, 0.0  ;;  %v1355_v60 = vmax.f32 %v1352_v15, 0.0  ;;  %v1356_v62 = vmax.f32 %v1353_v41, 0.0 }
 0x5bd   :  { %1471 = vmatmul.f32.vlgmr.msrb.gmra.mxu1 %v1354_v59  ;;  %1491 = vmatmul.f32.vlgmr.msrb.gmra.mxu3 %v1355_v60 }
 0x5be   :  { %1511 = vmatmul.f32.vlgmr.msrb.gmra.mxu2 %v1356_v62  ;;  %1531 = vmatmul.f32.vlgmr.msrb.gmra.mxu0 %v1354_v59 }
 0x5bf   :  { %1670 = vmatpush.msrb.mxu1 %v1608_v56  ;;  %1698 = vmatpush.msrb.mxu3 %v1624_v12 }
 0x5c0   :  { %1830 = vmatpush.msrb.mxu2 %v1795_v21 }
 0x5c1   :  { %1671 = vmatpush.msrb.mxu1 %v1606_v57  ;;  %1699 = vmatpush.msrb.mxu3 %v1622_v19  ;;  %v1775_v19 = vld [vmem:[%s4203_s5 + $0x6d0] sm:$0xff] }
 0x5c2   :  { %1831 = vmatpush.msrb.mxu2 %v1793_v53 }
 0x5c3   :  { %1672 = vmatpush.msrb.mxu1 %v1604_v58  ;;  %1700 = vmatpush.msrb.mxu3 %v1620_v5  ;;  %v1771_v5 = vld [vmem:[%s4203_s5 + $0x6b0] sm:$0xff] }
 0x5c5   :  { %1551 = vmatmul.f32.vlgmr.msra.gmra.mxu1 %v1355_v60  ;;  %1571 = vmatmul.f32.vlgmr.msra.gmra.mxu3 %v1356_v62 }
 0x5c6   :  { %1673 = vmatpush.msrb.mxu1 %v1602_v63  ;;  %1701 = vmatpush.msrb.mxu3 %v1618_v23  ;;  %v1770_v23 = vld [vmem:[%s4203_s5 + $0x6a8] sm:$0xff] }
 0x5c8   :  { %1674 = vmatpush.msrb.mxu1 %v1600_v0  ;;  %1702 = vmatpush.msrb.mxu3 %v1616_v26  ;;  %v1791_v26 = vld [vmem:[%s4203_s5 + $0x750] sm:$0xff] }
 0x5c9   :  { %1832 = vmatpush.msrb.mxu2 %v1791_v26 }
 0x5ca   :  { %1675 = vmatpush.msrb.mxu1 %v1598_v1  ;;  %1703 = vmatpush.msrb.mxu3 %v1614_v28  ;;  %v1766_v28 = vld [vmem:[%s4203_s5 + $0x688] sm:$0xff] }
 0x5cb   :  { %1833 = vmatpush.msrb.mxu2 %v1789_v29 }
 0x5cc   :  { %1676 = vmatpush.msrb.mxu1 %v1596_v2  ;;  %1704 = vmatpush.msrb.mxu3 %v1612_v31  ;;  %v1763_v31 = vld [vmem:[%s4203_s5 + $0x670] sm:$0xff] }
 0x5ce   :  { %1677 = vmatpush.msrb.mxu1 %v1594_v40  ;;  %1705 = vmatpush.msrb.mxu3 %v1610_v33  ;;  %v1779_v40 = vld [vmem:[%s4203_s5 + $0x6f0] sm:$0xff] }
 0x5cf   :  { %1802 = vmatpush.msrb.mxu0 %v1779_v40  ;;  %v1787_v33 = vld [vmem:[%s4203_s5 + $0x730] sm:$0xff] }
 0x5d0   :  { %1678 = vmatpush.msrb.mxu1 %v1592_v3  ;;  %v1780_v3 = vld [vmem:[%s4203_s5 + $0x6f8] sm:$0xff]  ;;  %1834 = vmatpush.msrb.mxu2 %v1787_v33 }
 0x5d1   :  { %1842 = vmatpush.msra.mxu3 %v1780_v3  ;;  %1803 = vmatpush.msrb.mxu0 %v1777_v17 }
 0x5d2   :  { %1679 = vmatpush.msrb.mxu1 %v1590_v43 }
 0x5d3   :  { %1804 = vmatpush.msrb.mxu0 %v1775_v19 }
 0x5d4   :  { %1680 = vmatpush.msrb.mxu1 %v1588_v47 }
 0x5d5   :  { %1805 = vmatpush.msrb.mxu0 %v1773_v46 }
 0x5d6   :  { %1681 = vmatpush.msrb.mxu1 %v1586_v10 }
 0x5d7   :  { %1806 = vmatpush.msrb.mxu0 %v1771_v5 }
 0x5d8   :  { %1682 = vmatpush.msrb.mxu1 %v1584_v18  ;;  %v1778_v18 = vld [vmem:[%s4203_s5 + $0x6e8] sm:$0xff] }
 0x5d9   :  { %1843 = vmatpush.msra.mxu3 %v1778_v18  ;;  %v1743_v18 = vperm.slane %v4008_v35, 2 }
 0x5da   :  { %1683 = vmatpush.msrb.mxu1 %v1582_v50  ;;  %v1774_v50 = vld [vmem:[%s4203_s5 + $0x6c8] sm:$0xff] }
 0x5db   :  { %1844 = vmatpush.msra.mxu3 %v1776_v45 }
 0x5dc   :  { %1684 = vmatpush.msrb.mxu1 %v1580_v22  ;;  %v1769_v22 = vld [vmem:[%s4203_s5 + $0x6a0] sm:$0xff] }
 0x5dd   :  { %1845 = vmatpush.msra.mxu3 %v1774_v50  ;;  %1807 = vmatpush.msrb.mxu0 %v1769_v22 }
 0x5de   :  { %1685 = vmatpush.msrb.mxu1 %v1578_v25  ;;  %v1768_v25 = vld [vmem:[%s4203_s5 + $0x698] sm:$0xff] }
 0x5df   :  { %1846 = vmatpush.msra.mxu3 %v1772_v20  ;;  %1808 = vmatpush.msrb.mxu0 %v1767_v24 }
 0x5e1   :  { %1847 = vmatpush.msra.mxu3 %v1770_v23  ;;  %1809 = vmatpush.msrb.mxu0 %v1765_v27 }
 0x5e3   :  { %1848 = vmatpush.msra.mxu3 %v1768_v25  ;;  %1810 = vmatpush.msrb.mxu0 %v1763_v31 }
 0x5e5   :  { %1849 = vmatpush.msra.mxu3 %v1766_v28  ;;  %v43_v28 = vld [vmem:[%s4201_s3] sm:$0xf] }
 0x5e7   :  { %1850 = vmatpush.msra.mxu3 %v1764_v32 }
 0x63a   :  { %v1472_v34 = vpop.f32.mrf.mxu1 }
 0x63b   :  { %v1473_v38 = vadd.f32 %v1472_v34, %v1453_v36  ;;  %v1532_v44 = vpop.f32.mrf.mxu0  ;;  %v1761_v34 = vld [vmem:[%s4203_s5 + $0x660] sm:$0xff]  ;;  %v1762_v36 = vld [vmem:[%s4203_s5 + $0x668] sm:$0xff] }
 0x63c   :  { %v1533_v51 = vadd.f32 %v1532_v44, %v1454_v8  ;;  %1811 = vmatpush.msrb.mxu0 %v1761_v34  ;;  %1851 = vmatpush.msra.mxu3 %v1762_v36  ;;  %v1760_v8 = vld [vmem:[%s4203_s5 + $0x658] sm:$0xff]  ;;  %v1757_v44 = vld [vmem:[%s4203_s5 + $0x640] sm:$0xff] }
 0x63e   :  { %1852 = vmatpush.msra.mxu3 %v1760_v8 }
 0x640   :  { %v1492_v39 = vpop.f32.mrf.mxu3 }
 0x641   :  { %v1493_v42 = vadd.f32 %v1492_v39, %v1473_v38  ;;  %v1512_v30 = vpop.f32.mrf.mxu2  ;;  %v1785_v38 = vld [vmem:[%s4203_s5 + $0x720] sm:$0xff]  ;;  %v1759_v39 = vld [vmem:[%s4203_s5 + $0x650] sm:$0xff] }
 0x642   :  { %v1552_v49 = vpop.f32.mrf.mxu1  ;;  %1835 = vmatpush.msrb.mxu2 %v1785_v38  ;;  %1812 = vmatpush.msrb.mxu0 %v1759_v39 }
 0x643   :  { %v1513_v48 = vadd.f32 %v1512_v30, %v1493_v42  ;;  %v1553_v54 = vadd.f32 %v1552_v49, %v1533_v51  ;;  %v1783_v42 = vld [vmem:[%s4203_s5 + $0x710] sm:$0xff]  ;;  %v1758_v30 = vld [vmem:[%s4203_s5 + $0x648] sm:$0xff]  ;;  %v1756_v51 = vld [vmem:[%s4203_s5 + $0x638] sm:$0xff] }
 0x644   :  { %1836 = vmatpush.msrb.mxu2 %v1783_v42  ;;  %1813 = vmatpush.msrb.mxu0 %v1757_v44  ;;  %v1755_v49 = vld [vmem:[%s4203_s5 + $0x630] sm:$0xff] }
 0x645   :  { %v1575_v52 = vadd.f32 %v1513_v48, %v2702_v14  ;;  %v4014_v14 = vld [vmem:[%s4205_s7 + $0x38] sm:$0xff]  ;;  %1853 = vmatpush.msra.mxu3 %v1758_v30  ;;  %v1781_v48 = vld [vmem:[%s4203_s5 + $0x700] sm:$0xff] }
 0x646   :  { %v1626_v59 = vperm.slane %v4014_v14, 0  ;;  %1837 = vmatpush.msrb.mxu2 %v1781_v48  ;;  %1814 = vmatpush.msrb.mxu0 %v1755_v49  ;;  %v1798_v22 = vperm.slane %v4014_v14, 3 }
 0x647   :  { %1646 = vmatmul.f32.vlgmr.msra.gmra.mxu2 %v1575_v52  ;;  %1686 = vmatmul.f32.vlgmr.msrb.gmra.mxu1 %v1575_v52  ;;  %v1796_v52 = vld [vmem:[%s4203_s5 + $0x778] sm:$0xff] }
 0x648   :  { %v1572_v55 = vpop.f32.mrf.mxu3  ;;  %1854 = vmatpush.msra.mxu3 %v1756_v51  ;;  %1870 = vmatpush.msra.mxu2 %v1796_v52 }
 0x649   :  { %v1573_v61 = vadd.f32 %v1572_v55, %v1553_v54  ;;  %v1753_v54 = vld [vmem:[%s4203_s5 + $0x620] sm:$0xff]  ;;  %v1754_v55 = vld [vmem:[%s4203_s5 + $0x628] sm:$0xff] }
 0x64a   :  { %1815 = vmatpush.msrb.mxu0 %v1753_v54  ;;  %1855 = vmatpush.msra.mxu3 %v1754_v55 }
 0x64b   :  { %v1576_v15 = vadd.f32 %v1573_v61, %v2698_v11  ;;  %v1794_v61 = vld [vmem:[%s4203_s5 + $0x768] sm:$0xff] }
 0x64c   :  { %1871 = vmatpush.msra.mxu2 %v1794_v61 }
 0x64d   :  { %1960 = vmatmul.msk.f32.vlgmr.msra.gmra.mxu0 %vm756_vm3, %v1576_v15  ;;  %1961 = vmatmul.msk.f32.vlgmr.msrb.gmra.mxu3 %vm756_vm3, %v1576_v15  ;;  %v1751_v15 = vld [vmem:[%s4203_s5 + $0x610] sm:$0xff] }
 0x64e   :  { %1816 = vmatpush.msrb.mxu0 %v1751_v15 }
 0x6c4   :  { %v1687_v60 = vpop.f32.mrf.mxu1 }
 0x6c5   :  { %v1688_v56 = vadd.f32 %v1687_v60, %v1626_v59  ;;  %v1749_v59 = vld [vmem:[%s4203_s5 + $0x600] sm:$0xff]  ;;  %v1790_v60 = vld [vmem:[%s4203_s5 + $0x748] sm:$0xff] }
 0x6c6   :  { %1817 = vmatpush.msrb.mxu0 %v1749_v59 }
 0x6ca   :  { %v1647_v41 = vpop.f32.mrf.mxu2  ;;  %v1667_v62 = vpop.f32.mrf.mxu0 }
 0x6cb   :  { %v1648_v11 = vadd.f32 %v1647_v41, %v1625_v37  ;;  %v1752_v37 = vld [vmem:[%s4203_s5 + $0x618] sm:$0xff] }
 0x6cc   :  { %v1792_v41 = vld [vmem:[%s4203_s5 + $0x758] sm:$0xff]  ;;  %1856 = vmatpush.msra.mxu3 %v1752_v37 }
 0x6cd   :  { %v1668_v57 = vadd.f32 %v1667_v62, %v1648_v11  ;;  %v1750_v11 = vld [vmem:[%s4203_s5 + $0x608] sm:$0xff]  ;;  %1872 = vmatpush.msra.mxu2 %v1792_v41 }
 0x6ce   :  { %1857 = vmatpush.msra.mxu3 %v1750_v11 }
 0x6cf   :  { %v1710_v0 = vsel %vm401_vm4, %v1668_v57, 0.0  ;;  %1873 = vmatpush.msra.mxu2 %v1790_v60 }
 0x6d0   :  { %v1707_v58 = vpop.f32.mrf.mxu3 }
 0x6d1   :  { %v1708_v63 = vadd.f32 %v1707_v58, %v1688_v56  ;;  %v1788_v56 = vld [vmem:[%s4203_s5 + $0x738] sm:$0xff]  ;;  %v1786_v58 = vld [vmem:[%s4203_s5 + $0x728] sm:$0xff] }
 0x6d2   :  { %1874 = vmatpush.msra.mxu2 %v1788_v56 }
 0x6d3   :  { %v1711_v1 = vsel %vm841_vm15, %v1708_v63, 0.0 }
 0x6d4   :  { %v1712_v2 = vadd.f32 %v1711_v1, %v1710_v0  ;;  %v1784_v0 = vld [vmem:[%s4203_s5 + $0x718] sm:$0xff]  ;;  %1875 = vmatpush.msra.mxu2 %v1786_v58  ;;  %v1782_v1 = vld [vmem:[%s4203_s5 + $0x708] sm:$0xff] }
 0x6d6   :  { %1713 = vadd.xlane.f32.xlu2 %v1712_v2  ;;  %1876 = vmatpush.msra.mxu2 %v1784_v0 }
 0x6d8   :  { %1877 = vmatpush.msra.mxu2 %v1782_v1 }
 0x749   :  { %v1714_v4 = vpop.xlane.xlu2 %1713 }
 0x74a   :  { %v1715_v43 = vmul.f32 %v1714_v4, %v3154_v16 }
 0x74c   :  { %v4026_v6 = vsub.f32 %v1668_v57, %v1715_v43  ;;  %v4028_v47 = vsub.f32 %v1708_v63, %v1715_v43 }
 0x74e   :  { %v1718_v7 = vmul.f32 %v4026_v6, %v4026_v6  ;;  %v1719_v9 = vmul.f32 %v4028_v47, %v4028_v47 }
 0x750   :  { %v1720_v10 = vsel %vm401_vm4, %v1718_v7, 0.0  ;;  %v1721_v12 = vsel %vm841_vm15, %v1719_v9, 0.0  ;;  %v1740_v7 = vperm.slane %v4014_v14, 1  ;;  %v1739_v9 = vperm.slane %v4008_v35, 1 }
 0x751   :  { %v1722_v13 = vadd.f32 %v1721_v12, %v1720_v10  ;;  %v1744_v12 = vperm.slane %v4014_v14, 2 }
 0x753   :  { %1723 = vadd.xlane.f32.xlu0 %v1722_v13 }
 0x7c6   :  { %v1724_v62 = vpop.xlane.xlu0 %1723 }
 0x7c7   :  { %v1725_v57 = vmul.f32 %v1724_v62, %v3154_v16 }
 0x7c9   :  { %v1726_v63 = vadd.f32 1e-05, %v1725_v57 }
 0x7cb   :  { %1988 = vrsqrt.f32 %v1726_v63  ;;  %vm1733_vm11 = vweird.f32 %v1726_v63 }
 0x7d1   :  { %v1989_v2 = vpop.eup %1988 }
 0x7d2   :  { %v1728_v16 = vmul.f32 %v1989_v2, %v1726_v63  ;;  %vm1734_vm10 = vweird.f32 %v1989_v2 }
 0x7d3   :  { %vm1735_vm12 = vmor %vm1733_vm11, %vm1734_vm10 }
 0x7d4   :  { %v1729_v40 = vmul.f32 %v1989_v2, %v1728_v16 }
 0x7d6   :  { %v1730_v3 = vmul.f32 0.5, %v1729_v40 }
 0x7d8   :  { %v1731_v4 = vsub.f32 1.5, %v1730_v3 }
 0x7da   :  { %v1732_v43 = vmul.f32 %v1989_v2, %v1731_v4 }
 0x7dc   :  { %v1736_v10 = vsel %vm1735_vm12, %v1989_v2, %v1732_v43 }
 0x7dd   :  { %v1737_v13 = vmul.f32 %v1736_v10, %v4026_v6  ;;  %v1738_v17 = vmul.f32 %v1736_v10, %v4028_v47  ;;  %v1797_v47 = vperm.slane %v4008_v35, 3 }
 0x7df   :  { %v1742_v19 = vmul.f32 %v1740_v7, %v1738_v17  ;;  %v1741_v45 = vmul.f32 %v1739_v9, %v1737_v13 }
 0x7e1   :  { %v1745_v46 = vadd.f32 %v1743_v18, %v1741_v45  ;;  %v1746_v50 = vadd.f32 %v1744_v12, %v1742_v19 }
 0x7e3   :  { %v1747_v5 = vmax.f32 %v1745_v46, 0.0  ;;  %v1748_v20 = vmax.f32 %v1746_v50, 0.0 }
 0x7e5   :  { %1818 = vmatmul.f32.vlgmr.msrb.gmra.mxu0 %v1747_v5  ;;  %1962 = vmatmul.msk.f32.vlgmr.msrb.gmra.mxu2 %vm756_vm3, %v1748_v20 }
 0x7e6   :  { %1858 = vmatmul.f32.vlgmr.msra.gmra.mxu3 %v1747_v5 }
 0x7ed   :  { %1963 = vmatmul.msk.f32.vlgmr.msra.gmra.mxu2 %vm756_vm3, %v1748_v20  ;;  %vm1888_vm3 = vmor %vm1887_vm13, %vm401_vm4 }
 0x862   :  { %v1819_v23 = vpop.f32.mrf.mxu0 }
 0x863   :  { %v1820_v25 = vadd.f32 %v1819_v23, %v1797_v47 }
 0x868   :  { %v1839_v21 = vpop.f32.mrf.mxu2 }
 0x869   :  { %v1859_v6 = vpop.f32.mrf.mxu3  ;;  %v1840_v27 = vadd.f32 %v1839_v21, %v1820_v25 }
 0x86a   :  { %v1860_v53 = vadd.f32 %v1859_v6, %v1798_v22 }
 0x870   :  { %v1879_v24 = vpop.f32.mrf.mxu2 }
 0x871   :  { %v1880_v26 = vadd.f32 %v1879_v24, %v1860_v53 }
 0x873   :  { %v1884_v29 = vrot.slane %v1880_v26, 6 }
 0x875   :  { %v1885_v31 = vsel %vm401_vm4, %v1840_v27, %v1884_v29 }
 0x876   :  { %v1890_v14 = vsub.f32 %v43_v28, %v1885_v31  ;;  %1889 = vst.msk [vmem:[#allocation2] sm:$0xf] %vm1888_vm3, %v1885_v31 }
 0x877   :  { %1923 = dma.vmem_to_hbm [thread:$0]  %s1919_s2, 64, %s1921_s26, [#allocation3]  }
 0x878   :  { %v1891_v32 = vmul.f32 %v1890_v14, %v1890_v14 }
 0x87a   :  { %1893 = vst [vmem:[#allocation1] ss:$4 sm:$0xff] %v1891_v32 }
 0x881   :  { %v1894_v35 = vld.sshfl [vmem:[#allocation1] sm:$0xff pattern:$0x73625140]  ;;  %v1895_v33 = vld.sshfl [vmem:[#allocation1 + $0x8] sm:$0xff pattern:$0x73625140] }
 0x882   :  { %v1898_v34 = vsel %vm401_vm4, %v1894_v35, 0.0  ;;  %v1899_v36 = vsel %vm841_vm15, %v1895_v33, 0.0 }
 0x883   :  { %v1900_v38 = vadd.f32 %v1899_v36, %v1898_v34 }
 0x885   :  { %1901 = vadd.xlane.f32.xlu1 %v1900_v38 }
 0x8f8   :  { %v1902_v39 = vpop.xlane.xlu1 %1901 }
 0x8f9   :  { %v1903_v8 = vrot.slane %v1902_v39, 4 }
 0x8fb   :  { %v1904_v42 = vadd.f32 %v1903_v8, %v1902_v39 }
 0x8fd   :  { %v1905_v44 = vrot.slane %v1904_v42, 2 }
 0x8ff   :  { %v1906_v30 = vadd.f32 %v1905_v44, %v1904_v42 }
 0x901   :  { %v1907_v48 = vrot.slane %v1906_v30, 1 }
 0x903   :  { %v1908_v49 = vadd.f32 %v1907_v48, %v1906_v30 }
 0x905   :  { %1964 = vpush %v1908_v49 }
 0x936   :  { %s1965_s29 = spop %1964 }
 0x937   :  { %s1910_s30 = smul.f32 0.0026041667, %s1965_s29 }
 0x939   :  { %1912 = sst [smem:[#allocation5]] %s1910_s30 }
 0x93a   :  { %1932 = dma.smem_to_hbm %s2037_s8, 16, %s1930_s28, [#allocation4]  }
 0x93b   :  { %2028 = dma.done.wait [#allocation3], 64  }
 0x93c   :  { %2029 = vsyncadd [#allocation3], 4294967232 }
 0x93d   :  { %2030 = dma.done.wait [#allocation4], 16  }
 0x93e   :  { %2031 = vsyncadd [#allocation4], 4294967280 }
 0x93f   :  { %1941 = sfence }
 0x940   :  { %1942 = vsyncpa [#allocation3], 1 }
 0x941   :  { %1943 = vsyncpa [#allocation4], 1 }

</bundles_post_ra>
